<compile_context>
chip_gen: v7x
topology: tpu7x:2x2x1
jax: 0.10.0
libtpu: 0.0.40
codegen_flags: <defaults>
</compile_context>

<pallas_src>
import functools

import jax
import jax.numpy as jnp
from jax import lax
from jax.experimental import pallas as pl
from jax.experimental.pallas import tpu as pltpu

_LANE = 128
# Safe on v7x (64 MiB physical per TensorCore), generous vs the 16/32 MiB
# scoped defaults on v5e/v6e.
# TODO(synk): derive per-generation budgets (48-56 MiB v7x, 64-100 MiB v5e/v6e)
# from pltpu.get_tpu_info() and feed them into the tile picker.
_VMEM_LIMIT = 48 * 1024 * 1024


def _round_up(x, m):
    return (x + m - 1) // m * m


def _largest_divisor_leq(n, cap):
    cap = max(1, min(n, cap))
    for d in range(cap, 0, -1):
        if n % d == 0:
            return d
    return 1


def _pick_pool_row_tile(Ho, Wo, C_out_pad, budget_bytes=12 * 1024 * 1024):
    # 4 window inputs + 2 outputs per pooled row, f32/i32, double-buffered.
    bytes_per_pooled_row = 6 * 2 * Wo * C_out_pad * 4
    return _largest_divisor_leq(Ho, budget_bytes // bytes_per_pooled_row)


def _conv_stats_kernel(x_ref, w_ref, b_ref, conv_ref, sum_ref, sq_ref, p_ref,
                       *, H, W, C_in_pad, K):
    """Pass 1: Conv2d('same') via one bf16 im2col MXU matmul + BN partial stats.

    Grid: (N,) -- one padded image per step ("parallel"; megacore on v7x).
      x_ref    : (H+K-1, W+K-1, C_in_pad)  bf16 zero-padded NHWC image
      w_ref    : (K*K*C_in_pad, C_out_pad) bf16 weights, rows ordered (ky,kx,ci)
      b_ref    : (1, C_out_pad)            f32 conv bias
      conv_ref : (H*W, C_out_pad)          f32 conv output (pre-BN)
      sum_ref  : (1, C_out_pad)            f32 per-image sum
      sq_ref   : (1, C_out_pad)            f32 per-image sum of squares
      p_ref    : (H*W, K*K*C_in_pad)       bf16 VMEM im2col scratch
    """
    R = H * W
    # im2col patch: K*K tap slabs.  C_in is padded to a multiple of 128 in the
    # wrapper, so every store below is a full-width lane-aligned slab (no
    # masked vst.msk stores, which matters most on v5e's single store slot).
    for ky in range(K):
        for kx in range(K):
            k = ky * K + kx
            tap = x_ref[pl.ds(ky, H), pl.ds(kx, W), :]        # (H, W, C_in_pad)
            p_ref[:, pl.ds(k * C_in_pad, C_in_pad)] = tap.reshape(R, C_in_pad)

    # One MXU matmul (contraction K*K*C_in_pad), bf16 in, f32 accumulation.
    acc = jnp.dot(p_ref[...], w_ref[...], preferred_element_type=jnp.float32)
    acc = acc + b_ref[...]
    conv_ref[...] = acc

    # BatchNorm pass 1: per-tile partial sum / sum-of-squares.  Finalized in
    # the wrapper; pass 2 applies the resulting folded affine.
    sum_ref[...] = jnp.sum(acc, axis=0, keepdims=True)
    sq_ref[...] = jnp.sum(acc * acc, axis=0, keepdims=True)


def _bn_relu_pool_kernel(v00_ref, v01_ref, v10_ref, v11_ref, scale_ref,
                         shift_ref, out_ref, idx_ref, *, W, THo, Wo, P):
    """Pass 2: folded BN affine + ReLU + 2x2 MaxPool with PyTorch flat indices.

    Grid: (N, Ho // THo), both "parallel".  The four window inputs are the same
    conv-output array read through four BlockSpecs, each selecting one
    (row-phase, col-phase) of the 2x2 window, so the pool is a pure VPU
    max/where tree with no strided or integer ref indexing.
      v??_ref   : (THo, Wo, C_out_pad) f32 conv values at window position ??
      scale_ref : (1, 1, C_out_pad)    f32 gamma * rsqrt(var + eps)
      shift_ref : (1, 1, C_out_pad)    f32 beta - mean * scale
      out_ref   : (THo, Wo, C_out_pad) f32 pooled values
      idx_ref   : (THo, Wo, C_out_pad) i32 argmax flat index (h*W + w)
    """
    scale = scale_ref[...]
    shift = shift_ref[...]

    def act(ref):
        return jnp.maximum(ref[...] * scale + shift, 0.0)

    # Flat PyTorch index of each window's top-left corner; plain iota math
    # (no power-of-two restrictions), one (THo, Wo, 1) column broadcast at the
    # final selects instead of full-width iotas.
    oi = (lax.broadcasted_iota(jnp.int32, (THo, Wo, 1), 0)
          + pl.program_id(1) * THo)
    oj = lax.broadcasted_iota(jnp.int32, (THo, Wo, 1), 1)
    base = (P * oi) * W + P * oj

    # First-occurrence tie-break in scan order (0,0),(0,1),(1,0),(1,1).
    # Row pair 0 is fully reduced before row pair 1 is loaded (live-vreg cap).
    v00 = act(v00_ref)
    v01 = act(v01_ref)
    m01 = jnp.maximum(v00, v01)
    a01 = jnp.where(v00 >= v01, base, base + 1)
    v10 = act(v10_ref)
    v11 = act(v11_ref)
    m23 = jnp.maximum(v10, v11)
    a23 = jnp.where(v10 >= v11, base + W, base + W + 1)

    out_ref[...] = jnp.maximum(m01, m23)
    idx_ref[...] = jnp.where(m01 >= m23, a01, a23)


def conv_block_forward(x_nchw, weight_oihw, bias, gamma, beta,
                       *, pool_size=2, eps=1e-5):
    """ConvBlock forward; NCHW in/out like the PyTorch module.

    Returns (pooled, indices) like nn.MaxPool2d(..., return_indices=True).
    """
    N, C_in, H, W = x_nchw.shape
    C_out, c_in_w, K, k2 = weight_oihw.shape
    assert c_in_w == C_in and K == k2 and K % 2 == 1
    P = pool_size
    assert P == 2, "kernel implements the module's default 2x2 pooling window"
    # TODO(synk): general pool_size needs a pool_size**2-way max/where tree.
    assert H % P == 0 and W % P == 0
    Ho, Wo = H // P, W // P
    pad = K // 2

    # Lane-dense channel padding: keeps every im2col tap store, the MXU output
    # and all result stores full 128-lane slabs (padding sliced off at the end).
    C_in_pad = _round_up(C_in, _LANE)
    C_out_pad = _round_up(C_out, _LANE)

    # Layout glue: NCHW->NHWC, explicit 'same' zero pad, channel pad, bf16 cast
    # for the MXU fast path (accumulation stays f32 in-kernel).
    # TODO(synk): fold transpose/pad into pass 1 with halo (overlapping) row
    # blocks, and tile within an image, for very large H*W inputs.
    x = jnp.transpose(x_nchw, (0, 2, 3, 1)).astype(jnp.bfloat16)
    x = jnp.pad(x, ((0, 0), (pad, pad), (pad, pad), (0, C_in_pad - C_in)))
    w = jnp.transpose(weight_oihw, (2, 3, 1, 0)).astype(jnp.float32)
    w = jnp.pad(w, ((0, 0), (0, 0), (0, C_in_pad - C_in), (0, C_out_pad - C_out)))
    w = w.reshape(K * K * C_in_pad, C_out_pad).astype(jnp.bfloat16)
    b = jnp.pad(bias.astype(jnp.float32), (0, C_out_pad - C_out)).reshape(1, C_out_pad)
    g = jnp.pad(gamma.astype(jnp.float32), (0, C_out_pad - C_out)).reshape(1, C_out_pad)
    bt = jnp.pad(beta.astype(jnp.float32), (0, C_out_pad - C_out)).reshape(1, C_out_pad)

    # ---- Pass 1: conv + BN partial stats, grid over batch ("parallel"). ----
    kernel1 = functools.partial(_conv_stats_kernel, H=H, W=W,
                                C_in_pad=C_in_pad, K=K)
    flops = 2 * N * H * W * (K * K * C_in_pad) * C_out_pad
    bytes_accessed = (x.size * 2 + w.size * 2
                      + N * H * W * C_out_pad * 4 + 2 * N * C_out_pad * 4)
    conv, psum, psq = pl.pallas_call(
        kernel1,
        grid=(N,),
        in_specs=[
            pl.BlockSpec((None, H + K - 1, W + K - 1, C_in_pad),
                         lambda n: (n, 0, 0, 0)),
            pl.BlockSpec((K * K * C_in_pad, C_out_pad), lambda n: (0, 0)),
            pl.BlockSpec((1, C_out_pad), lambda n: (0, 0)),
        ],
        out_specs=(
            pl.BlockSpec((None, H * W, C_out_pad), lambda n: (n, 0, 0)),
            pl.BlockSpec((None, 1, C_out_pad), lambda n: (n, 0, 0)),
            pl.BlockSpec((None, 1, C_out_pad), lambda n: (n, 0, 0)),
        ),
        out_shape=(
            jax.ShapeDtypeStruct((N, H * W, C_out_pad), jnp.float32),
            jax.ShapeDtypeStruct((N, 1, C_out_pad), jnp.float32),
            jax.ShapeDtypeStruct((N, 1, C_out_pad), jnp.float32),
        ),
        scratch_shapes=[pltpu.VMEM((H * W, K * K * C_in_pad), jnp.bfloat16)],
        compiler_params=pltpu.CompilerParams(
            dimension_semantics=("parallel",),
            vmem_limit_bytes=_VMEM_LIMIT),
        cost_estimate=pl.CostEstimate(flops=flops, transcendentals=0,
                                      bytes_accessed=bytes_accessed),
    )(x, w, b)

    # ---- BN finalize (tiny, 2*C_out_pad values): batch stats -> one affine. --
    cnt = jnp.float32(N * H * W)
    mean = jnp.sum(psum, axis=0) / cnt                    # (1, C_out_pad)
    ex2 = jnp.sum(psq, axis=0) / cnt
    var = jnp.maximum(ex2 - mean * mean, 0.0)             # biased; clamp cancellation
    # TODO(synk): one-pass E[x^2]-E[x]^2 loses precision when |mean| >> std; a
    # mean-centered second reduction pass is safer at production scale.
    scale = g * lax.rsqrt(var + eps)
    shift = bt - mean * scale
    scale3 = scale.reshape(1, 1, C_out_pad)
    shift3 = shift.reshape(1, 1, C_out_pad)
    # TODO(synk): BatchNorm running_mean/running_var momentum updates are module
    # training state (not part of the returned tensors); omitted here.

    # ---- Pass 2: affine + ReLU + 2x2 max-pool with indices. ----------------
    # Metadata-only reshape exposing (row-phase, col-phase) of each pooling
    # window as addressable dims; the four window phases are then delivered as
    # four BlockSpec inputs over the same array (DMA does the strided select).
    conv4 = conv.reshape(N, Ho, P, Wo, P * C_out_pad)
    THo = _pick_pool_row_tile(Ho, Wo, C_out_pad)

    def win_spec(di, dj):
        def imap(n, t, di=di, dj=dj):
            return (n, t, di, 0, dj)
        return pl.BlockSpec((None, THo, None, Wo, C_out_pad), imap)

    kernel2 = functools.partial(_bn_relu_pool_kernel, W=W, THo=THo, Wo=Wo, P=P)
    pooled4, idx4 = pl.pallas_call(
        kernel2,
        grid=(N, Ho // THo),
        in_specs=[win_spec(0, 0), win_spec(0, 1), win_spec(1, 0), win_spec(1, 1),
                  pl.BlockSpec((1, 1, C_out_pad), lambda n, t: (0, 0, 0)),
                  pl.BlockSpec((1, 1, C_out_pad), lambda n, t: (0, 0, 0))],
        out_specs=(
            pl.BlockSpec((None, THo, Wo, C_out_pad), lambda n, t: (n, t, 0, 0)),
            pl.BlockSpec((None, THo, Wo, C_out_pad), lambda n, t: (n, t, 0, 0)),
        ),
        out_shape=(
            jax.ShapeDtypeStruct((N, Ho, Wo, C_out_pad), jnp.float32),
            jax.ShapeDtypeStruct((N, Ho, Wo, C_out_pad), jnp.int32),
        ),
        compiler_params=pltpu.CompilerParams(
            dimension_semantics=("parallel", "parallel"),
            vmem_limit_bytes=_VMEM_LIMIT),
    )(conv4, conv4, conv4, conv4, scale3, shift3)

    # Back to the module's NCHW convention; drop the channel padding.
    pooled = jnp.transpose(pooled4[..., :C_out], (0, 3, 1, 2))
    indices = jnp.transpose(idx4[..., :C_out], (0, 3, 1, 2))
    return pooled, indices


def _reference(x, w, b, g, bt, eps=1e-5):
    """Pure-JAX f32 reference of the PyTorch forward (NCHW).

    Returns (pooled, indices, post_bn_relu_activation).
    """
    conv = lax.conv_general_dilated(
        x, w, window_strides=(1, 1), padding="SAME",
        dimension_numbers=("NCHW", "OIHW", "NCHW"))
    conv = conv + b.reshape(1, -1, 1, 1)
    mean = conv.mean(axis=(0, 2, 3), keepdims=True)
    var = ((conv - mean) ** 2).mean(axis=(0, 2, 3), keepdims=True)
    y = (conv - mean) / jnp.sqrt(var + eps)
    y = y * g.reshape(1, -1, 1, 1) + bt.reshape(1, -1, 1, 1)
    y = jnp.maximum(y, 0.0)
    N, C, H, W = y.shape
    Ho, Wo = H // 2, W // 2
    yw = y.reshape(N, C, Ho, 2, Wo, 2).transpose(0, 1, 2, 4, 3, 5)
    yw = yw.reshape(N, C, Ho, Wo, 4)
    pooled = yw.max(axis=-1)
    a = jnp.argmax(yw, axis=-1)                 # first-occurrence tiebreak
    dr, dc = a // 2, a % 2
    ii = jnp.arange(Ho).reshape(1, 1, Ho, 1)
    jj = jnp.arange(Wo).reshape(1, 1, 1, Wo)
    idx = (2 * ii + dr) * W + (2 * jj + dc)
    return pooled, idx.astype(jnp.int32), y


if __name__ == "__main__":
    key = jax.random.PRNGKey(0)
    k_x, k_w, k_b, k_g, k_bt = jax.random.split(key, 5)

    N, C_in, C_out, H, W, K = 2, 4, 8, 16, 16, 3
    Ho, Wo = H // 2, W // 2
    x = jax.random.normal(k_x, (N, C_in, H, W), jnp.float32)
    weight = 0.1 * jax.random.normal(k_w, (C_out, C_in, K, K), jnp.float32)
    bias = 0.05 * jax.random.normal(k_b, (C_out,), jnp.float32)
    gamma = 1.0 + 0.1 * jax.random.normal(k_g, (C_out,), jnp.float32)
    beta = 0.1 * jax.random.normal(k_bt, (C_out,), jnp.float32)

    fwd = jax.jit(conv_block_forward)
    pooled, indices = fwd(x, weight, bias, gamma, beta)
    pooled = jax.block_until_ready(pooled)
    indices = jax.block_until_ready(indices)

    ref_pooled, ref_indices, ref_act = _reference(x, weight, bias, gamma, beta)

    assert pooled.shape == (N, C_out, Ho, Wo), pooled.shape
    assert indices.shape == (N, C_out, Ho, Wo), indices.shape

    # Pooled values: bf16 MXU path vs f32 reference.
    if not jnp.allclose(pooled, ref_pooled, rtol=5e-2, atol=5e-2):
        raise AssertionError("pooled values mismatch vs. reference")

    # Index checks (gated for bf16-induced near-tie argmax flips):
    # (1) structural: every index lies inside its own 2x2 window.
    hh = indices // W
    ww = indices % W
    oi = jnp.arange(Ho).reshape(1, 1, Ho, 1)
    oj = jnp.arange(Wo).reshape(1, 1, 1, Wo)
    in_window = ((hh - 2 * oi >= 0) & (hh - 2 * oi < 2)
                 & (ww - 2 * oj >= 0) & (ww - 2 * oj < 2))
    if not bool(jnp.all(in_window)):
        raise AssertionError("maxpool indices fall outside their 2x2 window")
    # (2) semantic: the reference activation at the returned index is
    #     (near-)maximal for that window.
    gathered = jnp.take_along_axis(
        ref_act.reshape(N, C_out, H * W),
        indices.reshape(N, C_out, Ho * Wo), axis=2).reshape(ref_pooled.shape)
    if not jnp.allclose(gathered, ref_pooled, rtol=1e-1, atol=1e-1):
        raise AssertionError("maxpool indices do not point at (near-)max values")
    # (3) the vast majority of indices match the f32 reference exactly.
    mismatch = jnp.mean((indices != ref_indices).astype(jnp.float32))
    if float(mismatch) > 0.1:
        raise AssertionError("too many maxpool index mismatches vs. reference")

    print("KERNEL_OK")
</pallas_src>

<mosaic_0001>
module attributes {stable_mosaic.version = 11 : i64} {
  func.func @_conv_stats_kernel(%arg0: i32, %arg1: memref<1x18x18x128xbf16, #tpu.memory_space<vmem>>, %arg2: memref<1152x128xbf16, #tpu.memory_space<vmem>>, %arg3: memref<1x128xf32, #tpu.memory_space<vmem>>, %arg4: memref<1x256x128xf32, #tpu.memory_space<vmem>>, %arg5: memref<1x1x128xf32, #tpu.memory_space<vmem>>, %arg6: memref<1x1x128xf32, #tpu.memory_space<vmem>>, %arg7: memref<256x1152xbf16, #tpu.memory_space<vmem>>) attributes {dimension_semantics = [#tpu.dimension_semantics<parallel>], iteration_bounds = array<i64: 2>, scalar_prefetch = 0 : i64, scratch_operands = 1 : i64, tpu.core_type = #tpu.core_type<tc>, window_params = [{transform_indices = @transform_0, window_bounds = array<i64: 1, 18, 18, 128>}, {pipeline_mode = #tpu.pipeline_mode<synchronous>, transform_indices = @transform_1, window_bounds = array<i64: 1152, 128>}, {pipeline_mode = #tpu.pipeline_mode<synchronous>, transform_indices = @transform_2, window_bounds = array<i64: 1, 128>}, {transform_indices = @transform_3, window_bounds = array<i64: 1, 256, 128>}, {transform_indices = @transform_4, window_bounds = array<i64: 1, 1, 128>}, {transform_indices = @transform_5, window_bounds = array<i64: 1, 1, 128>}]} {
    %c0 = arith.constant 0 : index
    %c0_0 = arith.constant 0 : index
    %c0_1 = arith.constant 0 : index
    %c0_2 = arith.constant 0 : index
    %0 = vector.load %arg1[%c0, %c0_0, %c0_1, %c0_2] : memref<1x18x18x128xbf16, #tpu.memory_space<vmem>>, vector<1x16x16x128xbf16>
    %1 = vector.shape_cast %0 : vector<1x16x16x128xbf16> to vector<16x16x128xbf16>
    %2 = vector.shape_cast %1 : vector<16x16x128xbf16> to vector<256x128xbf16>
    %c0_3 = arith.constant 0 : index
    %c0_4 = arith.constant 0 : index
    %3 = vector.load %arg7[%c0_3, %c0_4] : memref<256x1152xbf16, #tpu.memory_space<vmem>>, vector<256x128xbf16>
    tpu.vector_store %arg7[%c0_3, %c0_4], %2 {strides = array<i32>} : memref<256x1152xbf16, #tpu.memory_space<vmem>>, vector<256x128xbf16>,
    %c0_5 = arith.constant 0 : index
    %c0_6 = arith.constant 0 : index
    %c1 = arith.constant 1 : index
    %c0_7 = arith.constant 0 : index
    %4 = vector.load %arg1[%c0_5, %c0_6, %c1, %c0_7] : memref<1x18x18x128xbf16, #tpu.memory_space<vmem>>, vector<1x16x16x128xbf16>
    %5 = vector.shape_cast %4 : vector<1x16x16x128xbf16> to vector<16x16x128xbf16>
    %6 = vector.shape_cast %5 : vector<16x16x128xbf16> to vector<256x128xbf16>
    %c0_8 = arith.constant 0 : index
    %c128 = arith.constant 128 : index
    %7 = vector.load %arg7[%c0_8, %c128] : memref<256x1152xbf16, #tpu.memory_space<vmem>>, vector<256x128xbf16>
    tpu.vector_store %arg7[%c0_8, %c128], %6 {strides = array<i32>} : memref<256x1152xbf16, #tpu.memory_space<vmem>>, vector<256x128xbf16>,
    %c0_9 = arith.constant 0 : index
    %c0_10 = arith.constant 0 : index
    %c2 = arith.constant 2 : index
    %c0_11 = arith.constant 0 : index
    %8 = vector.load %arg1[%c0_9, %c0_10, %c2, %c0_11] : memref<1x18x18x128xbf16, #tpu.memory_space<vmem>>, vector<1x16x16x128xbf16>
    %9 = vector.shape_cast %8 : vector<1x16x16x128xbf16> to vector<16x16x128xbf16>
    %10 = vector.shape_cast %9 : vector<16x16x128xbf16> to vector<256x128xbf16>
    %c0_12 = arith.constant 0 : index
    %c256 = arith.constant 256 : index
    %11 = vector.load %arg7[%c0_12, %c256] : memref<256x1152xbf16, #tpu.memory_space<vmem>>, vector<256x128xbf16>
    tpu.vector_store %arg7[%c0_12, %c256], %10 {strides = array<i32>} : memref<256x1152xbf16, #tpu.memory_space<vmem>>, vector<256x128xbf16>,
    %c0_13 = arith.constant 0 : index
    %c1_14 = arith.constant 1 : index
    %c0_15 = arith.constant 0 : index
    %c0_16 = arith.constant 0 : index
    %12 = vector.load %arg1[%c0_13, %c1_14, %c0_15, %c0_16] : memref<1x18x18x128xbf16, #tpu.memory_space<vmem>>, vector<1x16x16x128xbf16>
    %13 = vector.shape_cast %12 : vector<1x16x16x128xbf16> to vector<16x16x128xbf16>
    %14 = vector.shape_cast %13 : vector<16x16x128xbf16> to vector<256x128xbf16>
    %c0_17 = arith.constant 0 : index
    %c384 = arith.constant 384 : index
    %15 = vector.load %arg7[%c0_17, %c384] : memref<256x1152xbf16, #tpu.memory_space<vmem>>, vector<256x128xbf16>
    tpu.vector_store %arg7[%c0_17, %c384], %14 {strides = array<i32>} : memref<256x1152xbf16, #tpu.memory_space<vmem>>, vector<256x128xbf16>,
    %c0_18 = arith.constant 0 : index
    %c1_19 = arith.constant 1 : index
    %c1_20 = arith.constant 1 : index
    %c0_21 = arith.constant 0 : index
    %16 = vector.load %arg1[%c0_18, %c1_19, %c1_20, %c0_21] : memref<1x18x18x128xbf16, #tpu.memory_space<vmem>>, vector<1x16x16x128xbf16>
    %17 = vector.shape_cast %16 : vector<1x16x16x128xbf16> to vector<16x16x128xbf16>
    %18 = vector.shape_cast %17 : vector<16x16x128xbf16> to vector<256x128xbf16>
    %c0_22 = arith.constant 0 : index
    %c512 = arith.constant 512 : index
    %19 = vector.load %arg7[%c0_22, %c512] : memref<256x1152xbf16, #tpu.memory_space<vmem>>, vector<256x128xbf16>
    tpu.vector_store %arg7[%c0_22, %c512], %18 {strides = array<i32>} : memref<256x1152xbf16, #tpu.memory_space<vmem>>, vector<256x128xbf16>,
    %c0_23 = arith.constant 0 : index
    %c1_24 = arith.constant 1 : index
    %c2_25 = arith.constant 2 : index
    %c0_26 = arith.constant 0 : index
    %20 = vector.load %arg1[%c0_23, %c1_24, %c2_25, %c0_26] : memref<1x18x18x128xbf16, #tpu.memory_space<vmem>>, vector<1x16x16x128xbf16>
    %21 = vector.shape_cast %20 : vector<1x16x16x128xbf16> to vector<16x16x128xbf16>
    %22 = vector.shape_cast %21 : vector<16x16x128xbf16> to vector<256x128xbf16>
    %c0_27 = arith.constant 0 : index
    %c640 = arith.constant 640 : index
    %23 = vector.load %arg7[%c0_27, %c640] : memref<256x1152xbf16, #tpu.memory_space<vmem>>, vector<256x128xbf16>
    tpu.vector_store %arg7[%c0_27, %c640], %22 {strides = array<i32>} : memref<256x1152xbf16, #tpu.memory_space<vmem>>, vector<256x128xbf16>,
    %c0_28 = arith.constant 0 : index
    %c2_29 = arith.constant 2 : index
    %c0_30 = arith.constant 0 : index
    %c0_31 = arith.constant 0 : index
    %24 = vector.load %arg1[%c0_28, %c2_29, %c0_30, %c0_31] : memref<1x18x18x128xbf16, #tpu.memory_space<vmem>>, vector<1x16x16x128xbf16>
    %25 = vector.shape_cast %24 : vector<1x16x16x128xbf16> to vector<16x16x128xbf16>
    %26 = vector.shape_cast %25 : vector<16x16x128xbf16> to vector<256x128xbf16>
    %c0_32 = arith.constant 0 : index
    %c768 = arith.constant 768 : index
    %27 = vector.load %arg7[%c0_32, %c768] : memref<256x1152xbf16, #tpu.memory_space<vmem>>, vector<256x128xbf16>
    tpu.vector_store %arg7[%c0_32, %c768], %26 {strides = array<i32>} : memref<256x1152xbf16, #tpu.memory_space<vmem>>, vector<256x128xbf16>,
    %c0_33 = arith.constant 0 : index
    %c2_34 = arith.constant 2 : index
    %c1_35 = arith.constant 1 : index
    %c0_36 = arith.constant 0 : index
    %28 = vector.load %arg1[%c0_33, %c2_34, %c1_35, %c0_36] : memref<1x18x18x128xbf16, #tpu.memory_space<vmem>>, vector<1x16x16x128xbf16>
    %29 = vector.shape_cast %28 : vector<1x16x16x128xbf16> to vector<16x16x128xbf16>
    %30 = vector.shape_cast %29 : vector<16x16x128xbf16> to vector<256x128xbf16>
    %c0_37 = arith.constant 0 : index
    %c896 = arith.constant 896 : index
    %31 = vector.load %arg7[%c0_37, %c896] : memref<256x1152xbf16, #tpu.memory_space<vmem>>, vector<256x128xbf16>
    tpu.vector_store %arg7[%c0_37, %c896], %30 {strides = array<i32>} : memref<256x1152xbf16, #tpu.memory_space<vmem>>, vector<256x128xbf16>,
    %c0_38 = arith.constant 0 : index
    %c2_39 = arith.constant 2 : index
    %c2_40 = arith.constant 2 : index
    %c0_41 = arith.constant 0 : index
    %32 = vector.load %arg1[%c0_38, %c2_39, %c2_40, %c0_41] : memref<1x18x18x128xbf16, #tpu.memory_space<vmem>>, vector<1x16x16x128xbf16>
    %33 = vector.shape_cast %32 : vector<1x16x16x128xbf16> to vector<16x16x128xbf16>
    %34 = vector.shape_cast %33 : vector<16x16x128xbf16> to vector<256x128xbf16>
    %c0_42 = arith.constant 0 : index
    %c1024 = arith.constant 1024 : index
    %35 = vector.load %arg7[%c0_42, %c1024] : memref<256x1152xbf16, #tpu.memory_space<vmem>>, vector<256x128xbf16>
    tpu.vector_store %arg7[%c0_42, %c1024], %34 {strides = array<i32>} : memref<256x1152xbf16, #tpu.memory_space<vmem>>, vector<256x128xbf16>,
    %c0_43 = arith.constant 0 : index
    %c0_44 = arith.constant 0 : index
    %36 = vector.load %arg7[%c0_43, %c0_44] : memref<256x1152xbf16, #tpu.memory_space<vmem>>, vector<256x1152xbf16>
    %c0_45 = arith.constant 0 : index
    %c0_46 = arith.constant 0 : index
    %37 = vector.load %arg2[%c0_45, %c0_46] : memref<1152x128xbf16, #tpu.memory_space<vmem>>, vector<1152x128xbf16>
    %cst = arith.constant dense<0.000000e+00> : vector<256x128xf32>
    %38 = tpu.matmul %36, %37, %cst {dimension_numbers = #tpu.dot_dimension_numbers<[1], [0], [0], [1], [0, 0, 1, 1], [], []>} : vector<256x1152xbf16>, vector<1152x128xbf16>, vector<256x128xf32> -> vector<256x128xf32>
    %c0_47 = arith.constant 0 : index
    %c0_48 = arith.constant 0 : index
    %39 = vector.load %arg3[%c0_47, %c0_48] : memref<1x128xf32, #tpu.memory_space<vmem>>, vector<1x128xf32>
    %40 = vector.broadcast %39 : vector<1x128xf32> to vector<256x128xf32>
    %41 = arith.addf %38, %40 : vector<256x128xf32>
    %c0_49 = arith.constant 0 : index
    %c0_50 = arith.constant 0 : index
    %c0_51 = arith.constant 0 : index
    %42 = vector.load %arg4[%c0_49, %c0_50, %c0_51] : memref<1x256x128xf32, #tpu.memory_space<vmem>>, vector<1x256x128xf32>
    %43 = vector.shape_cast %42 : vector<1x256x128xf32> to vector<256x128xf32>
    %44 = vector.shape_cast %41 : vector<256x128xf32> to vector<1x256x128xf32>
    tpu.vector_store %arg4[%c0_49, %c0_50, %c0_51], %44 {strides = array<i32>} : memref<1x256x128xf32, #tpu.memory_space<vmem>>, vector<1x256x128xf32>,
    %cst_52 = arith.constant dense<0.000000e+00> : vector<128xf32>
    %45 = vector.multi_reduction <add>, %41, %cst_52 [0] : vector<256x128xf32> to vector<128xf32>
    %46 = vector.shape_cast %45 : vector<128xf32> to vector<1x128xf32>
    %c0_53 = arith.constant 0 : index
    %c0_54 = arith.constant 0 : index
    %c0_55 = arith.constant 0 : index
    %47 = vector.load %arg5[%c0_53, %c0_54, %c0_55] : memref<1x1x128xf32, #tpu.memory_space<vmem>>, vector<1x1x128xf32>
    %48 = vector.shape_cast %47 : vector<1x1x128xf32> to vector<1x128xf32>
    %49 = vector.shape_cast %46 : vector<1x128xf32> to vector<1x1x128xf32>
    tpu.vector_store %arg5[%c0_53, %c0_54, %c0_55], %49 {strides = array<i32>} : memref<1x1x128xf32, #tpu.memory_space<vmem>>, vector<1x1x128xf32>,
    %50 = arith.mulf %41, %41 : vector<256x128xf32>
    %cst_56 = arith.constant dense<0.000000e+00> : vector<128xf32>
    %51 = vector.multi_reduction <add>, %50, %cst_56 [0] : vector<256x128xf32> to vector<128xf32>
    %52 = vector.shape_cast %51 : vector<128xf32> to vector<1x128xf32>
    %c0_57 = arith.constant 0 : index
    %c0_58 = arith.constant 0 : index
    %c0_59 = arith.constant 0 : index
    %53 = vector.load %arg6[%c0_57, %c0_58, %c0_59] : memref<1x1x128xf32, #tpu.memory_space<vmem>>, vector<1x1x128xf32>
    %54 = vector.shape_cast %53 : vector<1x1x128xf32> to vector<1x128xf32>
    %55 = vector.shape_cast %52 : vector<1x128xf32> to vector<1x1x128xf32>
    tpu.vector_store %arg6[%c0_57, %c0_58, %c0_59], %55 {strides = array<i32>} : memref<1x1x128xf32, #tpu.memory_space<vmem>>, vector<1x1x128xf32>,
    return
  }
  func.func @transform_0(%arg0: i32) -> (i32, i32, i32, i32) {
    %c0_i32 = arith.constant 0 : i32
    %c0_i32_0 = arith.constant 0 : i32
    %c0_i32_1 = arith.constant 0 : i32
    %c0_i32_2 = arith.constant 0 : i32
    return %arg0, %c0_i32, %c0_i32_0, %c0_i32_1 : i32, i32, i32, i32
  }
  func.func @transform_1(%arg0: i32) -> (i32, i32) {
    %c0_i32 = arith.constant 0 : i32
    %c0_i32_0 = arith.constant 0 : i32
    %c0_i32_1 = arith.constant 0 : i32
    return %c0_i32, %c0_i32_0 : i32, i32
  }
  func.func @transform_2(%arg0: i32) -> (i32, i32) {
    %c0_i32 = arith.constant 0 : i32
    %c0_i32_0 = arith.constant 0 : i32
    %c0_i32_1 = arith.constant 0 : i32
    return %c0_i32, %c0_i32_0 : i32, i32
  }
  func.func @transform_3(%arg0: i32) -> (i32, i32, i32) {
    %c0_i32 = arith.constant 0 : i32
    %c0_i32_0 = arith.constant 0 : i32
    %c0_i32_1 = arith.constant 0 : i32
    return %arg0, %c0_i32, %c0_i32_0 : i32, i32, i32
  }
  func.func @transform_4(%arg0: i32) -> (i32, i32, i32) {
    %c0_i32 = arith.constant 0 : i32
    %c0_i32_0 = arith.constant 0 : i32
    %c0_i32_1 = arith.constant 0 : i32
    return %arg0, %c0_i32, %c0_i32_0 : i32, i32, i32
  }
  func.func @transform_5(%arg0: i32) -> (i32, i32, i32) {
    %c0_i32 = arith.constant 0 : i32
    %c0_i32_0 = arith.constant 0 : i32
    %c0_i32_1 = arith.constant 0 : i32
    return %arg0, %c0_i32, %c0_i32_0 : i32, i32, i32
  }
}

module attributes {stable_mosaic.version = 11 : i64} {
  func.func @_bn_relu_pool_kernel(%arg0: i32, %arg1: i32, %arg2: memref<1x8x1x8x128xf32, #tpu.memory_space<vmem>>, %arg3: memref<1x8x1x8x128xf32, #tpu.memory_space<vmem>>, %arg4: memref<1x8x1x8x128xf32, #tpu.memory_space<vmem>>, %arg5: memref<1x8x1x8x128xf32, #tpu.memory_space<vmem>>, %arg6: memref<1x1x128xf32, #tpu.memory_space<vmem>>, %arg7: memref<1x1x128xf32, #tpu.memory_space<vmem>>, %arg8: memref<1x8x8x128xf32, #tpu.memory_space<vmem>>, %arg9: memref<1x8x8x128xi32, #tpu.memory_space<vmem>>) attributes {dimension_semantics = [#tpu.dimension_semantics<parallel>, #tpu.dimension_semantics<parallel>], iteration_bounds = array<i64: 2, 1>, scalar_prefetch = 0 : i64, scratch_operands = 0 : i64, tpu.core_type = #tpu.core_type<tc>, window_params = [{transform_indices = @transform_0, window_bounds = array<i64: 1, 8, 1, 8, 128>}, {transform_indices = @transform_1, window_bounds = array<i64: 1, 8, 1, 8, 128>}, {transform_indices = @transform_2, window_bounds = array<i64: 1, 8, 1, 8, 128>}, {transform_indices = @transform_3, window_bounds = array<i64: 1, 8, 1, 8, 128>}, {pipeline_mode = #tpu.pipeline_mode<synchronous>, transform_indices = @transform_4, window_bounds = array<i64: 1, 1, 128>}, {pipeline_mode = #tpu.pipeline_mode<synchronous>, transform_indices = @transform_5, window_bounds = array<i64: 1, 1, 128>}, {transform_indices = @transform_6, window_bounds = array<i64: 1, 8, 8, 128>}, {transform_indices = @transform_7, window_bounds = array<i64: 1, 8, 8, 128>}]} {
    %c0 = arith.constant 0 : index
    %c0_0 = arith.constant 0 : index
    %c0_1 = arith.constant 0 : index
    %0 = vector.load %arg6[%c0, %c0_0, %c0_1] : memref<1x1x128xf32, #tpu.memory_space<vmem>>, vector<1x1x128xf32>
    %c0_2 = arith.constant 0 : index
    %c0_3 = arith.constant 0 : index
    %c0_4 = arith.constant 0 : index
    %1 = vector.load %arg7[%c0_2, %c0_3, %c0_4] : memref<1x1x128xf32, #tpu.memory_space<vmem>>, vector<1x1x128xf32>
    %2 = tpu.iota {dimensions = array<i32: 0>} : vector<8x8x1xi32>
    %c8_i32 = arith.constant 8 : i32
    %3 = arith.muli %arg1, %c8_i32 : i32
    %4 = vector.broadcast %3 : i32 to vector<8x8x1xi32>
    %5 = arith.addi %2, %4 : vector<8x8x1xi32>
    %6 = tpu.iota {dimensions = array<i32: 1>} : vector<8x8x1xi32>
    %c2_i32 = arith.constant 2 : i32
    %7 = vector.broadcast %c2_i32 : i32 to vector<8x8x1xi32>
    %8 = arith.muli %7, %5 : vector<8x8x1xi32>
    %c16_i32 = arith.constant 16 : i32
    %9 = vector.broadcast %c16_i32 : i32 to vector<8x8x1xi32>
    %10 = arith.muli %8, %9 : vector<8x8x1xi32>
    %c2_i32_5 = arith.constant 2 : i32
    %11 = vector.broadcast %c2_i32_5 : i32 to vector<8x8x1xi32>
    %12 = arith.muli %11, %6 : vector<8x8x1xi32>
    %13 = arith.addi %10, %12 : vector<8x8x1xi32>
    %c0_6 = arith.constant 0 : index
    %c0_7 = arith.constant 0 : index
    %c0_8 = arith.constant 0 : index
    %c0_9 = arith.constant 0 : index
    %c0_10 = arith.constant 0 : index
    %14 = vector.load %arg2[%c0_6, %c0_7, %c0_8, %c0_9, %c0_10] : memref<1x8x1x8x128xf32, #tpu.memory_space<vmem>>, vector<1x8x1x8x128xf32>
    %15 = vector.shape_cast %14 : vector<1x8x1x8x128xf32> to vector<8x8x128xf32>
    %16 = vector.broadcast %0 : vector<1x1x128xf32> to vector<8x8x128xf32>
    %17 = arith.mulf %15, %16 : vector<8x8x128xf32>
    %18 = vector.broadcast %1 : vector<1x1x128xf32> to vector<8x8x128xf32>
    %19 = arith.addf %17, %18 : vector<8x8x128xf32>
    %cst = arith.constant 0.000000e+00 : f32
    %20 = vector.broadcast %cst : f32 to vector<8x8x128xf32>
    %21 = arith.maximumf %19, %20 : vector<8x8x128xf32>
    %c0_11 = arith.constant 0 : index
    %c0_12 = arith.constant 0 : index
    %c0_13 = arith.constant 0 : index
    %c0_14 = arith.constant 0 : index
    %c0_15 = arith.constant 0 : index
    %22 = vector.load %arg3[%c0_11, %c0_12, %c0_13, %c0_14, %c0_15] : memref<1x8x1x8x128xf32, #tpu.memory_space<vmem>>, vector<1x8x1x8x128xf32>
    %23 = vector.shape_cast %22 : vector<1x8x1x8x128xf32> to vector<8x8x128xf32>
    %24 = vector.broadcast %0 : vector<1x1x128xf32> to vector<8x8x128xf32>
    %25 = arith.mulf %23, %24 : vector<8x8x128xf32>
    %26 = vector.broadcast %1 : vector<1x1x128xf32> to vector<8x8x128xf32>
    %27 = arith.addf %25, %26 : vector<8x8x128xf32>
    %cst_16 = arith.constant 0.000000e+00 : f32
    %28 = vector.broadcast %cst_16 : f32 to vector<8x8x128xf32>
    %29 = arith.maximumf %27, %28 : vector<8x8x128xf32>
    %30 = arith.maximumf %21, %29 : vector<8x8x128xf32>
    %31 = arith.cmpf oge, %21, %29 : vector<8x8x128xf32>
    %c1_i32 = arith.constant 1 : i32
    %32 = vector.broadcast %c1_i32 : i32 to vector<8x8x1xi32>
    %33 = arith.addi %13, %32 : vector<8x8x1xi32>
    %34 = vector.shape_cast %13 : vector<8x8x1xi32> to vector<8x8x1xi32>
    %35 = vector.broadcast %34 : vector<8x8x1xi32> to vector<8x8x128xi32>
    %36 = vector.shape_cast %33 : vector<8x8x1xi32> to vector<8x8x1xi32>
    %37 = vector.broadcast %36 : vector<8x8x1xi32> to vector<8x8x128xi32>
    %38 = arith.select %31, %35, %37 : vector<8x8x128xi1>, vector<8x8x128xi32>
    %c0_17 = arith.constant 0 : index
    %c0_18 = arith.constant 0 : index
    %c0_19 = arith.constant 0 : index
    %c0_20 = arith.constant 0 : index
    %c0_21 = arith.constant 0 : index
    %39 = vector.load %arg4[%c0_17, %c0_18, %c0_19, %c0_20, %c0_21] : memref<1x8x1x8x128xf32, #tpu.memory_space<vmem>>, vector<1x8x1x8x128xf32>
    %40 = vector.shape_cast %39 : vector<1x8x1x8x128xf32> to vector<8x8x128xf32>
    %41 = vector.broadcast %0 : vector<1x1x128xf32> to vector<8x8x128xf32>
    %42 = arith.mulf %40, %41 : vector<8x8x128xf32>
    %43 = vector.broadcast %1 : vector<1x1x128xf32> to vector<8x8x128xf32>
    %44 = arith.addf %42, %43 : vector<8x8x128xf32>
    %cst_22 = arith.constant 0.000000e+00 : f32
    %45 = vector.broadcast %cst_22 : f32 to vector<8x8x128xf32>
    %46 = arith.maximumf %44, %45 : vector<8x8x128xf32>
    %c0_23 = arith.constant 0 : index
    %c0_24 = arith.constant 0 : index
    %c0_25 = arith.constant 0 : index
    %c0_26 = arith.constant 0 : index
    %c0_27 = arith.constant 0 : index
    %47 = vector.load %arg5[%c0_23, %c0_24, %c0_25, %c0_26, %c0_27] : memref<1x8x1x8x128xf32, #tpu.memory_space<vmem>>, vector<1x8x1x8x128xf32>
    %48 = vector.shape_cast %47 : vector<1x8x1x8x128xf32> to vector<8x8x128xf32>
    %49 = vector.broadcast %0 : vector<1x1x128xf32> to vector<8x8x128xf32>
    %50 = arith.mulf %48, %49 : vector<8x8x128xf32>
    %51 = vector.broadcast %1 : vector<1x1x128xf32> to vector<8x8x128xf32>
    %52 = arith.addf %50, %51 : vector<8x8x128xf32>
    %cst_28 = arith.constant 0.000000e+00 : f32
    %53 = vector.broadcast %cst_28 : f32 to vector<8x8x128xf32>
    %54 = arith.maximumf %52, %53 : vector<8x8x128xf32>
    %55 = arith.maximumf %46, %54 : vector<8x8x128xf32>
    %56 = arith.cmpf oge, %46, %54 : vector<8x8x128xf32>
    %c16_i32_29 = arith.constant 16 : i32
    %57 = vector.broadcast %c16_i32_29 : i32 to vector<8x8x1xi32>
    %58 = arith.addi %13, %57 : vector<8x8x1xi32>
    %c16_i32_30 = arith.constant 16 : i32
    %59 = vector.broadcast %c16_i32_30 : i32 to vector<8x8x1xi32>
    %60 = arith.addi %13, %59 : vector<8x8x1xi32>
    %c1_i32_31 = arith.constant 1 : i32
    %61 = vector.broadcast %c1_i32_31 : i32 to vector<8x8x1xi32>
    %62 = arith.addi %60, %61 : vector<8x8x1xi32>
    %63 = vector.shape_cast %58 : vector<8x8x1xi32> to vector<8x8x1xi32>
    %64 = vector.broadcast %63 : vector<8x8x1xi32> to vector<8x8x128xi32>
    %65 = vector.shape_cast %62 : vector<8x8x1xi32> to vector<8x8x1xi32>
    %66 = vector.broadcast %65 : vector<8x8x1xi32> to vector<8x8x128xi32>
    %67 = arith.select %56, %64, %66 : vector<8x8x128xi1>, vector<8x8x128xi32>
    %68 = arith.maximumf %30, %55 : vector<8x8x128xf32>
    %c0_32 = arith.constant 0 : index
    %c0_33 = arith.constant 0 : index
    %c0_34 = arith.constant 0 : index
    %c0_35 = arith.constant 0 : index
    %69 = vector.load %arg8[%c0_32, %c0_33, %c0_34, %c0_35] : memref<1x8x8x128xf32, #tpu.memory_space<vmem>>, vector<1x8x8x128xf32>
    %70 = vector.shape_cast %69 : vector<1x8x8x128xf32> to vector<8x8x128xf32>
    %71 = vector.shape_cast %68 : vector<8x8x128xf32> to vector<1x8x8x128xf32>
    tpu.vector_store %arg8[%c0_32, %c0_33, %c0_34, %c0_35], %71 {strides = array<i32>} : memref<1x8x8x128xf32, #tpu.memory_space<vmem>>, vector<1x8x8x128xf32>,
    %72 = arith.cmpf oge, %30, %55 : vector<8x8x128xf32>
    %73 = arith.select %72, %38, %67 : vector<8x8x128xi1>, vector<8x8x128xi32>
    %c0_36 = arith.constant 0 : index
    %c0_37 = arith.constant 0 : index
    %c0_38 = arith.constant 0 : index
    %c0_39 = arith.constant 0 : index
    %74 = vector.load %arg9[%c0_36, %c0_37, %c0_38, %c0_39] : memref<1x8x8x128xi32, #tpu.memory_space<vmem>>, vector<1x8x8x128xi32>
    %75 = vector.shape_cast %74 : vector<1x8x8x128xi32> to vector<8x8x128xi32>
    %76 = vector.shape_cast %73 : vector<8x8x128xi32> to vector<1x8x8x128xi32>
    tpu.vector_store %arg9[%c0_36, %c0_37, %c0_38, %c0_39], %76 {strides = array<i32>} : memref<1x8x8x128xi32, #tpu.memory_space<vmem>>, vector<1x8x8x128xi32>,
    return
  }
  func.func @transform_0(%arg0: i32, %arg1: i32) -> (i32, i32, i32, i32, i32) {
    %c0_i32 = arith.constant 0 : i32
    %c0_i32_0 = arith.constant 0 : i32
    %c0_i32_1 = arith.constant 0 : i32
    %c0_i32_2 = arith.constant 0 : i32
    return %arg0, %arg1, %c0_i32, %c0_i32_0, %c0_i32_1 : i32, i32, i32, i32, i32
  }
  func.func @transform_1(%arg0: i32, %arg1: i32) -> (i32, i32, i32, i32, i32) {
    %c0_i32 = arith.constant 0 : i32
    %c0_i32_0 = arith.constant 0 : i32
    %c1_i32 = arith.constant 1 : i32
    %c0_i32_1 = arith.constant 0 : i32
    return %arg0, %arg1, %c0_i32, %c0_i32_0, %c1_i32 : i32, i32, i32, i32, i32
  }
  func.func @transform_2(%arg0: i32, %arg1: i32) -> (i32, i32, i32, i32, i32) {
    %c1_i32 = arith.constant 1 : i32
    %c0_i32 = arith.constant 0 : i32
    %c0_i32_0 = arith.constant 0 : i32
    %c0_i32_1 = arith.constant 0 : i32
    return %arg0, %arg1, %c1_i32, %c0_i32, %c0_i32_0 : i32, i32, i32, i32, i32
  }
  func.func @transform_3(%arg0: i32, %arg1: i32) -> (i32, i32, i32, i32, i32) {
    %c1_i32 = arith.constant 1 : i32
    %c0_i32 = arith.constant 0 : i32
    %c1_i32_0 = arith.constant 1 : i32
    %c0_i32_1 = arith.constant 0 : i32
    return %arg0, %arg1, %c1_i32, %c0_i32, %c1_i32_0 : i32, i32, i32, i32, i32
  }
  func.func @transform_4(%arg0: i32, %arg1: i32) -> (i32, i32, i32) {
    %c0_i32 = arith.constant 0 : i32
    %c0_i32_0 = arith.constant 0 : i32
    %c0_i32_1 = arith.constant 0 : i32
    %c0_i32_2 = arith.constant 0 : i32
    return %c0_i32, %c0_i32_0, %c0_i32_1 : i32, i32, i32
  }
  func.func @transform_5(%arg0: i32, %arg1: i32) -> (i32, i32, i32) {
    %c0_i32 = arith.constant 0 : i32
    %c0_i32_0 = arith.constant 0 : i32
    %c0_i32_1 = arith.constant 0 : i32
    %c0_i32_2 = arith.constant 0 : i32
    return %c0_i32, %c0_i32_0, %c0_i32_1 : i32, i32, i32
  }
  func.func @transform_6(%arg0: i32, %arg1: i32) -> (i32, i32, i32, i32) {
    %c0_i32 = arith.constant 0 : i32
    %c0_i32_0 = arith.constant 0 : i32
    %c0_i32_1 = arith.constant 0 : i32
    return %arg0, %arg1, %c0_i32, %c0_i32_0 : i32, i32, i32, i32
  }
  func.func @transform_7(%arg0: i32, %arg1: i32) -> (i32, i32, i32, i32) {
    %c0_i32 = arith.constant 0 : i32
    %c0_i32_0 = arith.constant 0 : i32
    %c0_i32_1 = arith.constant 0 : i32
    return %arg0, %arg1, %c0_i32, %c0_i32_0 : i32, i32, i32, i32
  }
}

</mosaic_0001>

<bundles_post_ra>
// kernel: conv_block_forward.3
= control target key start
LH: loop header
LB: loop body
LE: loop exit
PB: predicated region body
PF: predicated region fallthrough
CT: control target
= control target key end

     0   :  { %s1340_s24 = smov 0   ;;  %s1342_s25 = smov 0   ;;  %s1981_s0 = inlined_call_operand.vmem [shape: f32[2,8,2,8,256], index: 0, kind: input, shape index: {}, may-alias: {0,1,2,3}]   ;;  %s1982_s1 = inlined_call_operand.vmem [shape: f32[2,8,2,8,256], index: 1, kind: input, shape index: {}, may-alias: {0,1,2,3}]   ;;  %s1983_s2 = inlined_call_operand.vmem [shape: f32[2,8,2,8,256], index: 2, kind: input, shape index: {}, may-alias: {0,1,2,3}]   ;;  %s1984_s3 = inlined_call_operand.vmem [shape: f32[2,8,2,8,256], index: 3, kind: input, shape index: {}, may-alias: {0,1,2,3}]   ;;  %s1985_s4 = inlined_call_operand.vmem [shape: f32[1,1,128], index: 4, kind: input, shape index: {}]   ;;  %s1986_s5 = inlined_call_operand.vmem [shape: f32[1,1,128], index: 5, kind: input, shape index: {}]   ;;  %s1987_s6 = inlined_call_operand.vmem [shape: f32[2,8,8,128], index: 6, kind: output, shape index: {0}]   ;;  %s1988_s7 = inlined_call_operand.vmem [shape: s32[2,8,8,128], index: 7, kind: output, shape index: {1}]  }
   0x1   :  { %s1344_s26 = smov 0   ;;  %s1346_s27 = smov 0  }
   0x2   :  { %s1348_s28 = smov 0  }
   0x3 LB: > { %s30_s29 = sadd.s32 1, %s1294_s27  ;;  %p46_p1 = scmp.ne.s32.totalorder %s1286_s25, %s1282_s24  ;;  %s1298_s28 = sphi %s1348_s28, %s18_s28   ;;  %s1294_s27 = sphi %s1346_s27, %s2063_s27   ;;  %s1290_s26 = sphi %s1344_s26, %s2062_s26   ;;  %s1286_s25 = sphi %s1342_s25, %s2061_s25   ;;  %s1282_s24 = sphi %s1340_s24, %s2060_s24  }
   0x4   : > { %p32_p0 = scmp.ge.s32.totalorder %s30_s29, 2  ;;  %p47_p2 = scmp.eq.s32.totalorder %s1298_s28, 0 }
   0x5   : > { %s39_s9 = sadd.s32 1, %s1286_s25  ;;  %p1164_p5 = scmp.ge.s32.totalorder %s1298_s28, 2 }
   0x6   : > { %s2065_s29 = smov (%p32_p0, %s30_s29), 0  ;;  %p1371_p3 = por %p47_p2, %p46_p1 }
   0x7   : > { %s34_s8 = ssub.s32 %s1294_s27, %s2065_s29  ;;  %260 = sbr.rel (%p1164_p5) target bundleno = 62 (0x3e), region = 24 }
   0x8   : > { %p37_p4 = scmp.eq.s32.totalorder %s34_s8, 0 }
   0xa   : > { %s1379_s10 = scalar_select %p37_p4, %s1286_s25, %s39_s9  }
   0xe   : > { %263 = sbr.rel (!%p1371_p3) target bundleno = 26 (0x1a), region = 28  ;;  %s265_s11 = sand.u32 (%p1371_p3), 1, %s1286_s25  }
   0xf   : > { %s1214_s12 = sshll.u32 (%p1371_p3), %s1294_s27, 8  ;;  %s1165_s13 = sshll.u32 (%p1371_p3), %s265_s11, 6 }
  0x10   : > { %s273_s16 = scalar_lea.vmem (%p1371_p3), %s1981_s0, %s1214_s12  ;;  %s267_s17 = scalar_lea.vmem (%p1371_p3), [#allocation2], %s1165_s13 }
  0x11   : > { %v315_v0 = vld [vmem:[%s273_s16] sm:$0xff] (%p1371_p3) }
  0x12   : > { %v317_v1 = vld [vmem:[%s273_s16 + $0x20] sm:$0xff] (%p1371_p3)  ;;  %316 = vst [vmem:[%s267_s17] sm:$0xff] (%p1371_p3), %v315_v0 }
  0x13   : > { %v319_v2 = vld [vmem:[%s273_s16 + $0x40] sm:$0xff] (%p1371_p3)  ;;  %318 = vst [vmem:[%s267_s17 + $0x8] sm:$0xff] (%p1371_p3), %v317_v1 }
  0x14   : > { %320 = vst [vmem:[%s267_s17 + $0x10] sm:$0xff] (%p1371_p3), %v319_v2  ;;  %v321_v3 = vld [vmem:[%s273_s16 + $0x60] sm:$0xff] (%p1371_p3) }
  0x15   : > { %v323_v4 = vld [vmem:[%s273_s16 + $0x80] sm:$0xff]  ;;  %322 = vst [vmem:[%s267_s17 + $0x18] sm:$0xff] %v321_v3 }
  0x16   : > { %v325_v5 = vld [vmem:[%s273_s16 + $0xa0] sm:$0xff]  ;;  %324 = vst [vmem:[%s267_s17 + $0x20] sm:$0xff] %v323_v4 }
  0x17   : > { %326 = vst [vmem:[%s267_s17 + $0x28] sm:$0xff] %v325_v5  ;;  %v327_v6 = vld [vmem:[%s273_s16 + $0xc0] sm:$0xff] }
  0x18   : > { %v329_v7 = vld [vmem:[%s273_s16 + $0xe0] sm:$0xff]  ;;  %328 = vst [vmem:[%s267_s17 + $0x30] sm:$0xff] %v327_v6 }
  0x19   : > { %330 = vst [vmem:[%s267_s17 + $0x38] sm:$0xff] %v329_v7 }
  0x1a PF: > { %336 = sbr.rel (!%p1371_p3) target bundleno = 38 (0x26), region = 66  ;;  %s338_s18 = sand.u32 (%p1371_p3), 1, %s1286_s25  }
  0x1b   : > { %s1215_s19 = sshll.u32 (%p1371_p3), %s1294_s27, 8  ;;  %s1168_s20 = sshll.u32 (%p1371_p3), %s338_s18, 6 }
  0x1c   : > { %s1023_s23 = scalar_lea.vmem (%p1371_p3), %s1982_s1, %s1215_s19  ;;  %s340_s8 = scalar_lea.vmem (%p1371_p3), [#allocation3], %s1168_s20 }
  0x1d   : > { %v1171_v8 = vld [vmem:[%s1023_s23 + $0x8] sm:$0xff] (%p1371_p3) }
  0x1e   : > { %v1172_v9 = vld [vmem:[%s1023_s23 + $0x28] sm:$0xff] (%p1371_p3)  ;;  %390 = vst [vmem:[%s340_s8] sm:$0xff] (%p1371_p3), %v1171_v8 }
  0x1f   : > { %v1173_v10 = vld [vmem:[%s1023_s23 + $0x48] sm:$0xff] (%p1371_p3)  ;;  %392 = vst [vmem:[%s340_s8 + $0x8] sm:$0xff] (%p1371_p3), %v1172_v9 }
  0x20   : > { %394 = vst [vmem:[%s340_s8 + $0x10] sm:$0xff] (%p1371_p3), %v1173_v10  ;;  %v1174_v11 = vld [vmem:[%s1023_s23 + $0x68] sm:$0xff] (%p1371_p3) }
  0x21   : > { %v1175_v12 = vld [vmem:[%s1023_s23 + $0x88] sm:$0xff]  ;;  %396 = vst [vmem:[%s340_s8 + $0x18] sm:$0xff] %v1174_v11 }
  0x22   : > { %v1176_v13 = vld [vmem:[%s1023_s23 + $0xa8] sm:$0xff]  ;;  %398 = vst [vmem:[%s340_s8 + $0x20] sm:$0xff] %v1175_v12 }
  0x23   : > { %400 = vst [vmem:[%s340_s8 + $0x28] sm:$0xff] %v1176_v13  ;;  %v1177_v14 = vld [vmem:[%s1023_s23 + $0xc8] sm:$0xff] }
  0x24   : > { %v1178_v15 = vld [vmem:[%s1023_s23 + $0xe8] sm:$0xff]  ;;  %402 = vst [vmem:[%s340_s8 + $0x30] sm:$0xff] %v1177_v14 }
  0x25   : > { %404 = vst [vmem:[%s340_s8 + $0x38] sm:$0xff] %v1178_v15 }
  0x26 PF: > { %410 = sbr.rel (!%p1371_p3) target bundleno = 50 (0x32), region = 104  ;;  %s412_s9 = sand.u32 (%p1371_p3), 1, %s1286_s25  }
  0x27   : > { %s1216_s11 = sshll.u32 (%p1371_p3), %s1294_s27, 8  ;;  %s1179_s12 = sshll.u32 (%p1371_p3), %s412_s9, 6 }
  0x28   : > { %s1031_s15 = scalar_lea.vmem (%p1371_p3), %s1983_s2, %s1216_s11  ;;  %s414_s16 = scalar_lea.vmem (%p1371_p3), [#allocation4], %s1179_s12 }
  0x29   : > { %v1182_v16 = vld [vmem:[%s1031_s15 + $0x10] sm:$0xff] (%p1371_p3) }
  0x2a   : > { %v1183_v17 = vld [vmem:[%s1031_s15 + $0x30] sm:$0xff] (%p1371_p3)  ;;  %464 = vst [vmem:[%s414_s16] sm:$0xff] (%p1371_p3), %v1182_v16 }
  0x2b   : > { %v1184_v18 = vld [vmem:[%s1031_s15 + $0x50] sm:$0xff] (%p1371_p3)  ;;  %466 = vst [vmem:[%s414_s16 + $0x8] sm:$0xff] (%p1371_p3), %v1183_v17 }
  0x2c   : > { %468 = vst [vmem:[%s414_s16 + $0x10] sm:$0xff] (%p1371_p3), %v1184_v18  ;;  %v1185_v19 = vld [vmem:[%s1031_s15 + $0x70] sm:$0xff] (%p1371_p3) }
  0x2d   : > { %v1186_v20 = vld [vmem:[%s1031_s15 + $0x90] sm:$0xff]  ;;  %470 = vst [vmem:[%s414_s16 + $0x18] sm:$0xff] %v1185_v19 }
  0x2e   : > { %v1187_v21 = vld [vmem:[%s1031_s15 + $0xb0] sm:$0xff]  ;;  %472 = vst [vmem:[%s414_s16 + $0x20] sm:$0xff] %v1186_v20 }
  0x2f   : > { %474 = vst [vmem:[%s414_s16 + $0x28] sm:$0xff] %v1187_v21  ;;  %v1188_v22 = vld [vmem:[%s1031_s15 + $0xd0] sm:$0xff] }
  0x30   : > { %v1189_v23 = vld [vmem:[%s1031_s15 + $0xf0] sm:$0xff]  ;;  %476 = vst [vmem:[%s414_s16 + $0x30] sm:$0xff] %v1188_v22 }
  0x31   : > { %478 = vst [vmem:[%s414_s16 + $0x38] sm:$0xff] %v1189_v23 }
  0x32 PF: > { %484 = sbr.rel (!%p1371_p3) target bundleno = 62 (0x3e), region = 142  ;;  %s486_s17 = sand.u32 (%p1371_p3), 1, %s1286_s25  }
  0x33   : > { %s1217_s18 = sshll.u32 (%p1371_p3), %s1294_s27, 8  ;;  %s1190_s19 = sshll.u32 (%p1371_p3), %s486_s17, 6 }
  0x34   : > { %s1039_s22 = scalar_lea.vmem (%p1371_p3), %s1984_s3, %s1217_s18  ;;  %s488_s23 = scalar_lea.vmem (%p1371_p3), [#allocation5], %s1190_s19 }
  0x35   : > { %v1193_v24 = vld [vmem:[%s1039_s22 + $0x18] sm:$0xff] (%p1371_p3) }
  0x36   : > { %v1194_v25 = vld [vmem:[%s1039_s22 + $0x38] sm:$0xff] (%p1371_p3)  ;;  %538 = vst [vmem:[%s488_s23] sm:$0xff] (%p1371_p3), %v1193_v24 }
  0x37   : > { %v1195_v26 = vld [vmem:[%s1039_s22 + $0x58] sm:$0xff] (%p1371_p3)  ;;  %540 = vst [vmem:[%s488_s23 + $0x8] sm:$0xff] (%p1371_p3), %v1194_v25 }
  0x38   : > { %542 = vst [vmem:[%s488_s23 + $0x10] sm:$0xff] (%p1371_p3), %v1195_v26  ;;  %v1196_v27 = vld [vmem:[%s1039_s22 + $0x78] sm:$0xff] (%p1371_p3) }
  0x39   : > { %v1197_v28 = vld [vmem:[%s1039_s22 + $0x98] sm:$0xff]  ;;  %544 = vst [vmem:[%s488_s23 + $0x18] sm:$0xff] %v1196_v27 }
  0x3a   : > { %v1198_v29 = vld [vmem:[%s1039_s22 + $0xb8] sm:$0xff]  ;;  %546 = vst [vmem:[%s488_s23 + $0x20] sm:$0xff] %v1197_v28 }
  0x3b   : > { %548 = vst [vmem:[%s488_s23 + $0x28] sm:$0xff] %v1198_v29  ;;  %v1199_v30 = vld [vmem:[%s1039_s22 + $0xd8] sm:$0xff] }
  0x3c   : > { %v1200_v31 = vld [vmem:[%s1039_s22 + $0xf8] sm:$0xff]  ;;  %550 = vst [vmem:[%s488_s23 + $0x30] sm:$0xff] %v1199_v30 }
  0x3d   : > { %552 = vst [vmem:[%s488_s23 + $0x38] sm:$0xff] %v1200_v31 }
  0x3e PF: > { %p1201_p6 = scmp.ge.s32.totalorder %s1298_s28, 1  ;;  %p557_p7 = scmp.lt.s32.totalorder %s1298_s28, 3 }
  0x40   : > { %p558_p8 = pnand %p1201_p6, %p557_p7 }
  0x41   : > { %s564_s30 = sand.u32 (!%p558_p8), 1, %s1282_s24   ;;  %v676_v32 = vlaneseq (!%p558_p8)  ;;  %p646_p9 = scmp.lt.s32.totalorder (!%p558_p8), %s1290_s26, 1  ;;  %v1417_v33 = vld [vmem:[%s1985_s4] ss:$0 sm:$0xff] (!%p558_p8) }
  0x42   : > { %561 = sbr.rel (%p558_p8) target bundleno = 128 (0x80), region = 180  ;;  %s1202_s8 = sshll.u32 (!%p558_p8), %s564_s30, 6  ;;  %v1422_v34 = vld [vmem:[%s1986_s5] ss:$0 sm:$0xff] (!%p558_p8) }
  0x43   : > { %v677_v35 = vshrl.u32 (!%p558_p8), %v676_v32, 7  ;;  %s1424_s14 = scalar_lea.vmem (!%p558_p8), [#allocation2], %s1202_s8  ;;  %s1427_s24 = scalar_lea.vmem (!%p558_p8), [#allocation3], %s1202_s8 }
  0x44   : > { %v703_v36 = vld [vmem:[%s1424_s14] sm:$0xff] (!%p558_p8)  ;;  %v704_v38 = vld [vmem:[%s1424_s14 + $0x8] sm:$0xff] (!%p558_p8)  ;;  %s1433_s15 = scalar_lea.vmem (!%p558_p8), [#allocation4], %s1202_s8  ;;  %s1436_s16 = scalar_lea.vmem (!%p558_p8), [#allocation5], %s1202_s8  ;;  %v705_v59 = vld [vmem:[%s1424_s14 + $0x10] sm:$0xff] (!%p558_p8) }
  0x45   : > { %v747_v37 = vld [vmem:[%s1427_s24] sm:$0xff] (!%p558_p8)  ;;  %v717_v39 = vmul.f32 (!%p558_p8), %v1417_v33, %v703_v36  ;;  %v718_v43 = vmul.f32 (!%p558_p8), %v1417_v33, %v704_v38  ;;  %v748_v44 = vld [vmem:[%s1427_s24 + $0x8] sm:$0xff] (!%p558_p8)  ;;  %v1451_v50 = vmul.u32 (!%p558_p8), 2, %v677_v35  ;;  %v749_v60 = vld [vmem:[%s1427_s24 + $0x10] sm:$0xff] (!%p558_p8)  ;;  %v719_v10 = vmul.f32 (!%p558_p8), %v1417_v33, %v705_v59 }
  0x46   : > { %v755_v40 = vmul.f32 (!%p558_p8), %v1417_v33, %v747_v37  ;;  %v811_v41 = vld [vmem:[%s1433_s15] sm:$0xff] (!%p558_p8)  ;;  %v756_v47 = vmul.f32 (!%p558_p8), %v1417_v33, %v748_v44  ;;  %v812_v48 = vld [vmem:[%s1433_s15 + $0x8] sm:$0xff] (!%p558_p8)  ;;  %v813_v1 = vld [vmem:[%s1433_s15 + $0x10] sm:$0xff] (!%p558_p8)  ;;  %v757_v11 = vmul.f32 (!%p558_p8), %v1417_v33, %v749_v60 }
  0x47   : > { %v843_v42 = vld [vmem:[%s1436_s16] sm:$0xff] (!%p558_p8)  ;;  %v819_v45 = vmul.f32 (!%p558_p8), %v1417_v33, %v811_v41  ;;  %v844_v49 = vld [vmem:[%s1436_s16 + $0x8] sm:$0xff] (!%p558_p8)  ;;  %v1454_v51 = vadd.f32 (!%p558_p8), %v1422_v34, %v717_v39  ;;  %v1460_v53 = vadd.f32 (!%p558_p8), %v1422_v34, %v718_v43  ;;  %v820_v54 = vmul.f32 (!%p558_p8), %v1417_v33, %v812_v48  ;;  %v845_v6 = vld [vmem:[%s1436_s16 + $0x10] sm:$0xff] (!%p558_p8) }
  0x48   : > { %v851_v46 = vmul.f32 (!%p558_p8), %v1417_v33, %v843_v42  ;;  %v1457_v52 = vadd.f32 (!%p558_p8), %v1422_v34, %v755_v40  ;;  %v1470_v57 = vadd.f32 (!%p558_p8), %v1422_v34, %v756_v47  ;;  %v852_v58 = vmul.f32 (!%p558_p8), %v1417_v33, %v844_v49  ;;  %v706_v7 = vld [vmem:[%s1424_s14 + $0x18] sm:$0xff] (!%p558_p8)  ;;  %v707_v31 = vld [vmem:[%s1424_s14 + $0x20] sm:$0xff] (!%p558_p8)  ;;  %v708_v60 = vld [vmem:[%s1424_s14 + $0x28] sm:$0xff] (!%p558_p8) }
  0x49   : > { %s2067_s26 = smov (!%p646_p9, %s1290_s26), 1  ;;  %v1464_v55 = vadd.f32 %v1422_v34, %v819_v45  ;;  %v739_v61 = vmax.f32 %v1454_v51, 0.0  ;;  %v740_v63 = vmax.f32 %v1460_v53, 0.0  ;;  %v1479_v0 = vadd.f32 %v1422_v34, %v820_v54  ;;  %v750_v12 = vld [vmem:[%s1427_s24 + $0x18] sm:$0xff]  ;;  %v751_v32 = vld [vmem:[%s1427_s24 + $0x20] sm:$0xff] }
  0x4a   : > { %v1467_v56 = vadd.f32 %v1422_v34, %v851_v46  ;;  %v771_v62 = vmax.f32 %v1457_v52, 0.0  ;;  %s1218_s17 = sshll.u32 %s2067_s26, 6  ;;  %v772_v4 = vmax.f32 %v1470_v57, 0.0  ;;  %v1487_v5 = vadd.f32 %v1422_v34, %v852_v58  ;;  %v814_v21 = vld [vmem:[%s1433_s15 + $0x18] sm:$0xff]  ;;  %v815_v39 = vld [vmem:[%s1433_s15 + $0x20] sm:$0xff] }
  0x4b   : > { %v835_v2 = vmax.f32 %v1464_v55, 0.0  ;;  %v2001_v9 = vmax.f32 %v1479_v0, 0.0  ;;  %v821_v16 = vmul.f32 %v1417_v33, %v813_v1  ;;  %s1520_s20 = scalar_lea.vmem %s1987_s6, %s1218_s17  ;;  %v1523_v17 = vadd.f32 %v1422_v34, %v719_v10  ;;  %v846_v26 = vld [vmem:[%s1436_s16 + $0x18] sm:$0xff]  ;;  %v847_v40 = vld [vmem:[%s1436_s16 + $0x20] sm:$0xff]  ;;  %v752_v1 = vld [vmem:[%s1427_s24 + $0x28] sm:$0xff]  ;;  %s1803_s23 = scalar_lea.vmem %s1988_s7, %s1218_s17 }
  0x4c   : > { %v867_v3 = vmax.f32 %v1467_v56, 0.0  ;;  %v1495_v8 = vmax.f32 %v739_v61, %v771_v62  ;;  %v1511_v14 = vmax.f32 %v740_v63, %v772_v4  ;;  %v868_v15 = vmax.f32 %v1487_v5, 0.0 }
  0x4d   : > { %v1526_v18 = vadd.f32 %v1422_v34, %v757_v11  ;;  %v853_v19 = vmul.f32 %v1417_v33, %v845_v6  ;;  %v720_v20 = vmul.f32 %v1417_v33, %v706_v7  ;;  %v1540_v24 = vadd.f32 %v1422_v34, %v821_v16 }
  0x4e   : > { %v1505_v13 = vmax.f32 %v835_v2, %v867_v3  ;;  %v1537_v23 = vmax.f32 %v2001_v9, %v868_v15  ;;  %v758_v25 = vmul.f32 %v1417_v33, %v750_v12  ;;  %v1999_v27 = vmax.f32 %v1523_v17, 0.0  ;;  %v816_v12 = vld [vmem:[%s1433_s15 + $0x28] sm:$0xff] }
  0x4f   : > { %v2000_v28 = vmax.f32 %v1526_v18, 0.0  ;;  %v1547_v29 = vadd.f32 %v1422_v34, %v853_v19  ;;  %v1550_v30 = vadd.f32 %v1422_v34, %v720_v20  ;;  %v1997_v36 = vmax.f32 %v1540_v24, 0.0 }
  0x50   : > { %v915_v22 = vmax.f32 %v1495_v8, %v1505_v13  ;;  %v916_v35 = vmax.f32 %v1511_v14, %v1537_v23  ;;  %v1559_v37 = vadd.f32 %v1422_v34, %v758_v25  ;;  %v822_v38 = vmul.f32 %v1417_v33, %v814_v21 }
  0x51   : > { %v1568_v41 = vmax.f32 %v1999_v27, %v2000_v28  ;;  %v1998_v42 = vmax.f32 %v1547_v29, 0.0  ;;  %v1993_v43 = vmax.f32 %v1550_v30, 0.0  ;;  %v854_v44 = vmul.f32 %v1417_v33, %v846_v26  ;;  %v850_v27 = vld [vmem:[%s1436_s16 + $0x38] sm:$0xff] }
  0x52   : > { %923 = vst [vmem:[%s1520_s20] sm:$0xff] %v915_v22  ;;  %924 = vst [vmem:[%s1520_s20 + $0x8] sm:$0xff] %v916_v35  ;;  %v1996_v45 = vmax.f32 %v1559_v37, 0.0  ;;  %v1576_v46 = vadd.f32 %v1422_v34, %v822_v38  ;;  %v721_v47 = vmul.f32 %v1417_v33, %v707_v31  ;;  %v759_v48 = vmul.f32 %v1417_v33, %v751_v32  ;;  %v848_v22 = vld [vmem:[%s1436_s16 + $0x28] sm:$0xff]  ;;  %v709_v35 = vld [vmem:[%s1424_s14 + $0x30] sm:$0xff] }
  0x53   : > { %v1584_v49 = vmax.f32 %v1997_v36, %v1998_v42  ;;  %v1587_v54 = vadd.f32 %v1422_v34, %v854_v44  ;;  %v823_v58 = vmul.f32 %v1417_v33, %v815_v39  ;;  %v855_v59 = vmul.f32 %v1417_v33, %v847_v40  ;;  %v818_v36 = vld [vmem:[%s1433_s15 + $0x38] sm:$0xff] }
  0x54   : > { %v1597_v6 = vmax.f32 %v1993_v43, %v1996_v45  ;;  %v1991_v7 = vmax.f32 %v1576_v46, 0.0  ;;  %v1601_v10 = vadd.f32 %v1422_v34, %v721_v47  ;;  %v1604_v11 = vadd.f32 %v1422_v34, %v759_v48  ;;  %v753_v47 = vld [vmem:[%s1427_s24 + $0x30] sm:$0xff]  ;;  %v710_v43 = vld [vmem:[%s1424_s14 + $0x38] sm:$0xff] }
  0x55   : > { %v917_v16 = vmax.f32 %v1568_v41, %v1584_v49  ;;  %v1992_v19 = vmax.f32 %v1587_v54, 0.0  ;;  %v1611_v20 = vadd.f32 %v1422_v34, %v823_v58  ;;  %v1614_v21 = vadd.f32 %v1422_v34, %v855_v59 }
  0x56   : > { %v1989_v25 = vmax.f32 %v1601_v10, 0.0  ;;  %v1990_v26 = vmax.f32 %v1604_v11, 0.0  ;;  %v722_v31 = vmul.f32 %v1417_v33, %v708_v60  ;;  %v760_v32 = vmul.f32 %v1417_v33, %v752_v1  ;;  %v817_v1 = vld [vmem:[%s1433_s15 + $0x30] sm:$0xff] }
  0x57   : > { %925 = vst [vmem:[%s1520_s20 + $0x10] sm:$0xff] %v917_v16  ;;  %v1627_v38 = vmax.f32 %v1991_v7, %v1992_v19  ;;  %v1994_v39 = vmax.f32 %v1611_v20, 0.0  ;;  %v1995_v40 = vmax.f32 %v1614_v21, 0.0  ;;  %v824_v44 = vmul.f32 %v1417_v33, %v816_v12 }
  0x58   : > { %v1637_v48 = vmax.f32 %v1989_v25, %v1990_v26  ;;  %v1640_v58 = vadd.f32 %v1422_v34, %v722_v31  ;;  %v1643_v59 = vadd.f32 %v1422_v34, %v760_v32  ;;  %v856_v60 = vmul.f32 %v1417_v33, %v848_v22  ;;  %v849_v32 = vld [vmem:[%s1436_s16 + $0x30] sm:$0xff] }
  0x59   : > { %v918_v12 = vmax.f32 %v1597_v6, %v1627_v38  ;;  %v1653_v16 = vmax.f32 %v1994_v39, %v1995_v40  ;;  %v1656_v25 = vadd.f32 %v1422_v34, %v824_v44  ;;  %v723_v31 = vmul.f32 %v1417_v33, %v709_v35  ;;  %v754_v39 = vld [vmem:[%s1427_s24 + $0x38] sm:$0xff] }
  0x5a   : > { %v2002_v26 = vmax.f32 %v1640_v58, 0.0  ;;  %v2003_v22 = vmax.f32 %v1643_v59, 0.0  ;;  %v1663_v7 = vadd.f32 %v1422_v34, %v856_v60  ;;  %v761_v19 = vmul.f32 %v1417_v33, %v753_v47 }
  0x5b   : > { %926 = vst [vmem:[%s1520_s20 + $0x18] sm:$0xff] %v918_v12  ;;  %v919_v44 = vmax.f32 %v1637_v48, %v1653_v16  ;;  %v2004_v35 = vmax.f32 %v1656_v25, 0.0  ;;  %v1673_v40 = vadd.f32 %v1422_v34, %v723_v31  ;;  %v825_v45 = vmul.f32 %v1417_v33, %v817_v1 }
  0x5c   : > { %v1681_v60 = vmax.f32 %v2002_v26, %v2003_v22  ;;  %v2005_v47 = vmax.f32 %v1663_v7, 0.0  ;;  %v1685_v12 = vadd.f32 %v1422_v34, %v761_v19  ;;  %v857_v42 = vmul.f32 %v1417_v33, %v849_v32 }
  0x5d   : > { %927 = vst [vmem:[%s1520_s20 + $0x20] sm:$0xff] %v919_v44  ;;  %v2006_v31 = vmax.f32 %v1673_v40, 0.0  ;;  %v1692_v1 = vadd.f32 %v1422_v34, %v825_v45  ;;  %v724_v28 = vmul.f32 %v1417_v33, %v710_v43  ;;  %v762_v9 = vmul.f32 %v1417_v33, %v754_v39 }
  0x5e   : > { %v1700_v26 = vmax.f32 %v2004_v35, %v2005_v47  ;;  %v777_v19 = vmax.f32 %v1685_v12, 0.0  ;;  %v1704_v32 = vadd.f32 %v1422_v34, %v857_v42  ;;  %v826_v44 = vmul.f32 %v1417_v33, %v818_v36 }
  0x5f   : > { %v841_v45 = vmax.f32 %v1692_v1, 0.0  ;;  %v1709_v43 = vadd.f32 %v1422_v34, %v724_v28  ;;  %v1712_v39 = vadd.f32 %v1422_v34, %v762_v9  ;;  %v858_v22 = vmul.f32 %v1417_v33, %v850_v27 }
  0x60   : > { %v920_v35 = vmax.f32 %v1681_v60, %v1700_v26  ;;  %v1721_v42 = vmax.f32 %v2006_v31, %v777_v19  ;;  %v873_v36 = vmax.f32 %v1704_v32, 0.0  ;;  %v1725_v47 = vadd.f32 %v1422_v34, %v826_v44 }
  0x61   : > { %v746_v28 = vmax.f32 %v1709_v43, 0.0  ;;  %v778_v9 = vmax.f32 %v1712_v39, 0.0  ;;  %v1730_v33 = vadd.f32 %v1422_v34, %v858_v22  ;;  %vm1736_vm0 = vcmp.ge.f32.partialorder %v739_v61, %v771_v62 }
  0x62   : > { %928 = vst [vmem:[%s1520_s20 + $0x28] sm:$0xff] %v920_v35  ;;  %v1745_v44 = vmax.f32 %v841_v45, %v873_v36  ;;  %v2007_v31 = vmax.f32 %v1725_v47, 0.0  ;;  %v795_v34 = vadd.s32 1, %v1451_v50  ;;  %vm1753_vm1 = vcmp.ge.f32.partialorder %v835_v2, %v867_v3 }
  0x63   : > { %v1761_v52 = vmax.f32 %v746_v28, %v778_v9  ;;  %v2008_v61 = vmax.f32 %v1730_v33, 0.0  ;;  %v891_v62 = vadd.s32 16, %v1451_v50  ;;  %vm931_vm2 = vcmp.ge.f32.partialorder %v1495_v8, %v1505_v13 }
  0x64   : > { %v921_v55 = vmax.f32 %v1721_v42, %v1745_v44  ;;  %v803_v56 = vsel %vm1736_vm0, %v1451_v50, %v795_v34  ;;  %v696_v2 = vadd.s32 32, %v1451_v50  ;;  %vm1777_vm3 = vcmp.ge.f32.partialorder %v740_v63, %v772_v4 }
  0x65   : > { %v1785_v22 = vmax.f32 %v2007_v31, %v2008_v61  ;;  %v899_v35 = vadd.s32 1, %v891_v62  ;;  %v2016_v27 = vmax.f32 %v1479_v0, 0.0  ;;  %vm932_vm5 = vcmp.ge.f32.partialorder %v1511_v14, %v1537_v23 }
  0x66   : > { %929 = vst [vmem:[%s1520_s20 + $0x30] sm:$0xff] %v921_v55  ;;  %v796_v53 = vadd.s32 1, %v696_v2  ;;  %v892_v57 = vadd.s32 16, %v696_v2  ;;  %v697_v63 = vadd.s32 64, %v1451_v50  ;;  %v2019_v0 = vmax.f32 %v1526_v18, 0.0 }
  0x67   : > { %vm1791_vm4 = vcmp.ge.f32.partialorder %v2016_v27, %v868_v15  ;;  %v2020_v4 = vmax.f32 %v1523_v17, 0.0  ;;  %v922_v15 = vmax.f32 %v1761_v52, %v1785_v22  ;;  %v907_v55 = vsel %vm1753_vm1, %v891_v62, %v899_v35 }
  0x68   : > { %v2023_v27 = vmax.f32 %v1547_v29, 0.0  ;;  %v2024_v31 = vmax.f32 %v1540_v24, 0.0  ;;  %vm933_vm8 = vcmp.ge.f32.partialorder %v1568_v41, %v1584_v49  ;;  %v939_v17 = vsel %vm931_vm2, %v803_v56, %v907_v55 }
  0x69   : > { %vm1810_vm6 = vcmp.ge.f32.partialorder %v2020_v4, %v2019_v0  ;;  %v804_v18 = vsel %vm1777_vm3, %v696_v2, %v796_v53  ;;  %v900_v51 = vadd.s32 1, %v892_v57  ;;  %v797_v62 = vadd.s32 1, %v697_v63  ;;  %930 = vst [vmem:[%s1520_s20 + $0x38] sm:$0xff] %v922_v15  ;;  %947 = vst [vmem:[%s1803_s23] sm:$0xff] %v939_v17 }
  0x6a   : > { %vm1822_vm7 = vcmp.ge.f32.partialorder %v2024_v31, %v2023_v27  ;;  %v893_v24 = vadd.s32 16, %v697_v63  ;;  %v698_v29 = vadd.s32 96, %v1451_v50  ;;  %v2027_v31 = vmax.f32 %v1559_v37, 0.0 }
  0x6b   : > { %v2028_v35 = vmax.f32 %v1550_v30, 0.0  ;;  %v2031_v8 = vmax.f32 %v1587_v54, 0.0  ;;  %v2032_v13 = vmax.f32 %v1576_v46, 0.0  ;;  %v908_v2 = vsel %vm1791_vm4, %v892_v57, %v900_v51 }
  0x6c   : > { %v805_v37 = vsel %vm1810_vm6, %v697_v63, %v797_v62  ;;  %vm934_vm11 = vcmp.ge.f32.partialorder %v1597_v6, %v1627_v38  ;;  %v699_v30 = vadd.s32 128, %v1451_v50  ;;  %v940_v54 = vsel %vm932_vm5, %v804_v18, %v908_v2 }
  0x6d   : > { %vm1840_vm9 = vcmp.ge.f32.partialorder %v2028_v35, %v2027_v31  ;;  %vm1848_vm10 = vcmp.ge.f32.partialorder %v2032_v13, %v2031_v8  ;;  %v901_v46 = vadd.s32 1, %v893_v24  ;;  %v798_v3 = vadd.s32 1, %v698_v29  ;;  %948 = vst [vmem:[%s1803_s23 + $0x8] sm:$0xff] %v940_v54 }
  0x6e   : > { %v894_v53 = vadd.s32 16, %v698_v29  ;;  %v2035_v34 = vmax.f32 %v1604_v11, 0.0  ;;  %v2036_v57 = vmax.f32 %v1601_v10, 0.0  ;;  %v799_v4 = vadd.s32 1, %v699_v30 }
  0x6f   : > { %v2039_v5 = vmax.f32 %v1614_v21, 0.0  ;;  %v2040_v15 = vmax.f32 %v1611_v20, 0.0  ;;  %v895_v23 = vadd.s32 16, %v699_v30  ;;  %v909_v11 = vsel %vm1822_vm7, %v893_v24, %v901_v46 }
  0x70   : > { %vm1867_vm12 = vcmp.ge.f32.partialorder %v2036_v57, %v2035_v34  ;;  %v806_v10 = vsel %vm1840_vm9, %v698_v29, %v798_v3  ;;  %v902_v55 = vadd.s32 1, %v894_v53  ;;  %vm935_vm14 = vcmp.ge.f32.partialorder %v1637_v48, %v1653_v16 }
  0x71   : > { %vm1875_vm13 = vcmp.ge.f32.partialorder %v2040_v15, %v2039_v5  ;;  %v941_v20 = vsel %vm933_vm8, %v805_v37, %v909_v11  ;;  %v807_v21 = vsel %vm1867_vm12, %v699_v30, %v799_v4  ;;  %v903_v27 = vadd.s32 1, %v895_v23 }
  0x72   : > { %v700_v61 = vadd.s32 160, %v1451_v50  ;;  %949 = vst [vmem:[%s1803_s23 + $0x10] sm:$0xff] %v941_v20  ;;  %v910_v17 = vsel %vm1848_vm10, %v894_v53, %v902_v55  ;;  %v2043_v18 = vmax.f32 %v1643_v59, 0.0  ;;  %v2044_v51 = vmax.f32 %v1640_v58, 0.0 }
  0x73   : > { %v942_v41 = vsel %vm934_vm11, %v806_v10, %v910_v17  ;;  %v911_v49 = vsel %vm1875_vm13, %v895_v23, %v903_v27  ;;  %v2047_v29 = vmax.f32 %v1663_v7, 0.0  ;;  %v2048_v59 = vmax.f32 %v1656_v25, 0.0 }
  0x74   : > { %vm1898_vm15 = vcmp.ge.f32.partialorder %v2044_v51, %v2043_v18  ;;  %v800_v16 = vadd.s32 1, %v700_v61  ;;  %v896_v62 = vadd.s32 16, %v700_v61  ;;  %950 = vst [vmem:[%s1803_s23 + $0x18] sm:$0xff] %v942_v41  ;;  %v943_v24 = vsel %vm935_vm14, %v807_v21, %v911_v49 }
  0x75   : > { %vm1912_vm0 = vcmp.ge.f32.partialorder %v2048_v59, %v2047_v29  ;;  %vm936_vm1 = vcmp.ge.f32.partialorder %v1681_v60, %v1700_v26  ;;  %v701_v6 = vadd.s32 192, %v1451_v50  ;;  %951 = vst [vmem:[%s1803_s23 + $0x20] sm:$0xff] %v943_v24  ;;  %v2051_v7 = vmax.f32 %v1673_v40, 0.0 }
  0x76   : > { %v808_v38 = vsel %vm1898_vm15, %v700_v61, %v800_v16  ;;  %v904_v31 = vadd.s32 1, %v896_v62  ;;  %v702_v35 = vadd.s32 224, %v1451_v50  ;;  %vm1935_vm3 = vcmp.ge.f32.partialorder %v841_v45, %v873_v36 }
  0x77   : > { %vm1926_vm2 = vcmp.ge.f32.partialorder %v2051_v7, %v777_v19  ;;  %v801_v0 = vadd.s32 1, %v701_v6  ;;  %v897_v60 = vadd.s32 16, %v701_v6  ;;  %vm1943_vm4 = vcmp.ge.f32.partialorder %v746_v28, %v778_v9 }
  0x78   : > { %v912_v50 = vsel %vm1912_vm0, %v896_v62, %v904_v31  ;;  %vm937_vm5 = vcmp.ge.f32.partialorder %v1721_v42, %v1745_v44  ;;  %v802_v12 = vadd.s32 1, %v702_v35  ;;  %v898_v1 = vadd.s32 16, %v702_v35 }
  0x79   : > { %v944_v19 = vsel %vm936_vm1, %v808_v38, %v912_v50  ;;  %v809_v32 = vsel %vm1926_vm2, %v701_v6, %v801_v0  ;;  %v905_v45 = vadd.s32 1, %v897_v60  ;;  %v2058_v43 = vmax.f32 %v1730_v33, 0.0 }
  0x7a   : > { %v2059_v39 = vmax.f32 %v1725_v47, 0.0  ;;  %952 = vst [vmem:[%s1803_s23 + $0x28] sm:$0xff] %v944_v19  ;;  %v810_v36 = vsel %vm1943_vm4, %v702_v35, %v802_v12  ;;  %v906_v28 = vadd.s32 1, %v898_v1  ;;  %vm938_vm7 = vcmp.ge.f32.partialorder %v1761_v52, %v1785_v22 }
  0x7b   : > { %v913_v42 = vsel %vm1935_vm3, %v897_v60, %v905_v45 }
  0x7c   : > { %vm890_vm6 = vcmp.ge.f32.partialorder %v2059_v39, %v2058_v43  ;;  %v945_v9 = vsel %vm937_vm5, %v809_v32, %v913_v42 }
  0x7d   : > { %v914_v44 = vsel %vm890_vm6, %v898_v1, %v906_v28  ;;  %953 = vst [vmem:[%s1803_s23 + $0x30] sm:$0xff] %v945_v9 }
  0x7e   : > { %v946_v8 = vsel %vm938_vm7, %v810_v36, %v914_v44 }
  0x7f   : > { %954 = vst [vmem:[%s1803_s23 + $0x38] sm:$0xff] %v946_v8 }
  0x80 PF: > { %s18_s28 = sadd.s32 1, %s1298_s28   ;;  %s2060_s24 = smov %s1286_s25 }
  0x81   : > { %p15_p10 = scmp.ge.s32.totalorder %s18_s28, 4   ;;  %s2061_s25 = smov %s1379_s10 }
  0x82   : > { %s2062_s26 = smov %s1294_s27  ;;  %s2063_s27 = smov %s2065_s29 }
  0x83   :  { %17 = sbr.rel (!%p15_p10) target bundleno = 3 (0x3), region = 267 }

// kernel: conv_block_forward.2
= control target key start
LH: loop header
LB: loop body
LE: loop exit
PB: predicated region body
PF: predicated region fallthrough
CT: control target
= control target key end

     0   :  { %s6096_s18 = smov 0   ;;  %s7823_s0 = inlined_call_operand.vmem [shape: bf16[2,18,18,128], index: 0, kind: input, shape index: {}]   ;;  %s7824_s1 = inlined_call_operand.vmem [shape: bf16[1152,128], index: 1, kind: input, shape index: {}]   ;;  %s7825_s2 = inlined_call_operand.vmem [shape: f32[1,128], index: 2, kind: input, shape index: {}]   ;;  %s7826_s3 = inlined_call_operand.vmem [shape: f32[2,256,128], index: 3, kind: output, shape index: {0}]   ;;  %s7827_s4 = inlined_call_operand.vmem [shape: f32[2,1,128], index: 4, kind: output, shape index: {1}]   ;;  %s7828_s5 = inlined_call_operand.vmem [shape: f32[2,1,128], index: 5, kind: output, shape index: {2}]  }
   0x1 LB: > { %s4860_s19 = sadd.s32 4294967295, %s6064_s18   ;;  %p4864_p0 = scmp.ge.s32.totalorder %s6064_s18, 1  ;;  %s6064_s18 = sphi %s6096_s18, %s16_s18  }
   0x2   : > { %p192_p1 = scmp.lt.s32.totalorder %s6064_s18, 3 }
   0x4   : > { %p193_p2 = pnand %p4864_p0, %p192_p1 }
   0x6   : > { %196 = sbr.rel (%p193_p2) target bundleno = 600 (0x258), region = 32 }
   0xd   : > { %v5937_v0 = vld [vmem:[%s7824_s1 + $0x40] sm:$0xff]   ;;  %p226_p3 = scmp.lt.s32.totalorder %s4860_s19, 1  ;;  %v5939_v2 = vld [vmem:[%s7824_s1 + $0x48] sm:$0xff]   ;;  %v5941_v4 = vld [vmem:[%s7824_s1 + $0x50] sm:$0xff]   ;;  %vm435_vm0 = vsmask.f32 3328 }
   0xe   : > { %v5938_v1 = vld [vmem:[%s7824_s1] sm:$0xff]   ;;  %5392 = vmatprep.subr.bf16.mxu0 %v5937_v0  ;;  %5912 = vmatprep.subr.bf16.mxu1 %v5937_v0  ;;  %v5940_v3 = vld [vmem:[%s7824_s1 + $0x8] sm:$0xff]   ;;  %v5942_v5 = vld [vmem:[%s7824_s1 + $0x10] sm:$0xff]   ;;  %vm436_vm1 = vsmask.f32 7440  ;;  %vm998_vm3 = vcmask 1042432  }
   0xf   : > { %5393 = vmatpush3.bf16.msra.mxu0 %v5938_v1  ;;  %5920 = vmatpush3.bf16.msra.mxu1 %v5938_v1  ;;  %s7876_s19 = smov (!%p226_p3, %s4860_s19), 1  ;;  %v5943_v6 = vld [vmem:[%s7824_s1 + $0x58] sm:$0xff]   ;;  %v5945_v8 = vld [vmem:[%s7824_s1 + $0x60] sm:$0xff]   ;;  %v5947_v10 = vld [vmem:[%s7824_s1 + $0x68] sm:$0xff]   ;;  %vm999_vm4 = vcmask 1046532  }
  0x10   : > { %5394 = vmatprep.subr.bf16.mxu0 %v5939_v2  ;;  %5913 = vmatprep.subr.bf16.mxu1 %v5939_v2  ;;  %s5928_s9 = smul.u32 216, %s7876_s19  ;;  %v5944_v7 = vld [vmem:[%s7824_s1 + $0x18] sm:$0xff]   ;;  %v5946_v9 = vld [vmem:[%s7824_s1 + $0x20] sm:$0xff]   ;;  %v5948_v14 = vld [vmem:[%s7824_s1 + $0x28] sm:$0xff]   ;;  %s5391_s13 = sshll.u32 %s7876_s19, 8 }
  0x11   : > { %v5949_v17 = vld [vmem:[%s7824_s1 + $0x70] sm:$0xff]   ;;  %vm6162_vm2 = vmor %vm435_vm0, %vm436_vm1  ;;  %v5951_v43 = vld [vmem:[%s7824_s1 + $0x78] sm:$0xff]   ;;  %s7728_s17 = scalar_lea.vmem %s7826_s3, %s5391_s13  ;;  %s238_s22 = scalar_lea.vmem %s7827_s4, %s7876_s19 }
  0x12   : > { %s6137_s16 = scalar_lea.vmem %s7823_s0, %s5928_s9  ;;  %v5950_v30 = vld [vmem:[%s7824_s1 + $0x30] sm:$0xff]   ;;  %v5952_v49 = vld [vmem:[%s7824_s1 + $0x38] sm:$0xff]   ;;  %v5955_v54 = vld [vmem:[%s7824_s1 + $0xc0] sm:$0xff]   ;;  %s241_s25 = scalar_lea.vmem %s7828_s5, %s7876_s19 }
  0x13   : > { %5395 = vmatpush3.bf16.msra.mxu0 %v5940_v3  ;;  %5921 = vmatpush3.bf16.msra.mxu1 %v5940_v3  ;;  %v387_v11 = vld [vmem:[%s6137_s16] sm:$0xf]  ;;  %v388_v12 = vld [vmem:[%s6137_s16 + $0x4] sm:$0xf]  ;;  %v389_v13 = vld [vmem:[%s6137_s16 + $0x8] sm:$0x1] }
  0x14   : > { %5396 = vmatprep.subr.bf16.mxu0 %v5941_v4  ;;  %5914 = vmatprep.subr.bf16.mxu1 %v5941_v4  ;;  %v439_v15 = vshrl.u32 %v387_v11, 16  ;;  %v442_v16 = vshll.u32 %v387_v11, 16  ;;  %v448_v18 = vshll.u32 %v388_v12, 16  ;;  %v452_v19 = vshrl.u32 %v388_v12, 16  ;;  %v423_v21 = vld [vmem:[%s6137_s16 + $0x90] sm:$0xf]  ;;  %vm6302_vm5 = vmor %vm998_vm3, %vm999_vm4 }
  0x15   : > { %v458_v20 = vshll.u32 %v389_v13, 16  ;;  %v424_v24 = vld [vmem:[%s6137_s16 + $0x94] sm:$0xf]  ;;  %v425_v25 = vld [vmem:[%s6137_s16 + $0x98] sm:$0x1]  ;;  %v727_v29 = vshrl.u32 %v423_v21, 16 }
  0x16   : > { %v441_v22 = vrot.slane %v439_v15, 4  ;;  %v444_v23 = vrot.slane %v442_v16, 5  ;;  %v450_v26 = vrot.slane %v448_v18, 5  ;;  %v454_v27 = vrot.slane %v452_v19, 4  ;;  %v5956_v55 = vld [vmem:[%s7824_s1 + $0x140] sm:$0xff]   ;;  %v5954_v57 = vld [vmem:[%s6137_s16 + $0x90] sm:$0xff]  }
  0x17   : > { %5397 = vmatpush3.bf16.msra.mxu0 %v5942_v5  ;;  %5922 = vmatpush3.bf16.msra.mxu1 %v5942_v5  ;;  %v460_v28 = vrot.slane %v458_v20, 5  ;;  %v730_v32 = vshll.u32 %v423_v21, 16  ;;  %v736_v33 = vshll.u32 %v424_v24, 16  ;;  %v740_v34 = vshrl.u32 %v424_v24, 16  ;;  %v5953_v56 = vld [vmem:[%s6137_s16] sm:$0xff]   ;;  %v5959_v4 = vld [vmem:[%s7824_s1 + $0xc8] sm:$0xff]  }
  0x18   : > { %5398 = vmatprep.subr.bf16.mxu0 %v5943_v6  ;;  %5915 = vmatprep.subr.bf16.mxu1 %v5943_v6  ;;  %v445_v31 = vor.u32 %v444_v23, %v441_v22  ;;  %v455_v36 = vor.u32 %v454_v27, %v450_v26  ;;  %v729_v37 = vrot.slane %v727_v29, 4  ;;  %v746_v38 = vshll.u32 %v425_v25, 16  ;;  %v5957_v60 = vld [vmem:[%s7824_s1 + $0x80] sm:$0xff]   ;;  %v390_v62 = vld [vmem:[%s6137_s16 + $0xc] sm:$0xf] }
  0x19   : > { %v732_v40 = vrot.slane %v730_v32, 5  ;;  %v738_v41 = vrot.slane %v736_v33, 5  ;;  %v742_v42 = vrot.slane %v740_v34, 4  ;;  %v5958_v61 = vld [vmem:[%s7824_s1 + $0x100] sm:$0xff]   ;;  %v391_v0 = vld [vmem:[%s6137_s16 + $0x10] sm:$0xf] }
  0x1a   : > { %v446_v39 = vrot.slane %v445_v31, 4  ;;  %v456_v44 = vrot.slane %v455_v36, 4  ;;  %v748_v45 = vrot.slane %v746_v38, 5  ;;  %v392_v1 = vld [vmem:[%s6137_s16 + $0x14] sm:$0x1]  ;;  %v463_v2 = vshrl.u32 %v390_v62, 16 }
  0x1b   : > { %5399 = vmatpush3.bf16.msra.mxu0 %v5944_v7  ;;  %5923 = vmatpush3.bf16.msra.mxu1 %v5944_v7  ;;  %v733_v47 = vor.u32 %v732_v40, %v729_v37  ;;  %v743_v48 = vor.u32 %v742_v42, %v738_v41  ;;  %v466_v3 = vshll.u32 %v390_v62, 16  ;;  %v472_v5 = vshll.u32 %v391_v0, 16  ;;  %v427_v11 = vld [vmem:[%s6137_s16 + $0xa0] sm:$0xf]  ;;  %v428_v12 = vld [vmem:[%s6137_s16 + $0xa4] sm:$0x1] }
  0x1c   : > { %5400 = vmatprep.subr.bf16.mxu0 %v5945_v8  ;;  %5916 = vmatprep.subr.bf16.mxu1 %v5945_v8  ;;  %v451_v46 = vsel %vm6162_vm2, %v446_v39, %v450_v26  ;;  %v461_v50 = vsel %vm6162_vm2, %v456_v44, %v460_v28  ;;  %v476_v6 = vshrl.u32 %v391_v0, 16  ;;  %v482_v7 = vshll.u32 %v392_v1, 16  ;;  %v426_v8 = vld [vmem:[%s6137_s16 + $0x9c] sm:$0xf]  ;;  %v5961_v31 = vld [vmem:[%s6137_s16 + $0xc] sm:$0xff]  }
  0x1d   : > { %v4884_v51 = vcombine.low %v451_v46, %v461_v50  ;;  %v734_v52 = vrot.slane %v733_v47, 4  ;;  %v744_v53 = vrot.slane %v743_v48, 4  ;;  %v474_v13 = vrot.slane %v472_v5, 5  ;;  %v5963_v32 = vld [vmem:[%s7824_s1 + $0xd0] sm:$0xff]   ;;  %v5962_v42 = vld [vmem:[%s6137_s16 + $0x9c] sm:$0xff]   ;;  %v5966_v44 = vld [vmem:[%s7824_s1 + $0x148] sm:$0xff]  }
  0x1e   : > { %v484_v15 = vrot.slane %v482_v7, 5  ;;  %v751_v16 = vshrl.u32 %v426_v8, 16  ;;  %v754_v19 = vshll.u32 %v426_v8, 16  ;;  %v760_v20 = vshll.u32 %v427_v11, 16  ;;  %v5964_v38 = vld [vmem:[%s7824_s1 + $0x90] sm:$0xff]   ;;  %v5968_v48 = vld [vmem:[%s7824_s1 + $0x108] sm:$0xff]  }
  0x1f   : > { %5401 = vmatpush3.bf16.msra.mxu0 %v5946_v9  ;;  %5924 = vmatpush3.bf16.msra.mxu1 %v5946_v9  ;;  %v739_v58 = vsel %vm6162_vm2, %v734_v52, %v738_v41  ;;  %v749_v59 = vsel %vm6162_vm2, %v744_v53, %v748_v45  ;;  %v465_v9 = vrot.slane %v463_v2, 4  ;;  %v764_v21 = vshrl.u32 %v427_v11, 16  ;;  %v5967_v45 = vld [vmem:[%s7824_s1 + $0x98] sm:$0xff]   ;;  %v395_v52 = vld [vmem:[%s6137_s16 + $0x20] sm:$0x1] }
  0x20   : > { %5402 = vmatprep.subr.bf16.mxu0 %v5947_v10  ;;  %5917 = vmatprep.subr.bf16.mxu1 %v5947_v10  ;;  %v4896_v63 = vcombine.low %v739_v58, %v749_v59  ;;  %v468_v10 = vrot.slane %v466_v3, 5  ;;  %v753_v23 = vrot.slane %v751_v16, 4  ;;  %v770_v24 = vshll.u32 %v428_v12, 16  ;;  %v429_v58 = vld [vmem:[%s6137_s16 + $0xa8] sm:$0xf]  ;;  %v5969_v16 = vld [vmem:[%s6137_s16 + $0x18] sm:$0xff]  }
  0x21   : > { %3842 = vmatprep.mubr.bf16.mxu0 %v4884_v51  ;;  %v756_v26 = vrot.slane %v754_v19, 5  ;;  %v762_v27 = vrot.slane %v760_v20, 5  ;;  %v766_v28 = vrot.slane %v764_v21, 4  ;;  %v394_v51 = vld [vmem:[%s6137_s16 + $0x1c] sm:$0xf]  ;;  %v775_v2 = vshrl.u32 %v429_v58, 16 }
  0x22   : > { %3938 = vmatprep.mubr.bf16.mxu1 %v4896_v63  ;;  %v469_v18 = vor.u32 %v468_v10, %v465_v9  ;;  %v431_v62 = vld [vmem:[%s6137_s16 + $0xb0] sm:$0x1] }
  0x23   : > { %5403 = vmatpush3.bf16.msra.mxu0 %v5948_v14  ;;  %5925 = vmatpush3.bf16.msra.mxu1 %v5948_v14  ;;  %v478_v14 = vrot.slane %v476_v6, 4  ;;  %v757_v34 = vor.u32 %v756_v26, %v753_v23  ;;  %v767_v36 = vor.u32 %v766_v28, %v762_v27  ;;  %v777_v8 = vrot.slane %v775_v2, 4  ;;  %v5973_v23 = vld [vmem:[%s7824_s1 + $0xe8] sm:$0xff]   ;;  %v5978_v2 = vld [vmem:[%s7824_s1 + $0x150] sm:$0xff]  }
  0x24   : > { %5404 = vmatprep.subr.bf16.mxu0 %v5949_v17  ;;  %5918 = vmatprep.subr.bf16.mxu1 %v5949_v17  ;;  %v5960_v17 = vld [vmem:[%s7824_s1 + $0x88] sm:$0xff]   ;;  %v470_v25 = vrot.slane %v469_v18, 4  ;;  %v794_v9 = vshll.u32 %v431_v62, 16  ;;  %v5972_v18 = vld [vmem:[%s7824_s1 + $0xa0] sm:$0xff]  }
  0x25   : > { %v479_v22 = vor.u32 %v478_v14, %v474_v13  ;;  %v758_v40 = vrot.slane %v757_v34, 4  ;;  %v768_v41 = vrot.slane %v767_v36, 4  ;;  %v5974_v28 = vld [vmem:[%s7824_s1 + $0xa8] sm:$0xff]  }
  0x26   : > { %v475_v33 = vsel %vm6162_vm2, %v470_v25, %v474_v13 }
  0x27   : > { %5405 = vmatpush3.bf16.msra.mxu0 %v5950_v30  ;;  %5926 = vmatpush3.bf16.msra.mxu1 %v5950_v30  ;;  %v480_v29 = vrot.slane %v479_v22, 4  ;;  %v772_v30 = vrot.slane %v770_v24, 5  ;;  %v763_v46 = vsel %vm6162_vm2, %v758_v40, %v762_v27  ;;  %v5970_v27 = vld [vmem:[%s6137_s16 + $0xa8] sm:$0xff]  }
  0x28   : > { %5406 = vmatprep.subr.bf16.mxu0 %v5951_v43  ;;  %5919 = vmatprep.subr.bf16.mxu1 %v5951_v43  ;;  %v5965_v43 = vld [vmem:[%s7824_s1 + $0xd8] sm:$0xff]  }
  0x29   : > { %v485_v37 = vsel %vm6162_vm2, %v480_v29, %v484_v15  ;;  %v773_v47 = vsel %vm6162_vm2, %v768_v41, %v772_v30  ;;  %v796_v15 = vrot.slane %v794_v9, 5  ;;  %v396_v29 = vld [vmem:[%s6137_s16 + $0x24] sm:$0xf]  ;;  %v397_v30 = vld [vmem:[%s6137_s16 + $0x28] sm:$0xf] }
  0x2a   : > { %v4885_v39 = vcombine.low %v475_v33, %v485_v37  ;;  %v4897_v50 = vcombine.low %v763_v46, %v773_v47  ;;  %v511_v34 = vshrl.u32 %v396_v29, 16  ;;  %v514_v36 = vshll.u32 %v396_v29, 16  ;;  %v432_v37 = vld [vmem:[%s6137_s16 + $0xb4] sm:$0xf] }
  0x2b   : > { %5407 = vmatpush3.bf16.msra.mxu0 %v5952_v49  ;;  %5927 = vmatpush3.bf16.msra.mxu1 %v5952_v49  ;;  %v393_v49 = vld [vmem:[%s6137_s16 + $0x18] sm:$0xf]  ;;  %v520_v40 = vshll.u32 %v397_v30, 16  ;;  %v524_v41 = vshrl.u32 %v397_v30, 16  ;;  %v799_v46 = vshrl.u32 %v432_v37, 16  ;;  %v802_v47 = vshll.u32 %v432_v37, 16 }
  0x2c   : > { %5504 = vmatprep.subr.bf16.mxu1 %v5955_v54  ;;  %5616 = vmatprep.subr.bf16.mxu0 %v5956_v55  ;;  %v487_v53 = vshrl.u32 %v393_v49, 16  ;;  %v490_v54 = vshll.u32 %v393_v49, 16  ;;  %v496_v55 = vshll.u32 %v394_v51, 16 }
  0x2d   : > { %v526_v49 = vrot.slane %v524_v41, 4  ;;  %v5985_v41 = vld [vmem:[%s7824_s1 + $0x1c0] sm:$0xff]  }
  0x2e   : > { %3843 = vmatmul.mubr.bf16.vlgmr.msra.gmra.mrb[0].mxu0 %v5953_v56  ;;  %3939 = vmatmul.mubr.bf16.vlgmr.msra.gmra.mrb[0].mxu1 %v5954_v57  ;;  %v500_v56 = vshrl.u32 %v394_v51, 16  ;;  %v506_v57 = vshll.u32 %v395_v52, 16  ;;  %v489_v59 = vrot.slane %v487_v53, 4  ;;  %v498_v63 = vrot.slane %v496_v55, 5 }
  0x2f   : > { %5505 = vmatpush3.bf16.msra.mxu1 %v5957_v60  ;;  %5617 = vmatpush3.bf16.msra.mxu0 %v5958_v61  ;;  %v492_v60 = vrot.slane %v490_v54, 5  ;;  %v430_v61 = vld [vmem:[%s6137_s16 + $0xac] sm:$0xf]  ;;  %v801_v53 = vrot.slane %v799_v46, 4  ;;  %v804_v54 = vrot.slane %v802_v47, 5  ;;  %v5986_v47 = vld [vmem:[%s7824_s1 + $0x180] sm:$0xff]  }
  0x30   : > { %5506 = vmatprep.subr.bf16.mxu1 %v5959_v4  ;;  %3850 = vmatprep.mubr.bf16.mxu0 %v4885_v39  ;;  %v502_v0 = vrot.slane %v500_v56, 4  ;;  %v508_v1 = vrot.slane %v506_v57, 5  ;;  %v778_v4 = vshll.u32 %v429_v58, 16  ;;  %v784_v5 = vshll.u32 %v430_v61, 16  ;;  %v5977_v56 = vld [vmem:[%s7824_s1 + $0xf0] sm:$0xff]  }
  0x31   : > { %5618 = vmatprep.subr.bf16.mxu0 %v5966_v44  ;;  %3946 = vmatprep.mubr.bf16.mxu1 %v4897_v50  ;;  %v493_v3 = vor.u32 %v492_v60, %v489_v59  ;;  %v788_v6 = vshrl.u32 %v430_v61, 16  ;;  %v513_v44 = vrot.slane %v511_v34, 4  ;;  %v805_v61 = vor.u32 %v804_v54, %v801_v53  ;;  %v903_v34 = vld [vmem:[%s6137_s16 + $0x4] sm:$0xf]  ;;  %v402_v53 = vld [vmem:[%s6137_s16 + $0x3c] sm:$0xf] }
  0x32   : > { %v503_v7 = vor.u32 %v502_v0, %v498_v63  ;;  %v780_v11 = vrot.slane %v778_v4, 5  ;;  %v786_v12 = vrot.slane %v784_v5, 5 }
  0x33   : > { %5507 = vmatpush3.bf16.msra.mxu1 %v5960_v17  ;;  %5619 = vmatpush3.bf16.msra.mxu0 %v5968_v48  ;;  %v494_v10 = vrot.slane %v493_v3, 4  ;;  %v790_v13 = vrot.slane %v788_v6, 4  ;;  %v5971_v17 = vld [vmem:[%s7824_s1 + $0xe0] sm:$0xff]   ;;  %v522_v48 = vrot.slane %v520_v40, 5  ;;  %v5979_v3 = vld [vmem:[%s7824_s1 + $0xb0] sm:$0xff]   ;;  %v806_v5 = vrot.slane %v805_v61, 4 }
  0x34   : > { %5508 = vmatprep.subr.bf16.mxu1 %v5963_v32  ;;  %v504_v14 = vrot.slane %v503_v7, 4  ;;  %v781_v20 = vor.u32 %v780_v11, %v777_v8  ;;  %v5980_v7 = vld [vmem:[%s7824_s1 + $0x110] sm:$0xff]   ;;  %5620 = vmatprep.subr.bf16.mxu0 %v5978_v2 }
  0x35   : > { %v499_v19 = vsel %vm6162_vm2, %v494_v10, %v498_v63  ;;  %v791_v21 = vor.u32 %v790_v13, %v786_v12  ;;  %v527_v57 = vor.u32 %v526_v49, %v522_v48  ;;  %v5981_v13 = vld [vmem:[%s7824_s1 + $0xf8] sm:$0xff]  }
  0x36   : > { %3851 = vmatmul.mubr.bf16.gmra.mrb[4].mxu0 %v5961_v31  ;;  %3947 = vmatmul.mubr.bf16.gmra.mrb[4].mxu1 %v5962_v42  ;;  %v509_v22 = vsel %vm6162_vm2, %v504_v14, %v508_v1  ;;  %v782_v25 = vrot.slane %v781_v20, 4  ;;  %v398_v31 = vld [vmem:[%s6137_s16 + $0x2c] sm:$0x1]  ;;  %v5975_v1 = vld [vmem:[%s6137_s16 + $0x24] sm:$0xff]   ;;  %v5982_v14 = vld [vmem:[%s7824_s1 + $0xb8] sm:$0xff]  }
  0x37   : > { %5509 = vmatpush3.bf16.msra.mxu1 %v5964_v38  ;;  %v4886_v24 = vcombine.low %v499_v19, %v509_v22  ;;  %v792_v26 = vrot.slane %v791_v21, 4  ;;  %v433_v38 = vld [vmem:[%s6137_s16 + $0xb8] sm:$0xf]  ;;  %v530_v42 = vshll.u32 %v398_v31, 16  ;;  %v528_v63 = vrot.slane %v527_v57, 4  ;;  %5621 = vmatpush3.bf16.msra.mxu0 %v5980_v7 }
  0x38   : > { %5510 = vmatprep.subr.bf16.mxu1 %v5965_v43  ;;  %v787_v32 = vsel %vm6162_vm2, %v782_v25, %v786_v12  ;;  %v434_v43 = vld [vmem:[%s6137_s16 + $0xbc] sm:$0x1]  ;;  %v808_v51 = vshll.u32 %v433_v38, 16  ;;  %v812_v55 = vshrl.u32 %v433_v38, 16  ;;  %v5976_v12 = vld [vmem:[%s6137_s16 + $0xb4] sm:$0xff]   ;;  %v5983_v25 = vld [vmem:[%s6137_s16 + $0xc] sm:$0xff]  }
  0x39   : > { %3858 = vmatprep.mubr.bf16.mxu0 %v4886_v24  ;;  %v797_v33 = vsel %vm6162_vm2, %v792_v26, %v796_v15  ;;  %v532_v50 = vrot.slane %v530_v42, 5  ;;  %v818_v59 = vshll.u32 %v434_v43, 16  ;;  %v399_v15 = vld [vmem:[%s6137_s16 + $0x30] sm:$0xf]  ;;  %v5987_v49 = vld [vmem:[%s7824_s1 + $0x158] sm:$0xff]  }
  0x3a   : > { %v4898_v39 = vcombine.low %v787_v32, %v797_v33  ;;  %v810_v58 = vrot.slane %v808_v51, 5  ;;  %v814_v62 = vrot.slane %v812_v55, 4  ;;  %v535_v19 = vshrl.u32 %v399_v15, 16  ;;  %v902_v33 = vld [vmem:[%s6137_s16] sm:$0xe]  ;;  %5622 = vmatprep.subr.bf16.mxu0 %v5987_v49 }
  0x3b   : > { %5511 = vmatpush3.bf16.msra.mxu1 %v5967_v45  ;;  %v516_v45 = vrot.slane %v514_v36, 5  ;;  %v820_v0 = vrot.slane %v818_v59, 5  ;;  %v533_v8 = vsel %vm6162_vm2, %v528_v63, %v532_v50  ;;  %v538_v20 = vshll.u32 %v399_v15, 16  ;;  %v904_v36 = vld [vmem:[%s6137_s16 + $0x8] sm:$0x1]  ;;  %v5989_v63 = vld [vmem:[%s6137_s16 + $0x18] sm:$0xff]  }
  0x3c   : > { %5512 = vmatprep.subr.bf16.mxu1 %v5971_v17  ;;  %3954 = vmatprep.mubr.bf16.mxu1 %v4898_v39  ;;  %v815_v6 = vor.u32 %v814_v62, %v810_v58  ;;  %v811_v10 = vsel %vm6162_vm2, %v806_v5, %v810_v58  ;;  %v400_v17 = vld [vmem:[%s6137_s16 + $0x34] sm:$0xf]  ;;  %v537_v26 = vrot.slane %v535_v19, 4  ;;  %v4900_v38 = vrot.slane %v902_v33, 9  ;;  %v404_v57 = vld [vmem:[%s6137_s16 + $0x44] sm:$0x1] }
  0x3d   : > { %v517_v52 = vor.u32 %v516_v45, %v513_v44  ;;  %v544_v22 = vshll.u32 %v400_v17, 16  ;;  %v1003_v39 = vrot.slane %v903_v34, 5  ;;  %v1006_v40 = vrot.slane %v904_v36, 5  ;;  %v5984_v44 = vld [vmem:[%s6137_s16 + $0x30] sm:$0xff]   ;;  %v406_v15 = vld [vmem:[%s6137_s16 + $0x4c] sm:$0xf] }
  0x3e   : > { %3859 = vmatmul.mubr.bf16.gmra.mrb[8].mxu0 %v5969_v16  ;;  %3955 = vmatmul.mubr.bf16.gmra.mrb[8].mxu1 %v5970_v27  ;;  %v816_v11 = vrot.slane %v815_v6, 4  ;;  %v540_v27 = vrot.slane %v538_v20, 5  ;;  %v559_v58 = vshrl.u32 %v402_v53, 16  ;;  %v562_v59 = vshll.u32 %v402_v53, 16  ;;  %v905_v6 = vld [vmem:[%s6137_s16 + $0xc] sm:$0xe] }
  0x3f   : > { %5513 = vmatpush3.bf16.msra.mxu1 %v5972_v18  ;;  %v518_v60 = vrot.slane %v517_v52, 4  ;;  %v401_v18 = vld [vmem:[%s6137_s16 + $0x38] sm:$0x1]  ;;  %v1004_v45 = vsel %vm6302_vm5, %v4900_v38, %v1003_v39  ;;  %v1005_v46 = vrot.slane %v1003_v39, 4  ;;  %v578_v62 = vshll.u32 %v404_v57, 16  ;;  %v5990_v19 = vld [vmem:[%s6137_s16 + $0x3c] sm:$0xff]  }
  0x40   : > { %5514 = vmatprep.subr.bf16.mxu1 %v5973_v23  ;;  %v821_v16 = vsel %vm6162_vm2, %v816_v11, %v820_v0  ;;  %v548_v23 = vshrl.u32 %v400_v17, 16  ;;  %v554_v24 = vshll.u32 %v401_v18, 16  ;;  %v541_v32 = vor.u32 %v540_v27, %v537_v26  ;;  %v5988_v52 = vld [vmem:[%s7824_s1 + $0x118] sm:$0xff]   ;;  %v906_v7 = vld [vmem:[%s6137_s16 + $0x10] sm:$0xf]  ;;  %v5995_v49 = vld [vmem:[%s7824_s1 + $0x120] sm:$0xff]  }
  0x41   : > { %v523_v4 = vsel %vm6162_vm2, %v518_v60, %v522_v48  ;;  %v4899_v21 = vcombine.low %v811_v10, %v821_v16  ;;  %v1007_v51 = vsel %vm6302_vm5, %v1005_v46, %v1006_v40  ;;  %5623 = vmatpush3.bf16.msra.mxu0 %v5988_v52  ;;  %v561_v0 = vrot.slane %v559_v58, 4  ;;  %v407_v16 = vld [vmem:[%s6137_s16 + $0x50] sm:$0x1]  ;;  %v908_v39 = vld [vmem:[%s6137_s16 + $0x18] sm:$0xe]  ;;  %v5994_v46 = vld [vmem:[%s7824_s1 + $0x1c8] sm:$0xff]  }
  0x42   : > { %v4887_v9 = vcombine.low %v523_v4, %v533_v8  ;;  %v550_v29 = vrot.slane %v548_v23, 4  ;;  %v556_v30 = vrot.slane %v554_v24, 5  ;;  %v542_v42 = vrot.slane %v541_v32, 4  ;;  %v907_v8 = vld [vmem:[%s6137_s16 + $0x14] sm:$0x1]  ;;  %v5991_v23 = vld [vmem:[%s6137_s16 + $0x24] sm:$0xff]  }
  0x43   : > { %5515 = vmatpush3.bf16.msra.mxu1 %v5974_v28  ;;  %3962 = vmatprep.mubr.bf16.mxu1 %v4899_v21  ;;  %v546_v28 = vrot.slane %v544_v22, 5  ;;  %v4916_v55 = vcombine.low %v1004_v45, %v1007_v51  ;;  %v580_v4 = vrot.slane %v578_v62, 5  ;;  %v4901_v10 = vrot.slane %v905_v6, 9  ;;  %v909_v40 = vld [vmem:[%s6137_s16 + $0x1c] sm:$0xf] }
  0x44   : > { %5516 = vmatprep.subr.bf16.mxu1 %v5977_v56  ;;  %3866 = vmatprep.mubr.bf16.mxu0 %v4887_v9  ;;  %v403_v56 = vld [vmem:[%s6137_s16 + $0x40] sm:$0xf]  ;;  %v1010_v11 = vrot.slane %v906_v7, 5  ;;  %v592_v26 = vshll.u32 %v406_v15, 16  ;;  %v596_v27 = vshrl.u32 %v406_v15, 16  ;;  %v602_v33 = vshll.u32 %v407_v16, 16 }
  0x45   : > { %v551_v37 = vor.u32 %v550_v29, %v546_v28  ;;  %v547_v48 = vsel %vm6162_vm2, %v542_v42, %v546_v28  ;;  %v568_v60 = vshll.u32 %v403_v56, 16  ;;  %v572_v61 = vshrl.u32 %v403_v56, 16  ;;  %v5993_v28 = vld [vmem:[%s7824_s1 + $0x160] sm:$0xff]   ;;  %v5992_v56 = vld [vmem:[%s6137_s16 + $0x48] sm:$0xff]   ;;  %v408_v58 = vld [vmem:[%s6137_s16 + $0x54] sm:$0xf] }
  0x46   : > { %3867 = vmatmul.mubr.bf16.gmra.mrb[12].mxu0 %v5975_v1  ;;  %3963 = vmatmul.mubr.bf16.gmra.mrb[12].mxu1 %v5976_v12  ;;  %v564_v1 = vrot.slane %v562_v59, 5  ;;  %v1013_v12 = vrot.slane %v907_v8, 5  ;;  %v1011_v20 = vsel %vm6302_vm5, %v4901_v10, %v1010_v11  ;;  %v1012_v21 = vrot.slane %v1010_v11, 4  ;;  %v410_v62 = vld [vmem:[%s6137_s16 + $0x5c] sm:$0x1] }
  0x47   : > { %5517 = vmatpush3.bf16.msra.mxu1 %v5979_v3  ;;  %4003 = vmatprep.mubr.bf16.mxu1 %v5983_v25  ;;  %v552_v43 = vrot.slane %v551_v37, 4  ;;  %v570_v2 = vrot.slane %v568_v60, 5  ;;  %v574_v3 = vrot.slane %v572_v61, 4  ;;  %v594_v37 = vrot.slane %v592_v26, 5  ;;  %v409_v61 = vld [vmem:[%s6137_s16 + $0x58] sm:$0xf] }
  0x48   : > { %5518 = vmatprep.subr.bf16.mxu1 %v5981_v13  ;;  %v565_v5 = vor.u32 %v564_v1, %v561_v0  ;;  %v405_v13 = vld [vmem:[%s6137_s16 + $0x48] sm:$0xf]  ;;  %v598_v38 = vrot.slane %v596_v27, 4  ;;  %5624 = vmatprep.subr.bf16.mxu0 %v5993_v28  ;;  %v604_v42 = vrot.slane %v602_v33, 5  ;;  %v1017_v45 = vrot.slane %v909_v40, 5 }
  0x49   : > { %v557_v50 = vsel %vm6162_vm2, %v552_v43, %v556_v30  ;;  %v575_v9 = vor.u32 %v574_v3, %v570_v2  ;;  %v583_v17 = vshrl.u32 %v405_v13, 16  ;;  %v586_v22 = vshll.u32 %v405_v13, 16  ;;  %v910_v43 = vld [vmem:[%s6137_s16 + $0x20] sm:$0x1]  ;;  %5625 = vmatpush3.bf16.msra.mxu0 %v5995_v49  ;;  %v912_v13 = vld [vmem:[%s6137_s16 + $0x28] sm:$0xf] }
  0x4a   : > { %v4888_v54 = vcombine.low %v547_v48, %v557_v50  ;;  %v1014_v30 = vsel %vm6302_vm5, %v1012_v21, %v1013_v12  ;;  %v1020_v48 = vrot.slane %v910_v43, 5  ;;  %v1019_v52 = vrot.slane %v1017_v45, 4  ;;  %v911_v12 = vld [vmem:[%s6137_s16 + $0x24] sm:$0xe]  ;;  %v6000_v21 = vld [vmem:[%s7824_s1 + $0x128] sm:$0xff]  }
  0x4b   : > { %5519 = vmatpush3.bf16.msra.mxu1 %v5982_v14  ;;  %v566_v14 = vrot.slane %v565_v5, 4  ;;  %v576_v18 = vrot.slane %v575_v9, 4  ;;  %v585_v25 = vrot.slane %v583_v17, 4  ;;  %v588_v32 = vrot.slane %v586_v22, 5  ;;  %v5997_v5 = vld [vmem:[%s6137_s16 + $0x30] sm:$0xff]  }
  0x4c   : > { %5728 = vmatprep.subr.bf16.mxu1 %v5985_v41  ;;  %3874 = vmatprep.mubr.bf16.mxu0 %v4888_v54  ;;  %v4917_v36 = vcombine.low %v1011_v20, %v1014_v30  ;;  %v5996_v54 = vld [vmem:[%s7824_s1 + $0x188] sm:$0xff]   ;;  %v1021_v57 = vsel %vm6302_vm5, %v1019_v52, %v1020_v48  ;;  %v610_v0 = vshll.u32 %v408_v58, 16  ;;  %v620_v3 = vshrl.u32 %v409_v61, 16  ;;  %v411_v26 = vld [vmem:[%s6137_s16 + $0x60] sm:$0xf] }
  0x4d   : > { %v571_v24 = vsel %vm6162_vm2, %v566_v14, %v570_v2  ;;  %v581_v29 = vsel %vm6162_vm2, %v576_v18, %v580_v4  ;;  %v589_v41 = vor.u32 %v588_v32, %v585_v25  ;;  %v616_v2 = vshll.u32 %v409_v61, 16  ;;  %v913_v14 = vld [vmem:[%s6137_s16 + $0x2c] sm:$0x1]  ;;  %v412_v28 = vld [vmem:[%s6137_s16 + $0x64] sm:$0xf] }
  0x4e   : > { %4004 = vmatmul.mubr.bf16.vlgmr.msra.gmra.mrb[16].mxu1 %v4916_v55  ;;  %3875 = vmatmul.mubr.bf16.gmra.mrb[16].mxu0 %v5984_v44  ;;  %v4889_v34 = vcombine.low %v571_v24, %v581_v29  ;;  %v4902_v44 = vrot.slane %v908_v39, 9  ;;  %v626_v4 = vshll.u32 %v410_v62, 16  ;;  %v612_v7 = vrot.slane %v610_v0, 5  ;;  %v413_v29 = vld [vmem:[%s6137_s16 + $0x68] sm:$0x1] }
  0x4f   : > { %5729 = vmatpush3.bf16.msra.mxu1 %v5986_v47  ;;  %4011 = vmatprep.mubr.bf16.mxu1 %v5989_v63  ;;  %v599_v47 = vor.u32 %v598_v38, %v594_v37  ;;  %v590_v50 = vrot.slane %v589_v41, 4  ;;  %v607_v63 = vshrl.u32 %v408_v58, 16  ;;  %v618_v8 = vrot.slane %v616_v2, 5  ;;  %v914_v48 = vld [vmem:[%s6137_s16 + $0x30] sm:$0xe] }
  0x50   : > { %3882 = vmatprep.mubr.bf16.mxu0 %v4889_v34  ;;  %v1018_v51 = vsel %vm6302_vm5, %v4902_v44, %v1017_v45  ;;  %5730 = vmatprep.subr.bf16.mxu1 %v5994_v46  ;;  %v622_v9 = vrot.slane %v620_v3, 4  ;;  %v628_v10 = vrot.slane %v626_v4, 5  ;;  %v4903_v16 = vrot.slane %v911_v12, 9  ;;  %v6003_v46 = vld [vmem:[%s7824_s1 + $0x1d0] sm:$0xff]   ;;  %v414_v62 = vld [vmem:[%s6137_s16 + $0x6c] sm:$0xf] }
  0x51   : > { %v600_v53 = vrot.slane %v599_v47, 4  ;;  %v595_v55 = vsel %vm6162_vm2, %v590_v50, %v594_v37  ;;  %v4918_v60 = vcombine.low %v1018_v51, %v1021_v57  ;;  %v609_v6 = vrot.slane %v607_v63, 4  ;;  %v915_v49 = vld [vmem:[%s6137_s16 + $0x34] sm:$0xf]  ;;  %v916_v50 = vld [vmem:[%s6137_s16 + $0x38] sm:$0x1] }
  0x52   : > { %v623_v15 = vor.u32 %v622_v9, %v618_v8  ;;  %v1024_v17 = vrot.slane %v912_v13, 5  ;;  %v1027_v18 = vrot.slane %v913_v14, 5  ;;  %v631_v30 = vshrl.u32 %v411_v26, 16  ;;  %v415_v0 = vld [vmem:[%s6137_s16 + $0x70] sm:$0xf]  ;;  %v6005_v12 = vld [vmem:[%s6137_s16 + $0x48] sm:$0xff]  }
  0x53   : > { %v605_v59 = vsel %vm6162_vm2, %v600_v53, %v604_v42  ;;  %5731 = vmatpush3.bf16.msra.mxu1 %v5996_v54  ;;  %v613_v11 = vor.u32 %v612_v7, %v609_v6  ;;  %v634_v32 = vshll.u32 %v411_v26, 16  ;;  %v644_v37 = vshrl.u32 %v412_v28, 16  ;;  %v6001_v42 = vld [vmem:[%s6137_s16 + $0x3c] sm:$0xff]  }
  0x54   : > { %v4890_v1 = vcombine.low %v595_v55, %v605_v59  ;;  %v624_v22 = vrot.slane %v623_v15, 4  ;;  %v1025_v24 = vsel %vm6302_vm5, %v4903_v16, %v1024_v17  ;;  %v1026_v25 = vrot.slane %v1024_v17, 4  ;;  %v6004_v55 = vld [vmem:[%s7824_s1 + $0x190] sm:$0xff]   ;;  %5732 = vmatprep.subr.bf16.mxu1 %v6003_v46  ;;  %v6002_v59 = vld [vmem:[%s6137_s16 + $0x60] sm:$0xff]  }
  0x55   : > { %v614_v20 = vrot.slane %v613_v11, 4  ;;  %v633_v40 = vrot.slane %v631_v30, 4  ;;  %v636_v41 = vrot.slane %v634_v32, 5  ;;  %v646_v44 = vrot.slane %v644_v37, 4  ;;  %v6007_v16 = vld [vmem:[%s7824_s1 + $0x170] sm:$0xff]  }
  0x56   : > { %4012 = vmatmul.mubr.bf16.gmra.mrb[20].mxu1 %v4917_v36  ;;  %3883 = vmatmul.mubr.bf16.gmra.mrb[20].mxu0 %v5990_v19  ;;  %v5999_v19 = vld [vmem:[%s7824_s1 + $0x168] sm:$0xff]   ;;  %v629_v33 = vsel %vm6162_vm2, %v624_v22, %v628_v10  ;;  %v1028_v34 = vsel %vm6302_vm5, %v1026_v25, %v1027_v18  ;;  %v640_v36 = vshll.u32 %v412_v28, 16  ;;  %v650_v45 = vshll.u32 %v413_v29, 16  ;;  %v917_v18 = vld [vmem:[%s6137_s16 + $0x3c] sm:$0xe]  ;;  %v6008_v25 = vld [vmem:[%s7824_s1 + $0x130] sm:$0xff]  }
  0x57   : > { %4019 = vmatprep.mubr.bf16.mxu1 %v5991_v23  ;;  %3890 = vmatprep.mubr.bf16.mxu0 %v4890_v1  ;;  %v5998_v23 = vld [vmem:[%s6137_s16 + $0x54] sm:$0xff]   ;;  %v619_v27 = vsel %vm6162_vm2, %v614_v20, %v618_v8  ;;  %v4919_v39 = vcombine.low %v1025_v24, %v1028_v34  ;;  %v637_v47 = vor.u32 %v636_v41, %v633_v40  ;;  %v4904_v53 = vrot.slane %v914_v48, 9  ;;  %v919_v20 = vld [vmem:[%s6137_s16 + $0x44] sm:$0x1]  ;;  %v6006_v29 = vld [vmem:[%s6137_s16 + $0x6c] sm:$0xff]  }
  0x58   : > { %5626 = vmatprep.subr.bf16.mxu0 %v5999_v19  ;;  %v4891_v38 = vcombine.low %v619_v27, %v629_v33  ;;  %v642_v43 = vrot.slane %v640_v36, 5  ;;  %v652_v52 = vrot.slane %v650_v45, 5  ;;  %v1031_v54 = vrot.slane %v915_v49, 5  ;;  %5733 = vmatpush3.bf16.msra.mxu1 %v6004_v55  ;;  %v416_v1 = vld [vmem:[%s6137_s16 + $0x74] sm:$0x1] }
  0x59   : > { %5627 = vmatpush3.bf16.msra.mxu0 %v6000_v21  ;;  %v1034_v57 = vrot.slane %v916_v50, 5  ;;  %v655_v2 = vshrl.u32 %v414_v62, 16  ;;  %v658_v3 = vshll.u32 %v414_v62, 16  ;;  %v664_v6 = vshll.u32 %v415_v0, 16  ;;  %v918_v19 = vld [vmem:[%s6137_s16 + $0x40] sm:$0xf] }
  0x5a   : > { %v647_v51 = vor.u32 %v646_v44, %v642_v43  ;;  %v1033_v61 = vrot.slane %v1031_v54, 4  ;;  %v668_v7 = vshrl.u32 %v415_v0, 16  ;;  %v674_v15 = vshll.u32 %v416_v1, 16  ;;  %5628 = vmatprep.subr.bf16.mxu0 %v6007_v16  ;;  %v417_v33 = vld [vmem:[%s6137_s16 + $0x78] sm:$0xf] }
  0x5b   : > { %v657_v10 = vrot.slane %v655_v2, 4  ;;  %v660_v11 = vrot.slane %v658_v3, 5  ;;  %v666_v13 = vrot.slane %v664_v6, 5  ;;  %v1038_v24 = vrot.slane %v918_v19, 5  ;;  %v418_v36 = vld [vmem:[%s6137_s16 + $0x7c] sm:$0xf] }
  0x5c   : > { %v648_v58 = vrot.slane %v647_v51, 4  ;;  %v670_v14 = vrot.slane %v668_v7, 4  ;;  %v676_v22 = vrot.slane %v674_v15, 5  ;;  %v1041_v27 = vrot.slane %v919_v20, 5  ;;  %v419_v37 = vld [vmem:[%s6137_s16 + $0x80] sm:$0x1] }
  0x5d   : > { %v661_v17 = vor.u32 %v660_v11, %v657_v10  ;;  %v1040_v32 = vrot.slane %v1038_v24, 4  ;;  %5629 = vmatpush3.bf16.msra.mxu0 %v6008_v25  ;;  %v6009_v48 = vld [vmem:[%s6137_s16 + $0x54] sm:$0xff]   ;;  %v698_v51 = vshll.u32 %v419_v37, 16  ;;  %v921_v55 = vld [vmem:[%s6137_s16 + $0x4c] sm:$0xf]  ;;  %v6015_v19 = vld [vmem:[%s6137_s16 + $0x60] sm:$0xff]  }
  0x5e   : > { %4020 = vmatmul.mubr.bf16.gmra.mrb[24].mxu1 %v4918_v60  ;;  %3891 = vmatmul.mubr.bf16.gmra.mrb[24].mxu0 %v5992_v56  ;;  %v638_v56 = vrot.slane %v637_v47, 4  ;;  %v1032_v60 = vsel %vm6302_vm5, %v4904_v53, %v1031_v54  ;;  %v653_v4 = vsel %vm6162_vm2, %v648_v58, %v652_v52  ;;  %v671_v21 = vor.u32 %v670_v14, %v666_v13  ;;  %v6011_v52 = vld [vmem:[%s7824_s1 + $0x1d8] sm:$0xff]   ;;  %v920_v54 = vld [vmem:[%s6137_s16 + $0x48] sm:$0xe]  ;;  %v6018_v37 = vld [vmem:[%s7824_s1 + $0x1e0] sm:$0xff]  }
  0x5f   : > { %4027 = vmatprep.mubr.bf16.mxu1 %v5997_v5  ;;  %3898 = vmatprep.mubr.bf16.mxu0 %v4891_v38  ;;  %v1035_v5 = vsel %vm6302_vm5, %v1033_v61, %v1034_v57  ;;  %v662_v26 = vrot.slane %v661_v17, 4  ;;  %v679_v38 = vshrl.u32 %v417_v33, 16  ;;  %v1042_v41 = vsel %vm6302_vm5, %v1040_v32, %v1041_v27  ;;  %v6012_v61 = vld [vmem:[%s7824_s1 + $0x198] sm:$0xff]  }
  0x60   : > { %v643_v63 = vsel %vm6162_vm2, %v638_v56, %v642_v43  ;;  %v4920_v9 = vcombine.low %v1032_v60, %v1035_v5  ;;  %v672_v28 = vrot.slane %v671_v21, 4  ;;  %v692_v43 = vshrl.u32 %v418_v36, 16  ;;  %v922_v56 = vld [vmem:[%s6137_s16 + $0x50] sm:$0x1]  ;;  %5734 = vmatprep.subr.bf16.mxu1 %v6011_v52  ;;  %v6010_v1 = vld [vmem:[%s6137_s16 + $0x78] sm:$0xff]  }
  0x61   : > { %v4892_v8 = vcombine.low %v643_v63, %v653_v4  ;;  %v667_v34 = vsel %vm6162_vm2, %v662_v26, %v666_v13  ;;  %v681_v46 = vrot.slane %v679_v38, 4  ;;  %v700_v58 = vrot.slane %v698_v51, 5  ;;  %5735 = vmatpush3.bf16.msra.mxu1 %v6012_v61  ;;  %v6013_v5 = vld [vmem:[%s7824_s1 + $0x178] sm:$0xff]   ;;  %v422_v13 = vld [vmem:[%s6137_s16 + $0x8c] sm:$0x1] }
  0x62   : > { %v677_v40 = vsel %vm6162_vm2, %v672_v28, %v676_v22  ;;  %v694_v50 = vrot.slane %v692_v43, 4  ;;  %v1045_v60 = vrot.slane %v921_v55, 5  ;;  %v1048_v63 = vrot.slane %v922_v56, 5  ;;  %5630 = vmatprep.subr.bf16.mxu0 %v6013_v5  ;;  %v923_v26 = vld [vmem:[%s6137_s16 + $0x54] sm:$0xe]  ;;  %5736 = vmatprep.subr.bf16.mxu1 %v6018_v37  ;;  %v6020_v56 = vld [vmem:[%s7824_s1 + $0x1a0] sm:$0xff]  }
  0x63   : > { %v4893_v44 = vcombine.low %v667_v34, %v677_v40  ;;  %v924_v27 = vld [vmem:[%s6137_s16 + $0x58] sm:$0xf]  ;;  %v925_v28 = vld [vmem:[%s6137_s16 + $0x5c] sm:$0x1]  ;;  %v5045_v43 = vld [vmem:[%s6137_s16 + $0x10] sm:$0xf] }
  0x64   : > { %v1047_v3 = vrot.slane %v1045_v60, 4  ;;  %v1052_v32 = vrot.slane %v924_v27, 5  ;;  %v4980_v61 = vld [vmem:[%s6137_s16 + $0xc] sm:$0xf] }
  0x65   : > { %5737 = vmatpush3.bf16.msra.mxu1 %v6020_v56  ;;  %v6024_v56 = vld [vmem:[%s7824_s1 + $0x208] sm:$0xff]  }
  0x66   : > { %4028 = vmatmul.mubr.bf16.gmra.mrb[28].mxu1 %v4919_v39  ;;  %3899 = vmatmul.mubr.bf16.gmra.mrb[28].mxu0 %v5998_v23  ;;  %v4905_v23 = vrot.slane %v917_v18, 9  ;;  %v682_v39 = vshll.u32 %v417_v33, 16  ;;  %v1049_v7 = vsel %vm6302_vm5, %v1047_v3, %v1048_v63  ;;  %v722_v18 = vshll.u32 %v422_v13, 16 }
  0x67   : > { %4035 = vmatprep.mubr.bf16.mxu1 %v6001_v42  ;;  %3906 = vmatprep.mubr.bf16.mxu0 %v4892_v8  ;;  %v688_v42 = vshll.u32 %v418_v36, 16  ;;  %v6014_v8 = vld [vmem:[%s7824_s1 + $0x138] sm:$0xff]   ;;  %v1055_v33 = vrot.slane %v925_v28, 5  ;;  %v5044_v36 = vld [vmem:[%s6137_s16 + $0xc] sm:$0xe]  ;;  %v1390_v3 = vshll.u32 %v4980_v61, 16 }
  0x68   : > { %v1039_v30 = vsel %vm6302_vm5, %v4905_v23, %v1038_v24  ;;  %v684_v47 = vrot.slane %v682_v39, 5  ;;  %5631 = vmatpush3.bf16.msra.mxu0 %v6014_v8  ;;  %v724_v24 = vrot.slane %v722_v18, 5  ;;  %v6016_v39 = vld [vmem:[%s6137_s16 + $0x84] sm:$0xff]  }
  0x69   : > { %v4921_v45 = vcombine.low %v1039_v30, %v1042_v41  ;;  %v690_v49 = vrot.slane %v688_v42, 5  ;;  %v4907_v30 = vrot.slane %v923_v26, 9  ;;  %v1054_v41 = vrot.slane %v1052_v32, 4  ;;  %v6017_v42 = vld [vmem:[%s6137_s16 + $0x6c] sm:$0xff]  }
  0x6a   : > { %v685_v53 = vor.u32 %v684_v47, %v681_v46  ;;  %v5092_v46 = vrot.slane %v5044_v36, 9  ;;  %v1948_v47 = vrot.slane %v5045_v43, 5  ;;  %v929_v26 = vld [vmem:[%s6137_s16 + $0x6c] sm:$0xe]  ;;  %v931_v36 = vld [vmem:[%s6137_s16 + $0x74] sm:$0x1] }
  0x6b   : > { %v695_v57 = vor.u32 %v694_v50, %v690_v49  ;;  %v1053_v40 = vsel %vm6302_vm5, %v4907_v30, %v1052_v32  ;;  %v6491_v50 = vld [vmem:[%s7824_s1 + $0x200] sm:$0xff]   ;;  %v1056_v52 = vsel %vm6302_vm5, %v1054_v41, %v1055_v33  ;;  %v930_v30 = vld [vmem:[%s6137_s16 + $0x70] sm:$0xf]  ;;  %v4909_v32 = vrot.slane %v929_v26, 9 }
  0x6c   : > { %v686_v62 = vrot.slane %v685_v53, 4  ;;  %v927_v53 = vld [vmem:[%s6137_s16 + $0x64] sm:$0xf]  ;;  %5864 = vmatprep.subr.bf16.mxu0 %v6491_v50  ;;  %v1066_v37 = vrot.slane %v930_v30, 5  ;;  %v1069_v41 = vrot.slane %v931_v36, 5 }
  0x6d   : > { %v696_v0 = vrot.slane %v695_v57, 4  ;;  %v1059_v63 = vrot.slane %v927_v53, 5  ;;  %v4985_v43 = vld [vmem:[%s6137_s16 + $0x20] sm:$0x1] }
  0x6e   : > { %4036 = vmatmul.mubr.bf16.gmra.mrb[32].mxu1 %v4920_v9  ;;  %3907 = vmatmul.mubr.bf16.gmra.mrb[32].mxu0 %v6002_v59  ;;  %v4906_v59 = vrot.slane %v920_v54, 9  ;;  %v691_v4 = vsel %vm6162_vm2, %v686_v62, %v690_v49  ;;  %v420_v9 = vld [vmem:[%s6137_s16 + $0x84] sm:$0xf]  ;;  %v926_v49 = vld [vmem:[%s6137_s16 + $0x60] sm:$0xe] }
  0x6f   : > { %4043 = vmatprep.mubr.bf16.mxu1 %v6005_v12  ;;  %3914 = vmatprep.mubr.bf16.mxu0 %v4893_v44  ;;  %v701_v6 = vsel %vm6162_vm2, %v696_v0, %v700_v58  ;;  %v421_v12 = vld [vmem:[%s6137_s16 + $0x88] sm:$0xf]  ;;  %v703_v14 = vshrl.u32 %v420_v9, 16  ;;  %v706_v15 = vshll.u32 %v420_v9, 16  ;;  %v5046_v44 = vld [vmem:[%s6137_s16 + $0x14] sm:$0x1]  ;;  %v4923_v58 = vcombine.low %v1053_v40, %v1056_v52 }
  0x70   : > { %v1046_v2 = vsel %vm6302_vm5, %v4906_v59, %v1045_v60  ;;  %v4894_v10 = vcombine.low %v691_v4, %v701_v6  ;;  %v712_v16 = vshll.u32 %v421_v12, 16  ;;  %v716_v17 = vshrl.u32 %v421_v12, 16  ;;  %v928_v54 = vld [vmem:[%s6137_s16 + $0x68] sm:$0x1]  ;;  %v4981_v62 = vld [vmem:[%s6137_s16 + $0x10] sm:$0xf] }
  0x71   : > { %v4922_v11 = vcombine.low %v1046_v2, %v1049_v7  ;;  %v705_v20 = vrot.slane %v703_v14, 4  ;;  %v708_v21 = vrot.slane %v706_v15, 5  ;;  %v4908_v55 = vrot.slane %v926_v49, 9  ;;  %v6023_v49 = vld [vmem:[%s7824_s1 + $0x1e8] sm:$0xff]  }
  0x72   : > { %v714_v22 = vrot.slane %v712_v16, 5  ;;  %v718_v23 = vrot.slane %v716_v17, 4  ;;  %v1949_v59 = vsel %vm6302_vm5, %v5092_v46, %v1948_v47  ;;  %v1950_v60 = vrot.slane %v1948_v47, 4  ;;  %v6021_v17 = vld [vmem:[%s6137_s16 + $0x78] sm:$0xff]   ;;  %5738 = vmatprep.subr.bf16.mxu1 %v6023_v49 }
  0x73   : > { %v709_v25 = vor.u32 %v708_v21, %v705_v20  ;;  %v1062_v0 = vrot.slane %v928_v54, 5  ;;  %v1387_v2 = vshrl.u32 %v4980_v61, 16  ;;  %v1396_v5 = vshll.u32 %v4981_v62, 16  ;;  %v5047_v21 = vld [vmem:[%s6137_s16 + $0x18] sm:$0xe] }
  0x74   : > { %v1400_v6 = vshrl.u32 %v4981_v62, 16  ;;  %v1060_v9 = vsel %vm6302_vm5, %v4908_v55, %v1059_v63  ;;  %v1392_v12 = vrot.slane %v1390_v3, 5  ;;  %v1067_v47 = vsel %vm6302_vm5, %v4909_v32, %v1066_v37  ;;  %v5050_v55 = vld [vmem:[%s6137_s16 + $0x24] sm:$0xe]  ;;  %v5051_v61 = vld [vmem:[%s6137_s16 + $0x28] sm:$0xf] }
  0x75   : > { %v710_v34 = vrot.slane %v709_v25, 4  ;;  %v1398_v13 = vrot.slane %v1396_v5, 5  ;;  %v5052_v62 = vld [vmem:[%s6137_s16 + $0x2c] sm:$0x1]  ;;  %v932_v3 = vld [vmem:[%s6137_s16 + $0x78] sm:$0xe] }
  0x76   : > { %4044 = vmatmul.mubr.bf16.gmra.mrb[36].mxu1 %v4921_v45  ;;  %3915 = vmatmul.mubr.bf16.gmra.mrb[36].mxu0 %v6006_v29  ;;  %v719_v29 = vor.u32 %v718_v23, %v714_v22  ;;  %v1402_v14 = vrot.slane %v1400_v6, 4  ;;  %v5049_v23 = vld [vmem:[%s6137_s16 + $0x20] sm:$0x1]  ;;  %v6028_v32 = vld [vmem:[%s7824_s1 + $0x1f0] sm:$0xff]  }
  0x77   : > { %4051 = vmatprep.mubr.bf16.mxu1 %v6009_v48  ;;  %3922 = vmatprep.mubr.bf16.mxu0 %v4894_v10  ;;  %v715_v45 = vsel %vm6162_vm2, %v710_v34, %v714_v22  ;;  %v1951_v48 = vrot.slane %v5046_v44, 5  ;;  %v1061_v10 = vrot.slane %v1059_v63, 4  ;;  %v5048_v22 = vld [vmem:[%s6137_s16 + $0x1c] sm:$0xf] }
  0x78   : > { %v720_v38 = vrot.slane %v719_v29, 4  ;;  %v1403_v20 = vor.u32 %v1402_v14, %v1398_v13  ;;  %v1955_v25 = vrot.slane %v5048_v22, 5  ;;  %v1958_v29 = vrot.slane %v5049_v23, 5 }
  0x79   : > { %v1952_v4 = vsel %vm6302_vm5, %v1950_v60, %v1951_v48  ;;  %v1063_v16 = vsel %vm6302_vm5, %v1061_v10, %v1062_v0  ;;  %v1068_v48 = vrot.slane %v1066_v37, 4  ;;  %v6022_v60 = vld [vmem:[%s6137_s16 + $0x84] sm:$0xff]   ;;  %v934_v10 = vld [vmem:[%s6137_s16 + $0x80] sm:$0x1] }
  0x7a   : > { %v725_v51 = vsel %vm6162_vm2, %v720_v38, %v724_v24  ;;  %v5108_v8 = vcombine.low %v1949_v59, %v1952_v4  ;;  %v4924_v18 = vcombine.low %v1060_v9, %v1063_v16  ;;  %v5093_v24 = vrot.slane %v5047_v21, 9  ;;  %v4983_v38 = vld [vmem:[%s6137_s16 + $0x18] sm:$0xf]  ;;  %v6025_v4 = vld [vmem:[%s7824_s1 + $0x1a8] sm:$0xff]   ;;  %v933_v9 = vld [vmem:[%s6137_s16 + $0x7c] sm:$0xf] }
  0x7b   : > { %v4895_v57 = vcombine.low %v715_v45, %v725_v51  ;;  %v1404_v28 = vrot.slane %v1403_v20, 4  ;;  %v1957_v34 = vrot.slane %v1955_v25, 4  ;;  %v1411_v44 = vshrl.u32 %v4983_v38, 16  ;;  %5739 = vmatpush3.bf16.msra.mxu1 %v6025_v4  ;;  %v6029_v4 = vld [vmem:[%s7824_s1 + $0x210] sm:$0xff]  }
  0x7c   : > { %v1956_v33 = vsel %vm6302_vm5, %v5093_v24, %v1955_v25  ;;  %v1414_v53 = vshll.u32 %v4983_v38, 16  ;;  %v1430_v59 = vshll.u32 %v4985_v43, 16  ;;  %v6026_v38 = vld [vmem:[%s6137_s16 + $0x90] sm:$0xff]   ;;  %5740 = vmatprep.subr.bf16.mxu1 %v6028_v32  ;;  %v940_v32 = vld [vmem:[%s6137_s16 + $0x98] sm:$0x1] }
  0x7d   : > { %v1959_v46 = vsel %vm6302_vm5, %v1957_v34, %v1958_v29  ;;  %v1413_v52 = vrot.slane %v1411_v44, 4  ;;  %v5053_v44 = vld [vmem:[%s6137_s16 + $0x30] sm:$0xe] }
  0x7e   : > { %4052 = vmatmul.mubr.bf16.gmra.mrb[40].mxu1 %v4922_v11  ;;  %3923 = vmatmul.mubr.bf16.gmra.mrb[40].mxu0 %v6010_v1  ;;  %v4982_v1 = vld [vmem:[%s6137_s16 + $0x14] sm:$0x1]  ;;  %v1389_v11 = vrot.slane %v1387_v2, 4  ;;  %v5109_v51 = vcombine.low %v1956_v33, %v1959_v46  ;;  %v1416_v0 = vrot.slane %v1414_v53, 5  ;;  %v5094_v2 = vrot.slane %v5050_v55, 9 }
  0x7f   : > { %4059 = vmatprep.mubr.bf16.mxu1 %v6015_v19  ;;  %3930 = vmatprep.mubr.bf16.mxu0 %v4895_v57  ;;  %v1406_v7 = vshll.u32 %v4982_v1, 16  ;;  %v1070_v57 = vsel %vm6302_vm5, %v1068_v48, %v1069_v41  ;;  %v1432_v6 = vrot.slane %v1430_v59, 5  ;;  %v5055_v46 = vld [vmem:[%s6137_s16 + $0x38] sm:$0x1]  ;;  %v5095_v49 = vrot.slane %v5053_v44, 9 }
  0x80   : > { %v1393_v19 = vor.u32 %v1392_v12, %v1389_v11  ;;  %v4925_v63 = vcombine.low %v1067_v47, %v1070_v57  ;;  %v4910_v11 = vrot.slane %v932_v3, 9  ;;  %v1073_v12 = vrot.slane %v933_v9, 5  ;;  %v936_v55 = vld [vmem:[%s6137_s16 + $0x88] sm:$0xf]  ;;  %v6030_v9 = vld [vmem:[%s7824_s1 + $0x1b0] sm:$0xff]  }
  0x81   : > { %v1408_v15 = vrot.slane %v1406_v7, 5  ;;  %v1962_v7 = vrot.slane %v5051_v61, 5  ;;  %v4989_v61 = vld [vmem:[%s6137_s16 + $0x30] sm:$0xf]  ;;  %5741 = vmatpush3.bf16.msra.mxu1 %v6030_v9  ;;  %v4994_v44 = vld [vmem:[%s6137_s16 + $0x44] sm:$0x1] }
  0x82   : > { %v1394_v27 = vrot.slane %v1393_v19, 4  ;;  %v4988_v19 = vld [vmem:[%s6137_s16 + $0x2c] sm:$0x1]  ;;  %v1074_v21 = vsel %vm6302_vm5, %v4910_v11, %v1073_v12  ;;  %v1075_v22 = vrot.slane %v1073_v12, 4  ;;  %v1459_v3 = vshrl.u32 %v4989_v61, 16 }
  0x83   : > { %v1409_v40 = vsel %vm6162_vm2, %v1404_v28, %v1408_v15  ;;  %v1963_v15 = vsel %vm6302_vm5, %v5094_v2, %v1962_v7  ;;  %v1964_v16 = vrot.slane %v1962_v7, 4  ;;  %v4991_v2 = vld [vmem:[%s6137_s16 + $0x38] sm:$0x1]  ;;  %v1462_v7 = vshll.u32 %v4989_v61, 16 }
  0x84   : > { %v1461_v12 = vrot.slane %v1459_v3, 4 }
  0x86   : > { %4060 = vmatmul.mubr.bf16.gmra.mrb[44].mxu1 %v4923_v58  ;;  %3931 = vmatmul.mubr.bf16.gmra.mrb[44].mxu0 %v6016_v39  ;;  %v1399_v39 = vsel %vm6162_vm2, %v1394_v27, %v1398_v13  ;;  %v4986_v13 = vld [vmem:[%s6137_s16 + $0x24] sm:$0xf] }
  0x87   : > { %4067 = vmatprep.mubr.bf16.mxu1 %v6017_v42  ;;  %4164 = vmatprep.mubr.bf16.mxu0 %v5108_v8  ;;  %v4984_v42 = vld [vmem:[%s6137_s16 + $0x1c] sm:$0xf]  ;;  %v5028_v45 = vcombine.low %v1399_v39, %v1409_v40  ;;  %v1965_v8 = vrot.slane %v5052_v62, 5  ;;  %v1435_v23 = vshrl.u32 %v4986_v13, 16  ;;  %v1438_v26 = vshll.u32 %v4986_v13, 16 }
  0x88   : > { %v1420_v54 = vshll.u32 %v4984_v42, 16  ;;  %v1424_v58 = vshrl.u32 %v4984_v42, 16  ;;  %v1454_v42 = vshll.u32 %v4988_v19, 16  ;;  %v4990_v62 = vld [vmem:[%s6137_s16 + $0x34] sm:$0xf] }
  0x89   : > { %v1966_v25 = vsel %vm6302_vm5, %v1964_v16, %v1965_v8  ;;  %v1437_v30 = vrot.slane %v1435_v23, 4  ;;  %v1440_v36 = vrot.slane %v1438_v26, 5  ;;  %v1468_v8 = vshll.u32 %v4990_v62, 16  ;;  %v5056_v13 = vld [vmem:[%s6137_s16 + $0x3c] sm:$0xe] }
  0x8a   : > { %v1422_v1 = vrot.slane %v1420_v54, 5  ;;  %v1426_v5 = vrot.slane %v1424_v58, 4  ;;  %v5110_v34 = vcombine.low %v1963_v15, %v1966_v25  ;;  %v1456_v48 = vrot.slane %v1454_v42, 5  ;;  %v5057_v19 = vld [vmem:[%s6137_s16 + $0x40] sm:$0xf] }
  0x8b   : > { %v1441_v43 = vor.u32 %v1440_v36, %v1437_v30  ;;  %v1972_v54 = vrot.slane %v5055_v46, 5  ;;  %v1464_v15 = vrot.slane %v1462_v7, 5  ;;  %v1470_v16 = vrot.slane %v1468_v8, 5  ;;  %v5058_v23 = vld [vmem:[%s6137_s16 + $0x44] sm:$0x1] }
  0x8c   : > { %v1427_v14 = vor.u32 %v1426_v5, %v1422_v1  ;;  %v938_v25 = vld [vmem:[%s6137_s16 + $0x90] sm:$0xe]  ;;  %v939_v30 = vld [vmem:[%s6137_s16 + $0x94] sm:$0xf] }
  0x8d   : > { %v1442_v53 = vrot.slane %v1441_v43, 4  ;;  %v4912_v36 = vrot.slane %v938_v25, 9  ;;  %v4993_v43 = vld [vmem:[%s6137_s16 + $0x40] sm:$0xf]  ;;  %v4996_v25 = vld [vmem:[%s6137_s16 + $0x4c] sm:$0xf] }
  0x8e   : > { %4068 = vmatmul.mubr.bf16.gmra.mrb[48].mxu1 %v4924_v18  ;;  %4165 = vmatmul.mubr.bf16.vlgmr.msra.gmra.mrb[48].mxu0 %v5028_v45  ;;  %v4987_v18 = vld [vmem:[%s6137_s16 + $0x28] sm:$0xf]  ;;  %v1428_v24 = vrot.slane %v1427_v14, 4  ;;  %v5054_v45 = vld [vmem:[%s6137_s16 + $0x34] sm:$0xf] }
  0x8f   : > { %4075 = vmatprep.mubr.bf16.mxu1 %v6021_v17  ;;  %5865 = vmatpush3.bf16.msra.mxu0 %v6491_v50  ;;  %v1417_v50 = vor.u32 %v1416_v0, %v1413_v52  ;;  %v1076_v17 = vrot.slane %v934_v10, 5  ;;  %v1444_v27 = vshll.u32 %v4987_v18, 16  ;;  %v1448_v41 = vshrl.u32 %v4987_v18, 16  ;;  %v935_v52 = vld [vmem:[%s6137_s16 + $0x84] sm:$0xe]  ;;  %v6027_v18 = vld [vmem:[%s6137_s16 + $0x9c] sm:$0xff]  }
  0x90   : > { %4172 = vmatprep.mubr.bf16.mxu0 %v5109_v51  ;;  %5866 = vmatprep.subr.bf16.mxu0 %v6024_v56  ;;  %v1433_v33 = vsel %vm6162_vm2, %v1428_v24, %v1432_v6  ;;  %v1969_v51 = vrot.slane %v5054_v45, 5  ;;  %v1080_v0 = vrot.slane %v936_v55, 5  ;;  %v5096_v24 = vrot.slane %v5056_v13, 9 }
  0x91   : > { %v1418_v20 = vrot.slane %v1417_v50, 4  ;;  %v1077_v29 = vsel %vm6302_vm5, %v1075_v22, %v1076_v17  ;;  %v1446_v37 = vrot.slane %v1444_v27, 5  ;;  %v1450_v47 = vrot.slane %v1448_v41, 4 }
  0x92   : > { %v4926_v40 = vcombine.low %v1074_v21, %v1077_v29  ;;  %v1970_v58 = vsel %vm6302_vm5, %v5095_v49, %v1969_v51  ;;  %v1971_v59 = vrot.slane %v1969_v51, 4  ;;  %v1082_v11 = vrot.slane %v1080_v0, 4 }
  0x93   : > { %5867 = vmatpush3.bf16.msra.mxu0 %v6024_v56  ;;  %v1423_v28 = vsel %vm6162_vm2, %v1418_v20, %v1422_v1  ;;  %v937_v56 = vld [vmem:[%s6137_s16 + $0x8c] sm:$0x1]  ;;  %v1451_v57 = vor.u32 %v1450_v47, %v1446_v37  ;;  %v1472_v17 = vshrl.u32 %v4990_v62, 16  ;;  %v1478_v22 = vshll.u32 %v4991_v2, 16  ;;  %v5059_v2 = vld [vmem:[%s6137_s16 + $0x48] sm:$0xe] }
  0x94   : > { %v5029_v39 = vcombine.low %v1423_v28, %v1433_v33  ;;  %v1083_v1 = vrot.slane %v937_v56, 5  ;;  %v1973_v6 = vsel %vm6302_vm5, %v1971_v59, %v1972_v54  ;;  %5868 = vmatprep.subr.bf16.mxu0 %v6029_v4  ;;  %v1465_v27 = vor.u32 %v1464_v15, %v1461_v12  ;;  %v943_v15 = vld [vmem:[%s6137_s16 + $0xa4] sm:$0x1] }
  0x95   : > { %v1452_v5 = vrot.slane %v1451_v57, 4  ;;  %v5111_v50 = vcombine.low %v1970_v58, %v1973_v6  ;;  %v1474_v28 = vrot.slane %v1472_v17, 4  ;;  %v1976_v29 = vrot.slane %v5057_v19, 5  ;;  %v6031_v58 = vld [vmem:[%s6137_s16 + $0xa8] sm:$0xff]   ;;  %v5061_v6 = vld [vmem:[%s6137_s16 + $0x50] sm:$0x1] }
  0x96   : > { %4076 = vmatmul.mubr.bf16.gmra.mrb[52].mxu1 %v4925_v63  ;;  %4173 = vmatmul.mubr.bf16.gmra.mrb[52].mxu0 %v5029_v39  ;;  %v1447_v63 = vsel %vm6162_vm2, %v1442_v53, %v1446_v37  ;;  %v1084_v21 = vsel %vm6302_vm5, %v1082_v11, %v1083_v1  ;;  %v1480_v33 = vrot.slane %v1478_v22, 5  ;;  %v1087_v37 = vrot.slane %v939_v30, 5  ;;  %v6033_v11 = vld [vmem:[%s7824_s1 + $0x1f8] sm:$0xff]  }
  0x97   : > { %4083 = vmatprep.mubr.bf16.mxu1 %v6022_v60  ;;  %4180 = vmatprep.mubr.bf16.mxu0 %v5110_v34  ;;  %v4911_v60 = vrot.slane %v935_v52, 9  ;;  %v1457_v14 = vsel %vm6162_vm2, %v1452_v5, %v1456_v48  ;;  %v1979_v34 = vrot.slane %v5058_v23, 5  ;;  %v1466_v39 = vrot.slane %v1465_v27, 4  ;;  %v5060_v5 = vld [vmem:[%s6137_s16 + $0x4c] sm:$0xf]  ;;  %v6034_v22 = vld [vmem:[%s7824_s1 + $0x218] sm:$0xff]  }
  0x98   : > { %5869 = vmatpush3.bf16.msra.mxu0 %v6029_v4  ;;  %v5030_v20 = vcombine.low %v1447_v63, %v1457_v14  ;;  %v1977_v41 = vsel %vm6302_vm5, %v5096_v24, %v1976_v29  ;;  %v1978_v42 = vrot.slane %v1976_v29, 4  ;;  %v1088_v45 = vsel %vm6302_vm5, %v4912_v36, %v1087_v37  ;;  %v942_v14 = vld [vmem:[%s6137_s16 + $0xa0] sm:$0xf]  ;;  %5742 = vmatprep.subr.bf16.mxu1 %v6033_v11 }
  0x99   : > { %v1081_v10 = vsel %vm6302_vm5, %v4911_v60, %v1080_v0  ;;  %v1089_v46 = vrot.slane %v1087_v37, 4  ;;  %v1090_v47 = vrot.slane %v940_v32, 5  ;;  %v1471_v49 = vsel %vm6162_vm2, %v1466_v39, %v1470_v16  ;;  %5870 = vmatprep.subr.bf16.mxu0 %v6034_v22  ;;  %v5062_v39 = vld [vmem:[%s6137_s16 + $0x54] sm:$0xe] }
  0x9a   : > { %v4927_v26 = vcombine.low %v1081_v10, %v1084_v21  ;;  %v1980_v52 = vsel %vm6302_vm5, %v1978_v42, %v1979_v34  ;;  %v1492_v57 = vshll.u32 %v4993_v43, 16  ;;  %v1496_v62 = vshrl.u32 %v4993_v43, 16  ;;  %v941_v10 = vld [vmem:[%s6137_s16 + $0x9c] sm:$0xe]  ;;  %v4995_v21 = vld [vmem:[%s6137_s16 + $0x48] sm:$0xf] }
  0x9b   : > { %v5112_v54 = vcombine.low %v1977_v41, %v1980_v52  ;;  %v1091_v55 = vsel %vm6302_vm5, %v1089_v46, %v1090_v47  ;;  %v1502_v1 = vshll.u32 %v4994_v44, 16  ;;  %v5097_v7 = vrot.slane %v5059_v2, 9  ;;  %v944_v46 = vld [vmem:[%s6137_s16 + $0xa8] sm:$0xe]  ;;  %v945_v52 = vld [vmem:[%s6137_s16 + $0xac] sm:$0xf] }
  0x9c   : > { %v4928_v60 = vcombine.low %v1088_v45, %v1091_v55  ;;  %v1494_v0 = vrot.slane %v1492_v57, 5  ;;  %v1498_v4 = vrot.slane %v1496_v62, 4  ;;  %v1983_v9 = vrot.slane %v5060_v5, 5  ;;  %5871 = vmatpush3.bf16.msra.mxu0 %v6034_v22  ;;  %v5064_v45 = vld [vmem:[%s6137_s16 + $0x5c] sm:$0x1] }
  0x9d   : > { %v1504_v8 = vrot.slane %v1502_v1, 5  ;;  %v1094_v19 = vrot.slane %v942_v14, 5  ;;  %v1507_v27 = vshrl.u32 %v4995_v21, 16  ;;  %v1510_v32 = vshll.u32 %v4995_v21, 16  ;;  %v5000_v5 = vld [vmem:[%s6137_s16 + $0x5c] sm:$0x1] }
  0x9e   : > { %4084 = vmatmul.mubr.bf16.gmra.mrb[56].mxu1 %v4926_v40  ;;  %4181 = vmatmul.mubr.bf16.gmra.mrb[56].mxu0 %v5030_v20  ;;  %v1475_v40 = vor.u32 %v1474_v28, %v1470_v16  ;;  %v1499_v13 = vor.u32 %v1498_v4, %v1494_v0  ;;  %v4913_v16 = vrot.slane %v941_v10, 9  ;;  %v1984_v17 = vsel %vm6302_vm5, %v5097_v7, %v1983_v9  ;;  %v4999_v4 = vld [vmem:[%s6137_s16 + $0x58] sm:$0xf] }
  0x9f   : > { %4091 = vmatprep.mubr.bf16.mxu1 %v6026_v38  ;;  %v4992_v38 = vld [vmem:[%s6137_s16 + $0x3c] sm:$0xf]  ;;  %4188 = vmatprep.mubr.bf16.mxu0 %v5111_v50  ;;  %v1986_v50 = vrot.slane %v5061_v6, 5  ;;  %v1097_v20 = vrot.slane %v943_v15, 5  ;;  %v1096_v30 = vrot.slane %v1094_v19, 4  ;;  %v1509_v37 = vrot.slane %v1507_v27, 4 }
  0xa0   : > { %v1483_v48 = vshrl.u32 %v4992_v38, 16  ;;  %v1476_v51 = vrot.slane %v1475_v40, 4  ;;  %v1486_v53 = vshll.u32 %v4992_v38, 16  ;;  %v1500_v24 = vrot.slane %v1499_v13, 4  ;;  %v5063_v40 = vld [vmem:[%s6137_s16 + $0x58] sm:$0xf] }
  0xa1   : > { %v1095_v29 = vsel %vm6302_vm5, %v4913_v16, %v1094_v19  ;;  %v1516_v38 = vshll.u32 %v4996_v25, 16  ;;  %v1098_v42 = vsel %vm6302_vm5, %v1096_v30, %v1097_v20  ;;  %v1512_v43 = vrot.slane %v1510_v32, 5  ;;  %v6036_v13 = vld [vmem:[%s6137_s16 + $0xc0] sm:$0xff]  }
  0xa2   : > { %v1485_v56 = vrot.slane %v1483_v48, 4  ;;  %v1481_v59 = vsel %vm6162_vm2, %v1476_v51, %v1480_v33  ;;  %v1488_v61 = vrot.slane %v1486_v53, 5  ;;  %v6032_v33 = vld [vmem:[%s6137_s16 + $0xb4] sm:$0xff]   ;;  %v1505_v34 = vsel %vm6162_vm2, %v1500_v24, %v1504_v8 }
  0xa3   : > { %v5031_v63 = vcombine.low %v1471_v49, %v1481_v59  ;;  %v1520_v44 = vshrl.u32 %v4996_v25, 16  ;;  %v4929_v47 = vcombine.low %v1095_v29, %v1098_v42  ;;  %v1518_v48 = vrot.slane %v1516_v38, 5  ;;  %v6035_v53 = vld [vmem:[%s7824_s1 + $0x1b8] sm:$0xff]   ;;  %v5065_v25 = vld [vmem:[%s6137_s16 + $0x60] sm:$0xe] }
  0xa4   : > { %v1489_v3 = vor.u32 %v1488_v61, %v1485_v56  ;;  %v5098_v51 = vrot.slane %v5062_v39, 9  ;;  %v1990_v56 = vrot.slane %v5063_v40, 5  ;;  %v1993_v57 = vrot.slane %v5064_v45, 5  ;;  %5743 = vmatpush3.bf16.msra.mxu1 %v6035_v53  ;;  %v5067_v29 = vld [vmem:[%s6137_s16 + $0x68] sm:$0x1] }
  0xa5   : > { %v1522_v55 = vrot.slane %v1520_v44, 4  ;;  %v1101_v61 = vrot.slane %v945_v52, 5  ;;  %v1544_v21 = vshrl.u32 %v4999_v4, 16  ;;  %v1550_v24 = vshll.u32 %v5000_v5, 16  ;;  %v948_v39 = vld [vmem:[%s6137_s16 + $0xb8] sm:$0xf] }
  0xa6   : > { %4092 = vmatmul.mubr.bf16.gmra.mrb[60].mxu1 %v4927_v26  ;;  %4189 = vmatmul.mubr.bf16.gmra.mrb[60].mxu0 %v5031_v63  ;;  %v1490_v12 = vrot.slane %v1489_v3, 4  ;;  %v4997_v26 = vld [vmem:[%s6137_s16 + $0x50] sm:$0x1]  ;;  %v4998_v63 = vld [vmem:[%s6137_s16 + $0x54] sm:$0xf]  ;;  %v1991_v2 = vsel %vm6302_vm5, %v5098_v51, %v1990_v56  ;;  %v1992_v3 = vrot.slane %v1990_v56, 4 }
  0xa7   : > { %4099 = vmatprep.mubr.bf16.mxu1 %v6027_v18  ;;  %4196 = vmatprep.mubr.bf16.mxu0 %v5112_v54  ;;  %v1985_v18 = vrot.slane %v1983_v9, 4  ;;  %v1526_v49 = vshll.u32 %v4997_v26, 16  ;;  %v1513_v54 = vor.u32 %v1512_v43, %v1509_v37  ;;  %v1523_v1 = vor.u32 %v1522_v55, %v1518_v48  ;;  %v6038_v26 = vld [vmem:[%s7824_s1 + $0x220] sm:$0xff]   ;;  %v949_v40 = vld [vmem:[%s6137_s16 + $0xbc] sm:$0x1] }
  0xa8   : > { %v1495_v23 = vsel %vm6162_vm2, %v1490_v12, %v1494_v0  ;;  %v1103_v7 = vrot.slane %v1101_v61, 4  ;;  %v1531_v8 = vshrl.u32 %v4998_v63, 16  ;;  %v1534_v9 = vshll.u32 %v4998_v63, 16  ;;  %5872 = vmatprep.subr.bf16.mxu0 %v6038_v26  ;;  %v5003_v51 = vld [vmem:[%s6137_s16 + $0x68] sm:$0x1] }
  0xa9   : > { %v1987_v28 = vsel %vm6302_vm5, %v1985_v18, %v1986_v50  ;;  %v5032_v41 = vcombine.low %v1495_v23, %v1505_v34  ;;  %v1528_v59 = vrot.slane %v1526_v49, 5  ;;  %v1514_v0 = vrot.slane %v1513_v54, 4  ;;  %5873 = vmatpush3.bf16.msra.mxu0 %v6038_v26 }
  0xaa   : > { %v5113_v36 = vcombine.low %v1984_v17, %v1987_v28  ;;  %v1524_v10 = vrot.slane %v1523_v1, 4  ;;  %v1994_v11 = vsel %vm6302_vm5, %v1992_v3, %v1993_v57  ;;  %v1540_v12 = vshll.u32 %v4999_v4, 16  ;;  %v5066_v28 = vld [vmem:[%s6137_s16 + $0x64] sm:$0xf]  ;;  %v5172_v1 = vld [vmem:[%s6137_s16 + $0x18] sm:$0xf] }
  0xab   : > { %v1519_v50 = vsel %vm6162_vm2, %v1514_v0, %v1518_v48  ;;  %v5114_v14 = vcombine.low %v1991_v2, %v1994_v11  ;;  %v1533_v16 = vrot.slane %v1531_v8, 4  ;;  %v1536_v17 = vrot.slane %v1534_v9, 5  ;;  %v5070_v0 = vld [vmem:[%s6137_s16 + $0x74] sm:$0x1] }
  0xac   : > { %v1529_v18 = vsel %vm6162_vm2, %v1524_v10, %v1528_v59  ;;  %v1542_v20 = vrot.slane %v1540_v12, 5  ;;  %v1546_v27 = vrot.slane %v1544_v21, 4  ;;  %v5099_v30 = vrot.slane %v5065_v25, 9  ;;  %v5069_v59 = vld [vmem:[%s6137_s16 + $0x70] sm:$0xf] }
  0xad   : > { %v5033_v22 = vcombine.low %v1519_v50, %v1529_v18  ;;  %v1537_v23 = vor.u32 %v1536_v17, %v1533_v16  ;;  %v2000_v34 = vrot.slane %v5067_v29, 5  ;;  %v1552_v38 = vrot.slane %v1550_v24, 5  ;;  %v5174_v10 = vld [vmem:[%s6137_s16 + $0x20] sm:$0x1] }
  0xae   : > { %4100 = vmatmul.mubr.bf16.gmra.mrb[64].mxu1 %v4928_v60  ;;  %4197 = vmatmul.mubr.bf16.gmra.mrb[64].mxu0 %v5032_v41  ;;  %v4914_v60 = vrot.slane %v944_v46, 9  ;;  %v1547_v37 = vor.u32 %v1546_v27, %v1542_v20  ;;  %v1108_v45 = vrot.slane %v948_v39, 5  ;;  %v5001_v46 = vld [vmem:[%s6137_s16 + $0x60] sm:$0xf]  ;;  %v1111_v49 = vrot.slane %v949_v40, 5 }
  0xaf   : > { %4107 = vmatprep.mubr.bf16.mxu1 %v6031_v58  ;;  %v946_v58 = vld [vmem:[%s6137_s16 + $0xb0] sm:$0x1]  ;;  %4204 = vmatprep.mubr.bf16.mxu0 %v5113_v36  ;;  %v1538_v32 = vrot.slane %v1537_v23, 4  ;;  %v947_v36 = vld [vmem:[%s6137_s16 + $0xb4] sm:$0xe]  ;;  %v1555_v52 = vshrl.u32 %v5001_v46, 16 }
  0xb0   : > { %v1104_v62 = vrot.slane %v946_v58, 5  ;;  %v1102_v6 = vsel %vm6302_vm5, %v4914_v60, %v1101_v61  ;;  %v4915_v41 = vrot.slane %v947_v36, 9  ;;  %v1548_v48 = vrot.slane %v1547_v37, 4  ;;  %v5068_v58 = vld [vmem:[%s6137_s16 + $0x6c] sm:$0xe] }
  0xb1   : > { %v1543_v42 = vsel %vm6162_vm2, %v1538_v32, %v1542_v20  ;;  %v1558_v53 = vshll.u32 %v5001_v46, 16  ;;  %v1110_v56 = vrot.slane %v1108_v45, 4  ;;  %v1574_v9 = vshll.u32 %v5003_v51, 16  ;;  %v5005_v20 = vld [vmem:[%s6137_s16 + $0x70] sm:$0xf] }
  0xb2   : > { %v1105_v15 = vsel %vm6302_vm5, %v1103_v7, %v1104_v62  ;;  %v1109_v55 = vsel %vm6302_vm5, %v4915_v41, %v1108_v45  ;;  %v1553_v60 = vsel %vm6162_vm2, %v1548_v48, %v1552_v38  ;;  %v1557_v62 = vrot.slane %v1555_v52, 4  ;;  %v5006_v39 = vld [vmem:[%s6137_s16 + $0x74] sm:$0x1]  ;;  %v5071_v41 = vld [vmem:[%s6137_s16 + $0x78] sm:$0xe] }
  0xb3   : > { %v4930_v19 = vcombine.low %v1102_v6, %v1105_v15  ;;  %v1560_v63 = vrot.slane %v1558_v53, 5  ;;  %v5034_v2 = vcombine.low %v1543_v42, %v1553_v60  ;;  %v1112_v3 = vsel %vm6302_vm5, %v1110_v56, %v1111_v49  ;;  %v5173_v6 = vld [vmem:[%s6137_s16 + $0x1c] sm:$0xf]  ;;  %v5004_v15 = vld [vmem:[%s6137_s16 + $0x6c] sm:$0xf] }
  0xb4   : > { %v4931_v7 = vcombine.low %v1109_v55, %v1112_v3  ;;  %v5100_v50 = vrot.slane %v5068_v58, 9  ;;  %v2004_v12 = vrot.slane %v5069_v59, 5  ;;  %v1576_v17 = vrot.slane %v1574_v9, 5  ;;  %v5072_v46 = vld [vmem:[%s6137_s16 + $0x7c] sm:$0xf] }
  0xb5   : > { %v1561_v8 = vor.u32 %v1560_v63, %v1557_v62  ;;  %v2335_v18 = vshll.u32 %v5172_v1, 16  ;;  %v2351_v32 = vshll.u32 %v5174_v10, 16  ;;  %v1582_v40 = vshll.u32 %v5004_v15, 16  ;;  %v5073_v52 = vld [vmem:[%s6137_s16 + $0x80] sm:$0x1] }
  0xb6   : > { %4108 = vmatmul.mubr.bf16.gmra.mrb[68].mxu1 %v4929_v47  ;;  %4205 = vmatmul.mubr.bf16.gmra.mrb[68].mxu0 %v5033_v22  ;;  %v5002_v47 = vld [vmem:[%s6137_s16 + $0x64] sm:$0xf]  ;;  %v2005_v22 = vsel %vm6302_vm5, %v5100_v50, %v2004_v12  ;;  %v2006_v23 = vrot.slane %v2004_v12, 4  ;;  %v1588_v45 = vshll.u32 %v5005_v20, 16  ;;  %v1592_v55 = vshrl.u32 %v5005_v20, 16 }
  0xb7   : > { %4115 = vmatprep.mubr.bf16.mxu1 %v6032_v33  ;;  %v1997_v33 = vrot.slane %v5066_v28, 5  ;;  %4212 = vmatprep.mubr.bf16.mxu0 %v5114_v14  ;;  %v1564_v57 = vshll.u32 %v5002_v47, 16  ;;  %v1568_v5 = vshrl.u32 %v5002_v47, 16  ;;  %v2332_v14 = vshrl.u32 %v5172_v1, 16  ;;  %v5175_v53 = vld [vmem:[%s6137_s16 + $0x24] sm:$0xf] }
  0xb8   : > { %v1562_v16 = vrot.slane %v1561_v8, 4  ;;  %v2337_v26 = vrot.slane %v2335_v18, 5  ;;  %v2345_v28 = vshrl.u32 %v5173_v6, 16  ;;  %v1584_v51 = vrot.slane %v1582_v40, 5  ;;  %v5176_v63 = vld [vmem:[%s6137_s16 + $0x28] sm:$0xf] }
  0xb9   : > { %v1998_v43 = vsel %vm6302_vm5, %v5099_v30, %v1997_v33  ;;  %v1999_v44 = vrot.slane %v1997_v33, 4  ;;  %v1566_v4 = vrot.slane %v1564_v57, 5  ;;  %v1570_v11 = vrot.slane %v1568_v5, 4  ;;  %v5177_v8 = vld [vmem:[%s6137_s16 + $0x2c] sm:$0x1] }
  0xba   : > { %v2334_v24 = vrot.slane %v2332_v14, 4  ;;  %v1579_v33 = vshrl.u32 %v5004_v15, 16  ;;  %v2347_v38 = vrot.slane %v2345_v28, 4  ;;  %v1598_v56 = vshll.u32 %v5006_v39, 16  ;;  %v5007_v12 = vld [vmem:[%s6137_s16 + $0x78] sm:$0xf] }
  0xbb   : > { %v2001_v54 = vsel %vm6302_vm5, %v1999_v44, %v2000_v34  ;;  %v1571_v21 = vor.u32 %v1570_v11, %v1566_v4  ;;  %v1567_v25 = vsel %vm6162_vm2, %v1562_v16, %v1566_v4  ;;  %v6041_v34 = vld [vmem:[%s7824_s1 + $0x228] sm:$0xff]   ;;  %v5101_v57 = vrot.slane %v5071_v41, 9  ;;  %v5178_v40 = vld [vmem:[%s6137_s16 + $0x30] sm:$0xf] }
  0xbc   : > { %v5115_v61 = vcombine.low %v1998_v43, %v2001_v54  ;;  %v2338_v37 = vor.u32 %v2337_v26, %v2334_v24  ;;  %v2353_v43 = vrot.slane %v2351_v32, 5  ;;  %v1581_v44 = vrot.slane %v1579_v33, 4  ;;  %5874 = vmatprep.subr.bf16.mxu0 %v6041_v34  ;;  %v5075_v33 = vld [vmem:[%s6137_s16 + $0x88] sm:$0xf] }
  0xbd   : > { %v1572_v29 = vrot.slane %v1571_v21, 4  ;;  %5875 = vmatpush3.bf16.msra.mxu0 %v6041_v34  ;;  %v1590_v54 = vrot.slane %v1588_v45, 5  ;;  %v2011_v62 = vrot.slane %v5072_v46, 5  ;;  %v1600_v1 = vrot.slane %v1598_v56, 5  ;;  %v5076_v34 = vld [vmem:[%s6137_s16 + $0x8c] sm:$0x1] }
  0xbe   : > { %4116 = vmatmul.mubr.bf16.gmra.mrb[72].mxu1 %v4930_v19  ;;  %4213 = vmatmul.mubr.bf16.gmra.mrb[72].mxu0 %v5034_v2  ;;  %v2341_v19 = vshll.u32 %v5173_v6, 16  ;;  %v2339_v48 = vrot.slane %v2338_v37, 4  ;;  %v1585_v60 = vor.u32 %v1584_v51, %v1581_v44  ;;  %v2014_v2 = vrot.slane %v5073_v52, 5 }
  0xbf   : > { %4123 = vmatprep.mubr.bf16.mxu1 %v6036_v13  ;;  %v2007_v13 = vrot.slane %v5070_v0, 5  ;;  %4220 = vmatprep.mubr.bf16.mxu0 %v5115_v61  ;;  %v1577_v42 = vsel %vm6162_vm2, %v1572_v29, %v1576_v17  ;;  %v6037_v61 = vld [vmem:[%s6137_s16 + $0x18] sm:$0xff]   ;;  %v1594_v0 = vrot.slane %v1592_v55, 4  ;;  %v2356_v3 = vshrl.u32 %v5175_v53, 16  ;;  %v5179_v55 = vld [vmem:[%s6137_s16 + $0x34] sm:$0xf] }
  0xc0   : > { %v2343_v27 = vrot.slane %v2341_v19, 5  ;;  %v5035_v47 = vcombine.low %v1567_v25, %v1577_v42  ;;  %v1586_v5 = vrot.slane %v1585_v60, 4  ;;  %v2012_v6 = vsel %vm6302_vm5, %v5101_v57, %v2011_v62  ;;  %v5008_v17 = vld [vmem:[%s6137_s16 + $0x7c] sm:$0xf] }
  0xc1   : > { %v2008_v30 = vsel %vm6302_vm5, %v2006_v23, %v2007_v13  ;;  %v1595_v50 = vor.u32 %v1594_v0, %v1590_v54  ;;  %v2358_v10 = vrot.slane %v2356_v3, 4  ;;  %v2359_v11 = vshll.u32 %v5175_v53, 16 }
  0xc2   : > { %v5116_v36 = vcombine.low %v2005_v22, %v2008_v30  ;;  %v2348_v49 = vor.u32 %v2347_v38, %v2343_v27  ;;  %v2344_v58 = vsel %vm6162_vm2, %v2339_v48, %v2343_v27  ;;  %v1591_v13 = vsel %vm6162_vm2, %v1586_v5, %v1590_v54  ;;  %v5009_v22 = vld [vmem:[%s6137_s16 + $0x80] sm:$0x1]  ;;  %v5074_v27 = vld [vmem:[%s6137_s16 + $0x84] sm:$0xe] }
  0xc3   : > { %v2365_v15 = vshll.u32 %v5176_v63, 16  ;;  %v2369_v16 = vshrl.u32 %v5176_v63, 16  ;;  %v1596_v18 = vrot.slane %v1595_v50, 4  ;;  %v2361_v20 = vrot.slane %v2359_v11, 5  ;;  %v5180_v63 = vld [vmem:[%s6137_s16 + $0x38] sm:$0x1] }
  0xc4   : > { %v2349_v59 = vrot.slane %v2348_v49, 4  ;;  %v2375_v21 = vshll.u32 %v5177_v8, 16  ;;  %v1603_v25 = vshrl.u32 %v5007_v12, 16  ;;  %v1606_v26 = vshll.u32 %v5007_v12, 16  ;;  %v6044_v49 = vld [vmem:[%s7824_s1 + $0x230] sm:$0xff]  }
  0xc5   : > { %v2367_v23 = vrot.slane %v2365_v15, 5  ;;  %v2371_v24 = vrot.slane %v2369_v16, 4  ;;  %v1601_v28 = vsel %vm6162_vm2, %v1596_v18, %v1600_v1  ;;  %v2362_v29 = vor.u32 %v2361_v20, %v2358_v10  ;;  %5876 = vmatprep.subr.bf16.mxu0 %v6044_v49  ;;  %v5012_v11 = vld [vmem:[%s6137_s16 + $0x8c] sm:$0x1]  ;;  %v5077_v12 = vld [vmem:[%s6137_s16 + $0x90] sm:$0xe] }
  0xc6   : > { %4124 = vmatmul.mubr.bf16.gmra.mrb[76].mxu1 %v4931_v7  ;;  %4221 = vmatmul.mubr.bf16.gmra.mrb[76].mxu0 %v5035_v47  ;;  %v2354_v4 = vsel %vm6162_vm2, %v2349_v59, %v2353_v43  ;;  %v2013_v7 = vrot.slane %v2011_v62, 4  ;;  %v2377_v30 = vrot.slane %v2375_v21, 5  ;;  %v1612_v32 = vshll.u32 %v5008_v17, 16 }
  0xc7   : > { %4228 = vmatprep.mubr.bf16.mxu0 %v5116_v36  ;;  %v5220_v9 = vcombine.low %v2344_v58, %v2354_v4  ;;  %v5036_v36 = vcombine.low %v1591_v13, %v1601_v28  ;;  %v2372_v37 = vor.u32 %v2371_v24, %v2367_v23  ;;  %v1605_v38 = vrot.slane %v1603_v25, 4  ;;  %v6039_v58 = vld [vmem:[%s6137_s16 + $0x24] sm:$0xff]   ;;  %5877 = vmatpush3.bf16.msra.mxu0 %v6044_v49  ;;  %v5013_v49 = vld [vmem:[%s6137_s16 + $0x90] sm:$0xf] }
  0xc8   : > { %v2015_v14 = vsel %vm6302_vm5, %v2013_v7, %v2014_v2  ;;  %v1608_v39 = vrot.slane %v1606_v26, 5  ;;  %v2363_v41 = vrot.slane %v2362_v29, 4  ;;  %v1614_v42 = vrot.slane %v1612_v32, 5  ;;  %v5010_v2 = vld [vmem:[%s6137_s16 + $0x84] sm:$0xf] }
  0xc9   : > { %4325 = vmatprep.mubr.bf16.mxu1 %v5220_v9  ;;  %v5117_v19 = vcombine.low %v2012_v6, %v2015_v14  ;;  %v1616_v43 = vshrl.u32 %v5008_v17, 16  ;;  %v1622_v44 = vshll.u32 %v5009_v22, 16  ;;  %v2373_v45 = vrot.slane %v2372_v37, 4  ;;  %v5011_v7 = vld [vmem:[%s6137_s16 + $0x88] sm:$0xf] }
  0xca   : > { %v1609_v46 = vor.u32 %v1608_v39, %v1605_v38  ;;  %v5102_v47 = vrot.slane %v5074_v27, 9  ;;  %v2018_v48 = vrot.slane %v5075_v33, 5  ;;  %v2368_v51 = vsel %vm6162_vm2, %v2363_v41, %v2367_v23  ;;  %v5078_v17 = vld [vmem:[%s6137_s16 + $0x94] sm:$0xf]  ;;  %v5079_v26 = vld [vmem:[%s6137_s16 + $0x98] sm:$0x1] }
  0xcb   : > { %v1618_v52 = vrot.slane %v1616_v43, 4  ;;  %v1624_v53 = vrot.slane %v1622_v44, 5  ;;  %v2021_v54 = vrot.slane %v5076_v34, 5  ;;  %v2378_v56 = vsel %vm6162_vm2, %v2373_v45, %v2377_v30  ;;  %v5181_v37 = vld [vmem:[%s6137_s16 + $0x3c] sm:$0xf]  ;;  %v6040_v41 = vld [vmem:[%s6137_s16 + $0x30] sm:$0xff]  }
  0xcc   : > { %v1610_v57 = vrot.slane %v1609_v46, 4  ;;  %v2019_v59 = vsel %vm6302_vm5, %v5102_v47, %v2018_v48  ;;  %v2020_v60 = vrot.slane %v2018_v48, 4  ;;  %v2380_v0 = vshrl.u32 %v5178_v40, 16  ;;  %v5182_v43 = vld [vmem:[%s6137_s16 + $0x40] sm:$0xf] }
  0xcd   : > { %v1619_v62 = vor.u32 %v1618_v52, %v1614_v42  ;;  %v2383_v1 = vshll.u32 %v5178_v40, 16  ;;  %v2389_v5 = vshll.u32 %v5179_v55, 16  ;;  %v2393_v6 = vshrl.u32 %v5179_v55, 16  ;;  %v5183_v48 = vld [vmem:[%s6137_s16 + $0x44] sm:$0x1] }
  0xce   : > { %4326 = vmatmul.mubr.bf16.vlgmr.msra.gmra.mrb[80].mxu1 %v6037_v61  ;;  %4229 = vmatmul.mubr.bf16.gmra.mrb[80].mxu0 %v5036_v36  ;;  %v5221_v61 = vcombine.low %v2368_v51, %v2378_v56  ;;  %v1615_v3 = vsel %vm6162_vm2, %v1610_v57, %v1614_v42  ;;  %v2022_v4 = vsel %vm6302_vm5, %v2020_v60, %v2021_v54  ;;  %v2382_v50 = vrot.slane %v2380_v0, 4  ;;  %v5014_v55 = vld [vmem:[%s6137_s16 + $0x94] sm:$0xf]  ;;  %v6047_v60 = vld [vmem:[%s7824_s1 + $0x238] sm:$0xff]  }
  0xcf   : > { %4236 = vmatprep.mubr.bf16.mxu0 %v5117_v19  ;;  %v1620_v8 = vrot.slane %v1619_v62, 4  ;;  %v5118_v9 = vcombine.low %v2019_v59, %v2022_v4  ;;  %v2385_v10 = vrot.slane %v2383_v1, 5  ;;  %v2391_v13 = vrot.slane %v2389_v5, 5  ;;  %v5015_v5 = vld [vmem:[%s6137_s16 + $0x98] sm:$0x1]  ;;  %5878 = vmatprep.subr.bf16.mxu0 %v6047_v60 }
  0xd0   : > { %4333 = vmatprep.mubr.bf16.mxu1 %v5221_v61  ;;  %v2395_v14 = vrot.slane %v2393_v6, 4  ;;  %v2399_v15 = vshll.u32 %v5180_v63, 16  ;;  %v1627_v16 = vshrl.u32 %v5010_v2, 16  ;;  %v1630_v20 = vshll.u32 %v5010_v2, 16  ;;  %5879 = vmatpush3.bf16.msra.mxu0 %v6047_v60 }
  0xd1   : > { %v1625_v18 = vsel %vm6162_vm2, %v1620_v8, %v1624_v53  ;;  %v2386_v19 = vor.u32 %v2385_v10, %v2382_v50  ;;  %v1636_v21 = vshll.u32 %v5011_v7, 16  ;;  %v1640_v30 = vshrl.u32 %v5011_v7, 16  ;;  %v5080_v50 = vld [vmem:[%s6137_s16 + $0x9c] sm:$0xe] }
  0xd2   : > { %v5037_v22 = vcombine.low %v1615_v3, %v1625_v18  ;;  %v2396_v23 = vor.u32 %v2395_v14, %v2391_v13  ;;  %v2401_v24 = vrot.slane %v2399_v15, 5  ;;  %v1629_v25 = vrot.slane %v1627_v16, 4  ;;  %v5081_v14 = vld [vmem:[%s6137_s16 + $0xa0] sm:$0xf]  ;;  %v5082_v15 = vld [vmem:[%s6137_s16 + $0xa4] sm:$0x1] }
  0xd3   : > { %v2387_v27 = vrot.slane %v2386_v19, 4  ;;  %v1632_v28 = vrot.slane %v1630_v20, 5  ;;  %v1638_v29 = vrot.slane %v1636_v21, 5  ;;  %v1646_v33 = vshll.u32 %v5012_v11, 16  ;;  %v5184_v20 = vld [vmem:[%s6137_s16 + $0x48] sm:$0xf] }
  0xd4   : > { %v2397_v32 = vrot.slane %v2396_v23, 4  ;;  %v5103_v34 = vrot.slane %v5077_v12, 9  ;;  %v2025_v36 = vrot.slane %v5078_v17, 5  ;;  %v1642_v40 = vrot.slane %v1640_v30, 4  ;;  %v5185_v30 = vld [vmem:[%s6137_s16 + $0x4c] sm:$0xf] }
  0xd5   : > { %v2392_v38 = vsel %vm6162_vm2, %v2387_v27, %v2391_v13  ;;  %v1633_v39 = vor.u32 %v1632_v28, %v1629_v25  ;;  %v2028_v42 = vrot.slane %v5079_v26, 5  ;;  %v1648_v45 = vrot.slane %v1646_v33, 5  ;;  %v6042_v27 = vld [vmem:[%s6137_s16 + $0x3c] sm:$0xff]  }
  0xd6   : > { %4334 = vmatmul.mubr.bf16.gmra.mrb[84].mxu1 %v6039_v58  ;;  %4237 = vmatmul.mubr.bf16.gmra.mrb[84].mxu0 %v5037_v22  ;;  %v2402_v44 = vsel %vm6162_vm2, %v2397_v32, %v2401_v24  ;;  %v2026_v46 = vsel %vm6302_vm5, %v5103_v34, %v2025_v36  ;;  %v2027_v47 = vrot.slane %v2025_v36, 4  ;;  %v1643_v53 = vor.u32 %v1642_v40, %v1638_v29  ;;  %v5186_v36 = vld [vmem:[%s6137_s16 + $0x50] sm:$0x1] }
  0xd7   : > { %4244 = vmatprep.mubr.bf16.mxu0 %v5118_v9  ;;  %v5222_v51 = vcombine.low %v2392_v38, %v2402_v44  ;;  %v1634_v52 = vrot.slane %v1633_v39, 4  ;;  %v2404_v54 = vshrl.u32 %v5181_v37, 16  ;;  %v2407_v57 = vshll.u32 %v5181_v37, 16  ;;  %v5016_v38 = vld [vmem:[%s6137_s16 + $0x9c] sm:$0xf] }
  0xd8   : > { %v2029_v56 = vsel %vm6302_vm5, %v2027_v47, %v2028_v42  ;;  %v2413_v58 = vshll.u32 %v5182_v43, 16  ;;  %v2417_v59 = vshrl.u32 %v5182_v43, 16  ;;  %v1644_v62 = vrot.slane %v1643_v53, 4  ;;  %v5017_v53 = vld [vmem:[%s6137_s16 + $0xa0] sm:$0xf] }
  0xd9   : > { %4341 = vmatprep.mubr.bf16.mxu1 %v5222_v51  ;;  %v1639_v61 = vsel %vm6162_vm2, %v1634_v52, %v1638_v29  ;;  %v5119_v63 = vcombine.low %v2026_v46, %v2029_v56  ;;  %v2406_v0 = vrot.slane %v2404_v54, 4  ;;  %v2409_v1 = vrot.slane %v2407_v57, 5 }
  0xda   : > { %v2415_v2 = vrot.slane %v2413_v58, 5  ;;  %v2419_v3 = vrot.slane %v2417_v59, 4  ;;  %v2423_v4 = vshll.u32 %v5183_v48, 16  ;;  %v1649_v6 = vsel %vm6162_vm2, %v1644_v62, %v1648_v45  ;;  %v5018_v58 = vld [vmem:[%s6137_s16 + $0xa4] sm:$0x1] }
  0xdb   : > { %v1651_v7 = vshrl.u32 %v5013_v49, 16  ;;  %v1654_v8 = vshll.u32 %v5013_v49, 16  ;;  %v1660_v9 = vshll.u32 %v5014_v55, 16  ;;  %v5038_v10 = vcombine.low %v1639_v61, %v1649_v6 }
  0xdc   : > { %v2410_v11 = vor.u32 %v2409_v1, %v2406_v0  ;;  %v2420_v12 = vor.u32 %v2419_v3, %v2415_v2  ;;  %v2425_v13 = vrot.slane %v2423_v4, 5  ;;  %v1664_v19 = vshrl.u32 %v5014_v55, 16  ;;  %v5083_v1 = vld [vmem:[%s6137_s16 + $0xa8] sm:$0xe] }
  0xdd   : > { %v1653_v16 = vrot.slane %v1651_v7, 4  ;;  %v1656_v17 = vrot.slane %v1654_v8, 5  ;;  %v1662_v18 = vrot.slane %v1660_v9, 5  ;;  %v1670_v23 = vshll.u32 %v5015_v5, 16  ;;  %v5085_v7 = vld [vmem:[%s6137_s16 + $0xb0] sm:$0x1] }
  0xde   : > { %4342 = vmatmul.mubr.bf16.gmra.mrb[88].mxu1 %v6040_v41  ;;  %4245 = vmatmul.mubr.bf16.gmra.mrb[88].mxu0 %v5038_v10  ;;  %v2411_v21 = vrot.slane %v2410_v11, 4  ;;  %v2421_v22 = vrot.slane %v2420_v12, 4  ;;  %v5104_v24 = vrot.slane %v5080_v50, 9  ;;  %v1666_v26 = vrot.slane %v1664_v19, 4  ;;  %v5187_v11 = vld [vmem:[%s6137_s16 + $0x54] sm:$0xf] }
  0xdf   : > { %4252 = vmatprep.mubr.bf16.mxu0 %v5119_v63  ;;  %v1657_v25 = vor.u32 %v1656_v17, %v1653_v16  ;;  %v2032_v28 = vrot.slane %v5081_v14, 5  ;;  %v2035_v29 = vrot.slane %v5082_v15, 5  ;;  %v1672_v34 = vrot.slane %v1670_v23, 5  ;;  %v5188_v17 = vld [vmem:[%s6137_s16 + $0x58] sm:$0xf] }
  0xe0   : > { %v2416_v32 = vsel %vm6162_vm2, %v2411_v21, %v2415_v2  ;;  %v2426_v33 = vsel %vm6162_vm2, %v2421_v22, %v2425_v13  ;;  %v2428_v37 = vshrl.u32 %v5184_v20, 16  ;;  %v1667_v41 = vor.u32 %v1666_v26, %v1662_v18  ;;  %v5084_v2 = vld [vmem:[%s6137_s16 + $0xac] sm:$0xf] }
  0xe1   : > { %v5223_v39 = vcombine.low %v2416_v32, %v2426_v33  ;;  %v1658_v40 = vrot.slane %v1657_v25, 4  ;;  %v2033_v42 = vsel %vm6302_vm5, %v5104_v24, %v2032_v28  ;;  %v2034_v44 = vrot.slane %v2032_v28, 4  ;;  %v6043_v22 = vld [vmem:[%s6137_s16 + $0x48] sm:$0xff]  }
  0xe2   : > { %v2430_v45 = vrot.slane %v2428_v37, 4  ;;  %v2431_v46 = vshll.u32 %v5184_v20, 16  ;;  %v2437_v47 = vshll.u32 %v5185_v30, 16  ;;  %v1668_v49 = vrot.slane %v1667_v41, 4 }
  0xe3   : > { %4349 = vmatprep.mubr.bf16.mxu1 %v5223_v39  ;;  %v1663_v48 = vsel %vm6162_vm2, %v1658_v40, %v1662_v18  ;;  %v2441_v51 = vshrl.u32 %v5185_v30, 16  ;;  %v2447_v52 = vshll.u32 %v5186_v36, 16  ;;  %v2036_v55 = vsel %vm6302_vm5, %v2034_v44, %v2035_v29 }
  0xe4   : > { %v2433_v56 = vrot.slane %v2431_v46, 5  ;;  %v2439_v57 = vrot.slane %v2437_v47, 5  ;;  %v1675_v59 = vshrl.u32 %v5016_v38, 16  ;;  %v1673_v61 = vsel %vm6162_vm2, %v1668_v49, %v1672_v34  ;;  %v5019_v34 = vld [vmem:[%s6137_s16 + $0xa8] sm:$0xf] }
  0xe5   : > { %v5120_v62 = vcombine.low %v2033_v42, %v2036_v55  ;;  %v2443_v63 = vrot.slane %v2441_v51, 4  ;;  %v2449_v0 = vrot.slane %v2447_v52, 5  ;;  %v5039_v3 = vcombine.low %v1663_v48, %v1673_v61  ;;  %v5020_v47 = vld [vmem:[%s6137_s16 + $0xac] sm:$0xf] }
  0xe6   : > { %4350 = vmatmul.mubr.bf16.gmra.mrb[92].mxu1 %v6042_v27  ;;  %v2434_v4 = vor.u32 %v2433_v56, %v2430_v45  ;;  %v1677_v5 = vrot.slane %v1675_v59, 4  ;;  %v1678_v6 = vshll.u32 %v5016_v38, 16  ;;  %v1684_v9 = vshll.u32 %v5017_v53, 16  ;;  %v5189_v27 = vld [vmem:[%s6137_s16 + $0x5c] sm:$0x1] }
  0xe7   : > { %v2444_v8 = vor.u32 %v2443_v63, %v2439_v57  ;;  %v1688_v50 = vshrl.u32 %v5017_v53, 16  ;;  %v1694_v10 = vshll.u32 %v5018_v58, 16  ;;  %4253 = vmatmul.mubr.bf16.gmra.mrb[92].mxu0 %v5039_v3  ;;  %v5105_v15 = vrot.slane %v5083_v1, 9  ;;  %v5021_v58 = vld [vmem:[%s6137_s16 + $0xb0] sm:$0x1] }
  0xe8   : > { %v2435_v13 = vrot.slane %v2434_v4, 4  ;;  %v1680_v14 = vrot.slane %v1678_v6, 5  ;;  %v2039_v16 = vrot.slane %v5084_v2, 5  ;;  %4260 = vmatprep.mubr.bf16.mxu0 %v5120_v62  ;;  %v1686_v19 = vrot.slane %v1684_v9, 5  ;;  %v5086_v2 = vld [vmem:[%s6137_s16 + $0xb4] sm:$0xe] }
  0xe9   : > { %v2445_v18 = vrot.slane %v2444_v8, 4  ;;  %v1690_v20 = vrot.slane %v1688_v50, 4  ;;  %v1696_v21 = vrot.slane %v1694_v10, 5  ;;  %v2042_v32 = vrot.slane %v5085_v7, 5  ;;  %v5087_v3 = vld [vmem:[%s6137_s16 + $0xb8] sm:$0xf] }
  0xea   : > { %v2440_v23 = vsel %vm6162_vm2, %v2435_v13, %v2439_v57  ;;  %v1681_v24 = vor.u32 %v1680_v14, %v1677_v5  ;;  %v2040_v25 = vsel %vm6302_vm5, %v5105_v15, %v2039_v16  ;;  %v2041_v26 = vrot.slane %v2039_v16, 4  ;;  %v5088_v8 = vld [vmem:[%s6137_s16 + $0xbc] sm:$0x1]  ;;  %v5190_v14 = vld [vmem:[%s6137_s16 + $0x60] sm:$0xf] }
  0xeb   : > { %v2450_v29 = vsel %vm6162_vm2, %v2445_v18, %v2449_v0  ;;  %v1691_v30 = vor.u32 %v1690_v20, %v1686_v19  ;;  %v2452_v33 = vshrl.u32 %v5187_v11, 16  ;;  %v2455_v38 = vshll.u32 %v5187_v11, 16 }
  0xec   : > { %v5224_v36 = vcombine.low %v2440_v23, %v2450_v29  ;;  %v1682_v37 = vrot.slane %v1681_v24, 4  ;;  %v2461_v39 = vshll.u32 %v5188_v17, 16  ;;  %v2043_v44 = vsel %vm6302_vm5, %v2041_v26, %v2042_v32  ;;  %v5192_v24 = vld [vmem:[%s6137_s16 + $0x68] sm:$0x1]  ;;  %v5022_v32 = vld [vmem:[%s6137_s16 + $0xb4] sm:$0xf] }
  0xed   : > { %v1692_v42 = vrot.slane %v1691_v30, 4  ;;  %v2454_v45 = vrot.slane %v2452_v33, 4  ;;  %v2465_v46 = vshrl.u32 %v5188_v17, 16  ;;  %v5121_v51 = vcombine.low %v2040_v25, %v2043_v44 }
  0xee   : > { %4357 = vmatprep.mubr.bf16.mxu1 %v5224_v36  ;;  %v1687_v49 = vsel %vm6162_vm2, %v1682_v37, %v1686_v19  ;;  %v2457_v52 = vrot.slane %v2455_v38, 5  ;;  %v2463_v53 = vrot.slane %v2461_v39, 5  ;;  %v2471_v57 = vshll.u32 %v5189_v27, 16  ;;  %v5191_v19 = vld [vmem:[%s6137_s16 + $0x64] sm:$0xf]  ;;  %v6045_v27 = vld [vmem:[%s6137_s16 + $0x54] sm:$0xff]  }
  0xef   : > { %v1697_v55 = vsel %vm6162_vm2, %v1692_v42, %v1696_v21  ;;  %4358 = vmatmul.mubr.bf16.gmra.mrb[96].mxu1 %v6043_v22  ;;  %v2467_v56 = vrot.slane %v2465_v46, 4  ;;  %v1699_v59 = vshrl.u32 %v5019_v34, 16  ;;  %v1702_v0 = vshll.u32 %v5019_v34, 16 }
  0xf0   : > { %v5040_v62 = vcombine.low %v1687_v49, %v1697_v55  ;;  %v2458_v63 = vor.u32 %v2457_v52, %v2454_v45  ;;  %v1708_v1 = vshll.u32 %v5020_v47, 16  ;;  %v2473_v5 = vrot.slane %v2471_v57, 5 }
  0xf1   : > { %v2468_v4 = vor.u32 %v2467_v56, %v2463_v53  ;;  %v1701_v6 = vrot.slane %v1699_v59, 4  ;;  %v1712_v7 = vshrl.u32 %v5020_v47, 16  ;;  %v1704_v10 = vrot.slane %v1702_v0, 5 }
  0xf2   : > { %4261 = vmatmul.mubr.bf16.gmra.mrb[96].mxu0 %v5040_v62  ;;  %v2459_v50 = vrot.slane %v2458_v63, 4  ;;  %v1710_v11 = vrot.slane %v1708_v1, 5  ;;  %v1718_v13 = vshll.u32 %v5021_v58, 16  ;;  %v5106_v17 = vrot.slane %v5086_v2, 9  ;;  %v5023_v58 = vld [vmem:[%s6137_s16 + $0xb8] sm:$0xf] }
  0xf3   : > { %4268 = vmatprep.mubr.bf16.mxu0 %v5121_v51  ;;  %v2469_v15 = vrot.slane %v2468_v4, 4  ;;  %v1714_v16 = vrot.slane %v1712_v7, 4  ;;  %v2046_v18 = vrot.slane %v5087_v3, 5  ;;  %v1705_v21 = vor.u32 %v1704_v10, %v1701_v6  ;;  %v5024_v1 = vld [vmem:[%s6137_s16 + $0xbc] sm:$0x1] }
  0xf4   : > { %v2464_v20 = vsel %vm6162_vm2, %v2459_v50, %v2463_v53  ;;  %v1720_v22 = vrot.slane %v1718_v13, 5  ;;  %v2049_v23 = vrot.slane %v5088_v8, 5  ;;  %v2476_v38 = vshrl.u32 %v5190_v14, 16 }
  0xf5   : > { %v2474_v25 = vsel %vm6162_vm2, %v2469_v15, %v2473_v5  ;;  %v1715_v26 = vor.u32 %v1714_v16, %v1710_v11  ;;  %v2047_v29 = vsel %vm6302_vm5, %v5106_v17, %v2046_v18  ;;  %v2048_v30 = vrot.slane %v2046_v18, 4 }
  0xf6   : > { %v5225_v36 = vcombine.low %v2464_v20, %v2474_v25  ;;  %v1706_v37 = vrot.slane %v1705_v21, 4  ;;  %v2479_v39 = vshll.u32 %v5190_v14, 16  ;;  %v2485_v47 = vshll.u32 %v5191_v19, 16  ;;  %v5089_v21 = vld [vmem:[%s6137_s16 + $0xc0] sm:$0xe] }
  0xf7   : > { %v1716_v45 = vrot.slane %v1715_v26, 4  ;;  %v2050_v46 = vsel %vm6302_vm5, %v2048_v30, %v2049_v23  ;;  %v2489_v49 = vshrl.u32 %v5191_v19, 16  ;;  %v2478_v56 = vrot.slane %v2476_v38, 4  ;;  %v5090_v26 = vld [vmem:[%s6137_s16 + $0xc4] sm:$0xf] }
  0xf8   : > { %4365 = vmatprep.mubr.bf16.mxu1 %v5225_v36  ;;  %v1711_v53 = vsel %vm6162_vm2, %v1706_v37, %v1710_v11  ;;  %v5122_v55 = vcombine.low %v2047_v29, %v2050_v46  ;;  %v2481_v57 = vrot.slane %v2479_v39, 5  ;;  %v2487_v62 = vrot.slane %v2485_v47, 5  ;;  %v5193_v37 = vld [vmem:[%s6137_s16 + $0x6c] sm:$0xf] }
  0xf9   : > { %v1721_v59 = vsel %vm6162_vm2, %v1716_v45, %v1720_v22  ;;  %4366 = vmatmul.mubr.bf16.gmra.mrb[100].mxu1 %v6045_v27  ;;  %v2491_v63 = vrot.slane %v2489_v49, 4  ;;  %v2495_v0 = vshll.u32 %v5192_v24, 16  ;;  %v1723_v5 = vshrl.u32 %v5022_v32, 16  ;;  %v5091_v27 = vld [vmem:[%s6137_s16 + $0xc8] sm:$0x1] }
  0xfa   : > { %v5041_v3 = vcombine.low %v1711_v53, %v1721_v59  ;;  %v2482_v4 = vor.u32 %v2481_v57, %v2478_v56  ;;  %v1726_v6 = vshll.u32 %v5022_v32, 16  ;;  %v1732_v50 = vshll.u32 %v5023_v58, 16  ;;  %v6046_v32 = vld [vmem:[%s6137_s16 + $0x60] sm:$0xff]   ;;  %v5194_v53 = vld [vmem:[%s6137_s16 + $0x70] sm:$0xf] }
  0xfb   : > { %v2492_v7 = vor.u32 %v2491_v63, %v2487_v62  ;;  %v2497_v8 = vrot.slane %v2495_v0, 5  ;;  %v1736_v10 = vshrl.u32 %v5023_v58, 16  ;;  %v1725_v14 = vrot.slane %v1723_v5, 4  ;;  %v5195_v57 = vld [vmem:[%s6137_s16 + $0x74] sm:$0x1] }
  0xfc   : > { %4269 = vmatmul.mubr.bf16.gmra.mrb[100].mxu0 %v5041_v3  ;;  %v2483_v13 = vrot.slane %v2482_v4, 4  ;;  %v1728_v15 = vrot.slane %v1726_v6, 5  ;;  %v1742_v16 = vshll.u32 %v5024_v1, 16  ;;  %v1734_v18 = vrot.slane %v1732_v50, 5  ;;  %v5025_v59 = vld [vmem:[%s6137_s16 + $0xc0] sm:$0xf] }
  0xfd   : > { %4276 = vmatprep.mubr.bf16.mxu0 %v5122_v55  ;;  %v2493_v17 = vrot.slane %v2492_v7, 4  ;;  %v1738_v19 = vrot.slane %v1736_v10, 4  ;;  %v2056_v56 = vrot.slane %v5091_v27, 5  ;;  %v2500_v58 = vshrl.u32 %v5193_v37, 16  ;;  %v5026_v5 = vld [vmem:[%s6137_s16 + $0xc4] sm:$0xf] }
  0xfe   : > { %v2488_v23 = vsel %vm6162_vm2, %v2483_v13, %v2487_v62  ;;  %v1729_v24 = vor.u32 %v1728_v15, %v1725_v14  ;;  %v2503_v63 = vshll.u32 %v5193_v37, 16  ;;  %v2509_v3 = vshll.u32 %v5194_v53, 16  ;;  %v5027_v10 = vld [vmem:[%s6137_s16 + $0xc8] sm:$0x1] }
  0xff   : > { %v2498_v30 = vsel %vm6162_vm2, %v2493_v17, %v2497_v8  ;;  %v2502_v1 = vrot.slane %v2500_v58, 4  ;;  %v2513_v4 = vshrl.u32 %v5194_v53, 16  ;;  %v2519_v50 = vshll.u32 %v5195_v57, 16 }
 0x100   : > { %v1730_v39 = vrot.slane %v1729_v24, 4  ;;  %v2505_v8 = vrot.slane %v2503_v63, 5  ;;  %v1747_v13 = vshrl.u32 %v5025_v59, 16  ;;  %v1766_v37 = vshll.u32 %v5027_v10, 16 }
 0x101   : > { %v6805_v43 = vpop.f32.mrb[0].mxu0  ;;  %v6810_v54 = vpop.f32.mrb[0].mxu1  ;;  %v2515_v17 = vrot.slane %v2513_v4, 4  ;;  %v5237_v4 = vld [vmem:[%s6137_s16 + $0x1c] sm:$0xf] }
 0x102   : > { %v6815_v60 = vpop.f32.mrb[1].mxu0  ;;  %v6823_v12 = vpop.f32.mrb[1].mxu1  ;;  %v1735_v55 = vsel %vm6162_vm2, %v1730_v39, %v1734_v18  ;;  %v1749_v24 = vrot.slane %v1747_v13, 4 }
 0x103   : > { %v6832_v28 = vpop.f32.mrb[2].mxu0  ;;  %v6837_v40 = vpop.f32.mrb[2].mxu1  ;;  %v6895_v20 = vadd.f32 %v6815_v60, %v6805_v43  ;;  %v6904_v25 = vadd.f32 %v6823_v12, %v6810_v54  ;;  %v1739_v43 = vor.u32 %v1738_v19, %v1734_v18  ;;  %v1744_v60 = vrot.slane %v1742_v16, 5 }
 0x104   : > { %v6839_v41 = vpop.f32.mrb[3].mxu0  ;;  %v6844_v48 = vpop.f32.mrb[3].mxu1  ;;  %v5226_v12 = vcombine.low %v2488_v23, %v2498_v30  ;;  %v2511_v16 = vrot.slane %v2509_v3, 5  ;;  %v1750_v18 = vshll.u32 %v5025_v59, 16  ;;  %v2521_v23 = vrot.slane %v2519_v50, 5 }
 0x105   : > { %7833 = vst [vmem:[#allocation3_spill] sm:$0xff] %v6904_v25  ;;  %v6915_v36 = vadd.f32 %v6839_v41, %v6832_v28  ;;  %v6924_v45 = vadd.f32 %v6844_v48, %v6837_v40  ;;  %v1740_v49 = vrot.slane %v1739_v43, 4  ;;  %v5107_v28 = vrot.slane %v5089_v21, 9  ;;  %v5196_v59 = vld [vmem:[%s6137_s16 + $0x78] sm:$0xf] }
 0x106   : > { %v2053_v41 = vrot.slane %v5090_v26, 5  ;;  %4373 = vmatprep.mubr.bf16.mxu1 %v5226_v12  ;;  %v2506_v21 = vor.u32 %v2505_v8, %v2502_v1  ;;  %v1756_v26 = vshll.u32 %v5026_v5, 16  ;;  %v2516_v43 = vor.u32 %v2515_v17, %v2511_v16  ;;  %v6048_v1 = vld [vmem:[%s6137_s16 + $0x6c] sm:$0xff]  }
 0x107   : > { %7834 = vst [vmem:[#allocation4_spill] sm:$0xff] %v6924_v45  ;;  %v1745_v40 = vsel %vm6162_vm2, %v1740_v49, %v1744_v60  ;;  %4374 = vmatmul.mubr.bf16.gmra.mrb[104].mxu1 %v6046_v32  ;;  %v1752_v60 = vrot.slane %v1750_v18, 5  ;;  %v1760_v32 = vshrl.u32 %v5026_v5, 16  ;;  %v2527_v8 = vshll.u32 %v5196_v59, 16 }
 0x108   : > { %v2054_v48 = vsel %vm6302_vm5, %v5107_v28, %v2053_v41  ;;  %v2055_v62 = vrot.slane %v2053_v41, 4  ;;  %v5042_v0 = vcombine.low %v1735_v55, %v1745_v40  ;;  %v2507_v49 = vrot.slane %v2506_v21, 4  ;;  %v5197_v40 = vld [vmem:[%s6137_s16 + $0x7c] sm:$0xf] }
 0x109   : > { %v6851_v61 = vpop.f32.mrb[4].mxu0  ;;  %v6856_v9 = vpop.f32.mrb[4].mxu1  ;;  %v1758_v28 = vrot.slane %v1756_v26, 5  ;;  %v1753_v57 = vor.u32 %v1752_v60, %v1749_v24  ;;  %v1762_v58 = vrot.slane %v1760_v32, 4  ;;  %v2533_v13 = vshll.u32 %v5197_v40, 16 }
 0x10a   : > { %v6869_v33 = vpop.f32.mrb[5].mxu0  ;;  %v6871_v34 = vpop.f32.mrb[5].mxu1  ;;  %v2057_v7 = vsel %vm6302_vm5, %v2055_v62, %v2056_v56  ;;  %4277 = vmatmul.mubr.bf16.gmra.mrb[104].mxu0 %v5042_v0  ;;  %v2517_v56 = vrot.slane %v2516_v43, 4  ;;  %v2529_v18 = vrot.slane %v2527_v8, 5  ;;  %v2537_v21 = vshrl.u32 %v5197_v40, 16 }
 0x10b   : > { %v6873_v42 = vpop.f32.mrb[6].mxu0  ;;  %v6875_v44 = vpop.f32.mrb[6].mxu1  ;;  %v5123_v15 = vcombine.low %v2054_v48, %v2057_v7  ;;  %v6959_v41 = vadd.f32 %v6869_v33, %v6851_v61  ;;  %v6963_v53 = vadd.f32 %v6871_v34, %v6856_v9  ;;  %v2512_v48 = vsel %vm6162_vm2, %v2507_v49, %v2511_v16  ;;  %v5198_v9 = vld [vmem:[%s6137_s16 + $0x80] sm:$0x1]  ;;  %v5236_v34 = vld [vmem:[%s6137_s16 + $0x18] sm:$0xe] }
 0x10c   : > { %v6879_v51 = vpop.f32.mrb[7].mxu0  ;;  %v6881_v52 = vpop.f32.mrb[7].mxu1  ;;  %v1768_v61 = vrot.slane %v1766_v37, 5  ;;  %v2522_v62 = vsel %vm6162_vm2, %v2517_v56, %v2521_v23  ;;  %v1754_v63 = vrot.slane %v1753_v57, 4  ;;  %v1763_v0 = vor.u32 %v1762_v58, %v1758_v28  ;;  %v5241_v16 = vld [vmem:[%s6137_s16 + $0x2c] sm:$0x1] }
 0x10d   : > { %4284 = vmatprep.mubr.bf16.mxu0 %v5123_v15  ;;  %7835 = vst [vmem:[#allocation5_spill] sm:$0xff] %v6963_v53  ;;  %v6973_v33 = vadd.f32 %v6879_v51, %v6873_v42  ;;  %v6982_v3 = vadd.f32 %v6881_v52, %v6875_v44  ;;  %v5227_v5 = vcombine.low %v2512_v48, %v2522_v62  ;;  %v2524_v7 = vshrl.u32 %v5196_v59, 16  ;;  %v5238_v42 = vld [vmem:[%s6137_s16 + $0x20] sm:$0x1]  ;;  %v5239_v51 = vld [vmem:[%s6137_s16 + $0x24] sm:$0xe] }
 0x10e   : > { %v1759_v50 = vsel %vm6162_vm2, %v1754_v63, %v1758_v28  ;;  %v1764_v10 = vrot.slane %v1763_v0, 4  ;;  %v5240_v15 = vld [vmem:[%s6137_s16 + $0x28] sm:$0xf]  ;;  %v2543_v23 = vshll.u32 %v5198_v9, 16  ;;  %v2535_v26 = vrot.slane %v2533_v13, 5 }
 0x10f   : > { %7836 = vst [vmem:[#allocation6_spill] sm:$0xff] %v6982_v3  ;;  %4381 = vmatprep.mubr.bf16.mxu1 %v5227_v5  ;;  %v2526_v17 = vrot.slane %v2524_v7, 4  ;;  %v5284_v43 = vrot.slane %v5236_v34, 9  ;;  %v2893_v60 = vrot.slane %v5237_v4, 5  ;;  %v2539_v56 = vrot.slane %v2537_v21, 4 }
 0x110   : > { %v1769_v24 = vsel %vm6162_vm2, %v1764_v10, %v1768_v61  ;;  %4382 = vmatmul.mubr.bf16.gmra.mrb[108].mxu1 %v6048_v1  ;;  %v2545_v57 = vrot.slane %v2543_v23, 5  ;;  %v2896_v61 = vrot.slane %v5238_v42, 5  ;;  %v5285_v9 = vrot.slane %v5239_v51, 9  ;;  %v5199_v51 = vld [vmem:[%s6137_s16 + $0x84] sm:$0xf] }
 0x111   : > { %v6889_v2 = vpop.f32.mrb[8].mxu0  ;;  %v6891_v11 = vpop.f32.mrb[8].mxu1  ;;  %v5043_v49 = vcombine.low %v1759_v50, %v1769_v24  ;;  %v2530_v28 = vor.u32 %v2529_v18, %v2526_v17  ;;  %v2894_v40 = vsel %vm6302_vm5, %v5284_v43, %v2893_v60  ;;  %v2895_v48 = vrot.slane %v2893_v60, 4  ;;  %v5200_v50 = vld [vmem:[%s6137_s16 + $0x88] sm:$0xf] }
 0x112   : > { %v6898_v22 = vpop.f32.mrb[9].mxu0  ;;  %v6908_v29 = vpop.f32.mrb[9].mxu1  ;;  %v2540_v0 = vor.u32 %v2539_v56, %v2535_v26  ;;  %v2900_v1 = vrot.slane %v5240_v15, 5  ;;  %v2903_v4 = vrot.slane %v5241_v16, 5  ;;  %v5201_v16 = vld [vmem:[%s6137_s16 + $0x8c] sm:$0x1] }
 0x113   : > { %v6918_v38 = vpop.f32.mrb[10].mxu0  ;;  %v6920_v54 = vpop.f32.mrb[10].mxu1  ;;  %4285 = vmatmul.mubr.bf16.gmra.mrb[108].mxu0 %v5043_v49  ;;  %v2531_v63 = vrot.slane %v2530_v28, 4  ;;  %v2897_v5 = vsel %vm6302_vm5, %v2895_v48, %v2896_v61  ;;  %v7015_v7 = vadd.f32 %v6898_v22, %v6889_v2  ;;  %v7019_v8 = vadd.f32 %v6908_v29, %v6891_v11  ;;  %v5242_v2 = vld [vmem:[%s6137_s16 + $0x30] sm:$0xe]  ;;  %v6049_v22 = vld [vmem:[%s6137_s16 + $0x78] sm:$0xff]  }
 0x114   : > { %v6926_v46 = vpop.f32.mrb[11].mxu0  ;;  %v6928_v47 = vpop.f32.mrb[11].mxu1  ;;  %v2541_v13 = vrot.slane %v2540_v0, 4  ;;  %v5300_v15 = vcombine.low %v2894_v40, %v2897_v5  ;;  %v2901_v11 = vsel %vm6302_vm5, %v5285_v9, %v2900_v1  ;;  %v2902_v29 = vrot.slane %v2900_v1, 4  ;;  %v5243_v17 = vld [vmem:[%s6137_s16 + $0x34] sm:$0xf] }
 0x115   : > { %7837 = vst [vmem:[#allocation7_spill] sm:$0xff] %v7019_v8  ;;  %v7023_v42 = vadd.f32 %v6926_v46, %v6918_v38  ;;  %v2536_v10 = vsel %vm6162_vm2, %v2531_v63, %v2535_v26  ;;  %v7039_v46 = vadd.f32 %v6928_v47, %v6920_v54  ;;  %v2548_v18 = vshrl.u32 %v5199_v51, 16  ;;  %v5244_v23 = vld [vmem:[%s6137_s16 + $0x38] sm:$0x1]  ;;  %v5245_v24 = vld [vmem:[%s6137_s16 + $0x3c] sm:$0xe] }
 0x116   : > { %v2546_v38 = vsel %vm6162_vm2, %v2541_v13, %v2545_v57  ;;  %5880 = vmatprep.mubr.bf16.mxu0 %v5300_v15  ;;  %v2551_v21 = vshll.u32 %v5199_v51, 16  ;;  %v2904_v43 = vsel %vm6302_vm5, %v2902_v29, %v2903_v4  ;;  %v2557_v60 = vshll.u32 %v5200_v50, 16  ;;  %v5246_v28 = vld [vmem:[%s6137_s16 + $0x40] sm:$0xf]  ;;  %v5247_v61 = vld [vmem:[%s6137_s16 + $0x44] sm:$0x1] }
 0x117   : > { %7838 = vst [vmem:[#allocation8_spill] sm:$0xff] %v7039_v46  ;;  %v5228_v26 = vcombine.low %v2536_v10, %v2546_v38  ;;  %v2561_v49 = vshrl.u32 %v5200_v50, 16  ;;  %v5301_v57 = vcombine.low %v2901_v11, %v2904_v43  ;;  %v2550_v40 = vrot.slane %v2548_v18, 4  ;;  %v5259_v8 = vld [vmem:[%s6137_s16 + $0x74] sm:$0x1] }
 0x118   : > { %v2553_v48 = vrot.slane %v2551_v21, 5  ;;  %v2559_v47 = vrot.slane %v2557_v60, 5  ;;  %v2567_v0 = vshll.u32 %v5201_v16, 16  ;;  %v5286_v1 = vrot.slane %v5242_v2, 9  ;;  %v7064_v16 = vld [vmem:[%s7825_s2] ss:$0 sm:$0xff] }
 0x119   : > { %v6940_v6 = vpop.f32.mrb[12].mxu0  ;;  %v6947_v19 = vpop.f32.mrb[12].mxu1  ;;  %4389 = vmatprep.mubr.bf16.mxu1 %v5228_v26  ;;  %v2563_v63 = vrot.slane %v2561_v49, 4  ;;  %v2907_v50 = vrot.slane %v5243_v17, 5  ;;  %v2910_v10 = vrot.slane %v5244_v23, 5  ;;  %v5287_v13 = vrot.slane %v5245_v24, 9 }
 0x11a   : > { %v6945_v14 = vpop.f32.mrb[13].mxu0  ;;  %v6949_v27 = vpop.f32.mrb[13].mxu1  ;;  %4390 = vmatmul.mubr.bf16.gmra.mrb[112].mxu1 %v6049_v22  ;;  %v2554_v51 = vor.u32 %v2553_v48, %v2550_v40  ;;  %v2569_v29 = vrot.slane %v2567_v0, 5  ;;  %v2914_v38 = vrot.slane %v5246_v28, 5  ;;  %v2917_v22 = vrot.slane %v5247_v61, 5 }
 0x11b   : > { %v6951_v30 = vpop.f32.mrb[14].mxu0  ;;  %v6953_v12 = vpop.f32.mrb[14].mxu1  ;;  %5881 = vmatmul.mubr.bf16.vlgmr.msra.gmra.mrb[112].mxu0 %v5301_v57  ;;  %v2564_v2 = vor.u32 %v2563_v63, %v2559_v47  ;;  %v2908_v21 = vsel %vm6302_vm5, %v5286_v1, %v2907_v50  ;;  %v2909_v23 = vrot.slane %v2907_v50, 4  ;;  %v7072_v24 = vadd.f32 %v6945_v14, %v6940_v6  ;;  %v5202_v26 = vld [vmem:[%s6137_s16 + $0x90] sm:$0xf] }
 0x11c   : > { %v6955_v39 = vpop.f32.mrb[15].mxu0  ;;  %v6965_v55 = vpop.f32.mrb[15].mxu1  ;;  %v2555_v17 = vrot.slane %v2554_v51, 4  ;;  %v2915_v60 = vsel %vm6302_vm5, %v5287_v13, %v2914_v38  ;;  %v2916_v49 = vrot.slane %v2914_v38, 4  ;;  %v7079_v28 = vadd.f32 %v6949_v27, %v6947_v19  ;;  %v5203_v57 = vld [vmem:[%s6137_s16 + $0x94] sm:$0xf] }
 0x11d   : > { %v2565_v43 = vrot.slane %v2564_v2, 4  ;;  %v7084_v40 = vadd.f32 %v6895_v20, %v7064_v16  ;;  %v2911_v14 = vsel %vm6302_vm5, %v2909_v23, %v2910_v10  ;;  %v7092_v48 = vadd.f32 %v6955_v39, %v6951_v30  ;;  %v5204_v61 = vld [vmem:[%s6137_s16 + $0x98] sm:$0x1]  ;;  %v5248_v19 = vld [vmem:[%s6137_s16 + $0x48] sm:$0xe] }
 0x11e   : > { %7839 = vst [vmem:[#allocation9_spill] sm:$0xff] %v7079_v28  ;;  %v2560_v6 = vsel %vm6162_vm2, %v2555_v17, %v2559_v47  ;;  %v7098_v27 = vadd.f32 %v6915_v36, %v7064_v16  ;;  %v5302_v63 = vcombine.low %v2908_v21, %v2911_v14  ;;  %v6050_v47 = vld [vmem:[%s6137_s16 + $0x84] sm:$0xff]   ;;  %v2918_v0 = vsel %vm6302_vm5, %v2916_v49, %v2917_v22  ;;  %v5249_v1 = vld [vmem:[%s6137_s16 + $0x4c] sm:$0xf]  ;;  %v5250_v51 = vld [vmem:[%s6137_s16 + $0x50] sm:$0x1] }
 0x11f   : > { %v2570_v20 = vsel %vm6162_vm2, %v2565_v43, %v2569_v29  ;;  %v7111_v39 = vadd.f32 %v6959_v41, %v7064_v16  ;;  %v5303_v36 = vcombine.low %v2915_v60, %v2918_v0  ;;  %v7115_v10 = vadd.f32 %v6965_v55, %v6953_v12  ;;  %v5251_v13 = vld [vmem:[%s6137_s16 + $0x54] sm:$0xe]  ;;  %v5252_v2 = vld [vmem:[%s6137_s16 + $0x58] sm:$0xf]  ;;  %v5253_v43 = vld [vmem:[%s6137_s16 + $0x5c] sm:$0x1] }
 0x120   : > { %v5229_v50 = vcombine.low %v2560_v6, %v2570_v20  ;;  %5884 = vmatprep.mubr.bf16.mxu0 %v5302_v63  ;;  %v2572_v22 = vshrl.u32 %v5202_v26, 16  ;;  %v2575_v17 = vshll.u32 %v5202_v26, 16  ;;  %v2581_v21 = vshll.u32 %v5203_v57, 16 }
 0x121   : > { %v6991_v44 = vpop.f32.mrb[16].mxu0  ;;  %v6993_v52 = vpop.f32.mrb[16].mxu1  ;;  %7840 = vst [vmem:[#allocation10_spill] sm:$0xff] %v7115_v10  ;;  %v2585_v23 = vshrl.u32 %v5203_v57, 16  ;;  %v7130_v12 = vadd.f32 %v6973_v33, %v7064_v16  ;;  %v2591_v55 = vshll.u32 %v5204_v61, 16  ;;  %v5288_v60 = vrot.slane %v5248_v19, 9 }
 0x122   : > { %v6997_v32 = vpop.f32.mrb[17].mxu0  ;;  %v6999_v37 = vpop.f32.mrb[17].mxu1  ;;  %4397 = vmatprep.mubr.bf16.mxu1 %v5229_v50  ;;  %v2921_v6 = vrot.slane %v5249_v1, 5  ;;  %v2574_v57 = vrot.slane %v2572_v22, 4  ;;  %v2577_v20 = vrot.slane %v2575_v17, 5  ;;  %v2583_v63 = vrot.slane %v2581_v21, 5 }
 0x123   : > { %v7001_v58 = vpop.f32.mrb[18].mxu0  ;;  %v7003_v59 = vpop.f32.mrb[18].mxu1  ;;  %5885 = vmatmul.mubr.bf16.gmra.mrb[116].mxu0 %v5303_v36  ;;  %4398 = vmatmul.mubr.bf16.gmra.mrb[116].mxu1 %v6050_v47  ;;  %v2587_v0 = vrot.slane %v2585_v23, 4  ;;  %v2593_v33 = vrot.slane %v2591_v55, 5  ;;  %v2924_v19 = vrot.slane %v5250_v51, 5  ;;  %v5289_v28 = vrot.slane %v5251_v13, 9 }
 0x124   : > { %v7007_v34 = vpop.f32.mrb[19].mxu0  ;;  %v7009_v62 = vpop.f32.mrb[19].mxu1  ;;  %v2922_v50 = vsel %vm6302_vm5, %v5288_v60, %v2921_v6  ;;  %v2923_v61 = vrot.slane %v2921_v6, 4  ;;  %v2578_v1 = vor.u32 %v2577_v20, %v2574_v57  ;;  %v2928_v46 = vrot.slane %v5252_v2, 5  ;;  %v5205_v47 = vld [vmem:[%s6137_s16 + $0x9c] sm:$0xf] }
 0x125   : > { %v2588_v36 = vor.u32 %v2587_v0, %v2583_v63  ;;  %v2931_v17 = vrot.slane %v5253_v43, 5  ;;  %v7145_v21 = vadd.f32 %v6997_v32, %v6991_v44  ;;  %v5522_v23 = vadd.f32 %v6999_v37, %v6993_v52  ;;  %v5206_v55 = vld [vmem:[%s6137_s16 + $0xa0] sm:$0xf]  ;;  %v5207_v6 = vld [vmem:[%s6137_s16 + $0xa4] sm:$0x1] }
 0x126   : > { %v2925_v22 = vsel %vm6302_vm5, %v2923_v61, %v2924_v19  ;;  %v7152_v51 = vadd.f32 %v7015_v7, %v7064_v16  ;;  %v2579_v13 = vrot.slane %v2578_v1, 4  ;;  %v5254_v57 = vld [vmem:[%s6137_s16 + $0x60] sm:$0xe]  ;;  %v2929_v43 = vsel %vm6302_vm5, %v5289_v28, %v2928_v46  ;;  %v5255_v37 = vld [vmem:[%s6137_s16 + $0x64] sm:$0xf] }
 0x127   : > { %v2589_v2 = vrot.slane %v2588_v36, 4  ;;  %v5304_v60 = vcombine.low %v2922_v50, %v2925_v22  ;;  %v2930_v44 = vrot.slane %v2928_v46, 4  ;;  %v7159_v32 = vadd.f32 %v5522_v23, %v7084_v40  ;;  %v6051_v46 = vld [vmem:[%s6137_s16 + $0x90] sm:$0xff]   ;;  %v5257_v36 = vld [vmem:[%s6137_s16 + $0x6c] sm:$0xe] }
 0x128   : > { %v7163_v52 = vadd.f32 %v7007_v34, %v7001_v58  ;;  %v2584_v0 = vsel %vm6162_vm2, %v2579_v13, %v2583_v63  ;;  %v5525_v40 = vadd.f32 %v7009_v62, %v7003_v59  ;;  %v2596_v58 = vshrl.u32 %v5205_v47, 16  ;;  %v5256_v34 = vld [vmem:[%s6137_s16 + $0x68] sm:$0x1] }
 0x129   : > { %v7046_v56 = vpop.f32.mrb[20].mxu1  ;;  %v7049_v9 = vpop.f32.mrb[20].mxu0  ;;  %7841 = vst [vmem:[#allocation11_spill] sm:$0xff] %v7159_v32  ;;  %v2594_v28 = vsel %vm6162_vm2, %v2589_v2, %v2593_v33  ;;  %5888 = vmatprep.mubr.bf16.mxu0 %v5304_v60  ;;  %v7184_v19 = vadd.f32 %v7023_v42, %v7064_v16  ;;  %v2932_v33 = vsel %vm6302_vm5, %v2930_v44, %v2931_v17  ;;  %v2599_v1 = vshll.u32 %v5205_v47, 16  ;;  %v5258_v60 = vld [vmem:[%s6137_s16 + $0x70] sm:$0xf] }
 0x12a   : > { %v7051_v54 = vpop.f32.mrb[21].mxu1  ;;  %v7053_v5 = vpop.f32.mrb[21].mxu0  ;;  %v5230_v63 = vcombine.low %v2584_v0, %v2594_v28  ;;  %v5305_v62 = vcombine.low %v2929_v43, %v2932_v33  ;;  %v7194_v23 = vadd.f32 %v5525_v40, %v7098_v27  ;;  %v2598_v13 = vrot.slane %v2596_v58, 4 }
 0x12b   : > { %v7055_v4 = vpop.f32.mrb[22].mxu1  ;;  %v7057_v15 = vpop.f32.mrb[22].mxu0  ;;  %v2605_v2 = vshll.u32 %v5206_v55, 16  ;;  %v2601_v17 = vrot.slane %v2599_v1, 5  ;;  %v2609_v47 = vshrl.u32 %v5206_v55, 16  ;;  %v2615_v44 = vshll.u32 %v5207_v6, 16 }
 0x12c   : > { %v7059_v11 = vpop.f32.mrb[23].mxu1  ;;  %v7066_v18 = vpop.f32.mrb[23].mxu0  ;;  %7842 = vst [vmem:[#allocation12_spill] sm:$0xff] %v7194_v23  ;;  %4405 = vmatprep.mubr.bf16.mxu1 %v5230_v63  ;;  %v5290_v28 = vrot.slane %v5254_v57, 9  ;;  %5889 = vmatmul.mubr.bf16.gmra.mrb[120].mxu0 %v5305_v62  ;;  %v2935_v43 = vrot.slane %v5255_v37, 5  ;;  %v2938_v27 = vrot.slane %v5256_v34, 5 }
 0x12d   : > { %4406 = vmatmul.mubr.bf16.gmra.mrb[120].mxu1 %v6051_v46  ;;  %v2607_v3 = vrot.slane %v2605_v2, 5  ;;  %v5291_v40 = vrot.slane %v5257_v36, 9  ;;  %v2602_v58 = vor.u32 %v2601_v17, %v2598_v13  ;;  %v2611_v33 = vrot.slane %v2609_v47, 4  ;;  %v5208_v36 = vld [vmem:[%s6137_s16 + $0xa8] sm:$0xf] }
 0x12e   : > { %v2617_v53 = vrot.slane %v2615_v44, 5  ;;  %v2942_v45 = vrot.slane %v5258_v60, 5  ;;  %v2936_v55 = vsel %vm6302_vm5, %v5290_v28, %v2935_v43  ;;  %v2937_v6 = vrot.slane %v2935_v43, 4  ;;  %v5209_v62 = vld [vmem:[%s6137_s16 + $0xac] sm:$0xf] }
 0x12f   : > { %v2945_v57 = vrot.slane %v5259_v8, 5  ;;  %v7206_v46 = vadd.f32 %v7053_v5, %v7049_v9  ;;  %v2603_v63 = vrot.slane %v2602_v58, 4  ;;  %v2612_v37 = vor.u32 %v2611_v33, %v2607_v3  ;;  %v5210_v2 = vld [vmem:[%s6137_s16 + $0xb0] sm:$0x1]  ;;  %v5263_v58 = vld [vmem:[%s6137_s16 + $0x84] sm:$0xe] }
 0x130   : > { %v2943_v34 = vsel %vm6302_vm5, %v5291_v40, %v2942_v45  ;;  %v2944_v1 = vrot.slane %v2942_v45, 4  ;;  %v7214_v13 = vadd.f32 %v7072_v24, %v7064_v16  ;;  %v2939_v8 = vsel %vm6302_vm5, %v2937_v6, %v2938_v27  ;;  %v5260_v45 = vld [vmem:[%s6137_s16 + $0x78] sm:$0xe]  ;;  %v5262_v40 = vld [vmem:[%s6137_s16 + $0x80] sm:$0x1] }
 0x131   : > { %v7107_v30 = vpop.f32.mrb[24].mxu1  ;;  %v7119_v29 = vpop.f32.mrb[24].mxu0  ;;  %v5528_v9 = vadd.f32 %v7051_v54, %v7046_v56  ;;  %v7222_v5 = vadd.f32 %v7066_v18, %v7057_v15  ;;  %v2608_v24 = vsel %vm6162_vm2, %v2603_v63, %v2607_v3  ;;  %v2613_v47 = vrot.slane %v2612_v37, 4  ;;  %v5261_v54 = vld [vmem:[%s6137_s16 + $0x7c] sm:$0xf] }
 0x132   : > { %v7121_v38 = vpop.f32.mrb[25].mxu1  ;;  %v7124_v41 = vpop.f32.mrb[25].mxu0  ;;  %v5306_v44 = vcombine.low %v2936_v55, %v2939_v8  ;;  %v2946_v56 = vsel %vm6302_vm5, %v2944_v1, %v2945_v57  ;;  %v7241_v28 = vadd.f32 %v7092_v48, %v7064_v16  ;;  %v5531_v3 = vadd.f32 %v7059_v11, %v7055_v4  ;;  %v6052_v48 = vld [vmem:[%s6137_s16 + $0x9c] sm:$0xff]  }
 0x133   : > { %v7126_v49 = vpop.f32.mrb[26].mxu1  ;;  %v7132_v14 = vpop.f32.mrb[26].mxu0  ;;  %v5307_v43 = vcombine.low %v2943_v34, %v2946_v56  ;;  %v7244_v27 = vadd.f32 %v5528_v9, %v7111_v39  ;;  %v2618_v6 = vsel %vm6162_vm2, %v2613_v47, %v2617_v53  ;;  %v2620_v57 = vshrl.u32 %v5208_v36, 16  ;;  %v5264_v9 = vld [vmem:[%s6137_s16 + $0x88] sm:$0xf] }
 0x134   : > { %v7134_v26 = vpop.f32.mrb[27].mxu1  ;;  %v7136_v10 = vpop.f32.mrb[27].mxu0  ;;  %5892 = vmatprep.mubr.bf16.mxu0 %v5306_v44  ;;  %v2623_v63 = vshll.u32 %v5208_v36, 16  ;;  %v2629_v39 = vshll.u32 %v5209_v62, 16  ;;  %v5231_v4 = vcombine.low %v2608_v24, %v2618_v6  ;;  %v7262_v11 = vadd.f32 %v5531_v3, %v7130_v12  ;;  %v5265_v56 = vld [vmem:[%s6137_s16 + $0x8c] sm:$0x1] }
 0x135   : > { %7843 = vst [vmem:[#allocation13_spill] sm:$0xff] %v7244_v27  ;;  %5893 = vmatmul.mubr.bf16.gmra.mrb[124].mxu0 %v5307_v43  ;;  %v2633_v1 = vshrl.u32 %v5209_v62, 16  ;;  %v2639_v8 = vshll.u32 %v5210_v2, 16  ;;  %v2622_v25 = vrot.slane %v2620_v57, 4  ;;  %v5292_v44 = vrot.slane %v5260_v45, 9 }
 0x136   : > { %7844 = vst [vmem:[#allocation14_spill] sm:$0xff] %v7262_v11  ;;  %v2625_v53 = vrot.slane %v2623_v63, 5  ;;  %v2631_v47 = vrot.slane %v2629_v39, 5  ;;  %4413 = vmatprep.mubr.bf16.mxu1 %v5231_v4  ;;  %v2949_v23 = vrot.slane %v5261_v54, 5  ;;  %v2952_v32 = vrot.slane %v5262_v40, 5 }
 0x137   : > { %v2635_v36 = vrot.slane %v2633_v1, 4  ;;  %v2641_v27 = vrot.slane %v2639_v8, 5  ;;  %4414 = vmatmul.mubr.bf16.gmra.mrb[124].mxu1 %v6052_v48  ;;  %v5293_v43 = vrot.slane %v5263_v58, 9  ;;  %v2956_v6 = vrot.slane %v5264_v9, 5  ;;  %v5211_v63 = vld [vmem:[%s6137_s16 + $0xb4] sm:$0xf] }
 0x138   : > { %v2626_v24 = vor.u32 %v2625_v53, %v2622_v25  ;;  %v2959_v12 = vrot.slane %v5265_v56, 5  ;;  %v2950_v2 = vsel %vm6302_vm5, %v5292_v44, %v2949_v23  ;;  %v2951_v45 = vrot.slane %v2949_v23, 4  ;;  %v6053_v1 = vld [vmem:[%s6137_s16 + $0xa8] sm:$0xff]  }
 0x139   : > { %v7166_v7 = vpop.f32.mrb[28].mxu0  ;;  %v7168_v20 = vpop.f32.mrb[28].mxu1  ;;  %v2636_v62 = vor.u32 %v2635_v36, %v2631_v47  ;;  %v7272_v57 = vadd.f32 %v7124_v41, %v7119_v29  ;;  %v2957_v25 = vsel %vm6302_vm5, %v5293_v43, %v2956_v6  ;;  %v2958_v58 = vrot.slane %v2956_v6, 4  ;;  %v5267_v6 = vld [vmem:[%s6137_s16 + $0x94] sm:$0xf] }
 0x13a   : > { %v7178_v50 = vpop.f32.mrb[29].mxu0  ;;  %v7180_v61 = vpop.f32.mrb[29].mxu1  ;;  %v2627_v40 = vrot.slane %v2626_v24, 4  ;;  %v5534_v48 = vadd.f32 %v7121_v38, %v7107_v30  ;;  %v7287_v29 = vadd.f32 %v7145_v21, %v7064_v16  ;;  %v2953_v4 = vsel %vm6302_vm5, %v2951_v45, %v2952_v32  ;;  %v5212_v30 = vld [vmem:[%s6137_s16 + $0xb8] sm:$0xf] }
 0x13b   : > { %v7189_v22 = vpop.f32.mrb[30].mxu0  ;;  %v7191_v59 = vpop.f32.mrb[30].mxu1  ;;  %v2637_v41 = vrot.slane %v2636_v62, 4  ;;  %v7294_v8 = vadd.f32 %v7136_v10, %v7132_v14  ;;  %v5308_v56 = vcombine.low %v2950_v2, %v2953_v4  ;;  %v2960_v32 = vsel %vm6302_vm5, %v2958_v58, %v2959_v12  ;;  %v5213_v10 = vld [vmem:[%s6137_s16 + $0xbc] sm:$0x1] }
 0x13c   : > { %v7197_v42 = vpop.f32.mrb[31].mxu0  ;;  %v7199_v0 = vpop.f32.mrb[31].mxu1  ;;  %v2632_v21 = vsel %vm6162_vm2, %v2627_v40, %v2631_v47  ;;  %v7306_v53 = vadd.f32 %v5534_v48, %v7152_v51  ;;  %v5266_v14 = vld [vmem:[%s6137_s16 + $0x90] sm:$0xe]  ;;  %v7316_v24 = vadd.f32 %v7163_v52, %v7064_v16  ;;  %v5309_v43 = vcombine.low %v2957_v25, %v2960_v32  ;;  %v5268_v12 = vld [vmem:[%s6137_s16 + $0x98] sm:$0x1] }
 0x13d   : > { %v2642_v47 = vsel %vm6162_vm2, %v2637_v41, %v2641_v27  ;;  %v5537_v51 = vadd.f32 %v7134_v26, %v7126_v49  ;;  %v5269_v62 = vld [vmem:[%s6137_s16 + $0x9c] sm:$0xe]  ;;  %5896 = vmatprep.mubr.bf16.mxu0 %v5308_v56  ;;  %v2644_v45 = vshrl.u32 %v5211_v63, 16  ;;  %v2647_v40 = vshll.u32 %v5211_v63, 16  ;;  %v5270_v48 = vld [vmem:[%s6137_s16 + $0xa0] sm:$0xf] }
 0x13e   : > { %7845 = vst [vmem:[#allocation15_spill] sm:$0xff] %v7306_v53  ;;  %v5232_v2 = vcombine.low %v2632_v21, %v2642_v47  ;;  %v2653_v58 = vshll.u32 %v5212_v30, 16  ;;  %5897 = vmatmul.mubr.bf16.gmra.mrb[128].mxu0 %v5309_v43  ;;  %v2657_v4 = vshrl.u32 %v5212_v30, 16  ;;  %v2663_v27 = vshll.u32 %v5213_v10, 16  ;;  %v5271_v41 = vld [vmem:[%s6137_s16 + $0xa4] sm:$0x1] }
 0x13f   : > { %v7327_v52 = vadd.f32 %v5537_v51, %v7184_v19  ;;  %v5294_v25 = vrot.slane %v5266_v14, 9  ;;  %v2646_v49 = vrot.slane %v2644_v45, 4  ;;  %v2649_v26 = vrot.slane %v2647_v40, 5 }
 0x140   : > { %4421 = vmatprep.mubr.bf16.mxu1 %v5232_v2  ;;  %v2655_v53 = vrot.slane %v2653_v58, 5  ;;  %v2963_v21 = vrot.slane %v5267_v6, 5  ;;  %v2659_v47 = vrot.slane %v2657_v4, 4  ;;  %v2665_v43 = vrot.slane %v2663_v27, 5 }
 0x141   : > { %v7226_v60 = vpop.f32.mrb[32].mxu0  ;;  %v7228_v17 = vpop.f32.mrb[32].mxu1  ;;  %7846 = vst [vmem:[#allocation16_spill] sm:$0xff] %v7327_v52  ;;  %4422 = vmatmul.mubr.bf16.gmra.mrb[128].mxu1 %v6053_v1  ;;  %v2966_v19 = vrot.slane %v5268_v12, 5  ;;  %v5295_v51 = vrot.slane %v5269_v62, 9  ;;  %v2650_v14 = vor.u32 %v2649_v26, %v2646_v49  ;;  %v2970_v6 = vrot.slane %v5270_v48, 5 }
 0x142   : > { %v7235_v15 = vpop.f32.mrb[33].mxu0  ;;  %v7237_v18 = vpop.f32.mrb[33].mxu1  ;;  %v2964_v2 = vsel %vm6302_vm5, %v5294_v25, %v2963_v21  ;;  %v2965_v45 = vrot.slane %v2963_v21, 4  ;;  %v2660_v1 = vor.u32 %v2659_v47, %v2655_v53  ;;  %v2973_v12 = vrot.slane %v5271_v41, 5  ;;  %v5214_v26 = vld [vmem:[%s6137_s16 + $0xc0] sm:$0xf] }
 0x143   : > { %v7250_v33 = vpop.f32.mrb[34].mxu0  ;;  %v7252_v55 = vpop.f32.mrb[34].mxu1  ;;  %v7348_v62 = vadd.f32 %v7178_v50, %v7166_v7  ;;  %v5540_v4 = vadd.f32 %v7180_v61, %v7168_v20  ;;  %v2651_v25 = vrot.slane %v2650_v14, 4  ;;  %v2971_v49 = vsel %vm6302_vm5, %v5295_v51, %v2970_v6  ;;  %v6054_v61 = vld [vmem:[%s6137_s16 + $0xb4] sm:$0xff]   ;;  %v5215_v47 = vld [vmem:[%s6137_s16 + $0xc4] sm:$0xf] }
 0x144   : > { %v7257_v37 = vpop.f32.mrb[35].mxu0  ;;  %v7259_v34 = vpop.f32.mrb[35].mxu1  ;;  %v2967_v48 = vsel %vm6302_vm5, %v2965_v45, %v2966_v19  ;;  %v2972_v41 = vrot.slane %v2970_v6, 4  ;;  %v7361_v7 = vadd.f32 %v7206_v46, %v7064_v16  ;;  %v2661_v50 = vrot.slane %v2660_v1, 4  ;;  %v5272_v45 = vld [vmem:[%s6137_s16 + $0xa8] sm:$0xe] }
 0x145   : > { %v5310_v20 = vcombine.low %v2964_v2, %v2967_v48  ;;  %v7365_v21 = vadd.f32 %v5540_v4, %v7214_v13  ;;  %v2656_v19 = vsel %vm6162_vm2, %v2651_v25, %v2655_v53  ;;  %v7374_v14 = vadd.f32 %v7197_v42, %v7189_v22  ;;  %v5216_v2 = vld [vmem:[%s6137_s16 + $0xc8] sm:$0x1]  ;;  %v5273_v13 = vld [vmem:[%s6137_s16 + $0xac] sm:$0xf]  ;;  %v5275_v25 = vld [vmem:[%s6137_s16 + $0xb4] sm:$0xe] }
 0x146   : > { %v2974_v51 = vsel %vm6302_vm5, %v2972_v41, %v2973_v12  ;;  %v5543_v46 = vadd.f32 %v7199_v0, %v7191_v59  ;;  %v2666_v6 = vsel %vm6162_vm2, %v2661_v50, %v2665_v43  ;;  %v2668_v1 = vshrl.u32 %v5214_v26, 16  ;;  %v5274_v12 = vld [vmem:[%s6137_s16 + $0xb0] sm:$0x1]  ;;  %v5276_v48 = vld [vmem:[%s6137_s16 + $0xb8] sm:$0xf] }
 0x147   : > { %7847 = vst [vmem:[#allocation17_spill] sm:$0xff] %v7365_v21  ;;  %5900 = vmatprep.mubr.bf16.mxu0 %v5310_v20  ;;  %v5311_v53 = vcombine.low %v2971_v49, %v2974_v51  ;;  %v2671_v4 = vshll.u32 %v5214_v26, 16  ;;  %v7387_v22 = vadd.f32 %v7222_v5, %v7064_v16  ;;  %v5233_v42 = vcombine.low %v2656_v19, %v2666_v6  ;;  %v5277_v41 = vld [vmem:[%s6137_s16 + $0xbc] sm:$0x1] }
 0x148   : > { %v7390_v59 = vadd.f32 %v5543_v46, %v7241_v28  ;;  %v2677_v0 = vshll.u32 %v5215_v47, 16  ;;  %v2670_v21 = vrot.slane %v2668_v1, 4  ;;  %v2681_v50 = vshrl.u32 %v5215_v47, 16 }
 0x149   : > { %v7266_v3 = vpop.f32.mrb[36].mxu0  ;;  %v7274_v54 = vpop.f32.mrb[36].mxu1  ;;  %5901 = vmatmul.mubr.bf16.gmra.mrb[132].mxu0 %v5311_v53  ;;  %v2673_v43 = vrot.slane %v2671_v4, 5  ;;  %v2687_v49 = vshll.u32 %v5216_v2, 16  ;;  %4429 = vmatprep.mubr.bf16.mxu1 %v5233_v42  ;;  %v5296_v51 = vrot.slane %v5272_v45, 9  ;;  %v2977_v52 = vrot.slane %v5273_v13, 5 }
 0x14a   : > { %v7281_v39 = vpop.f32.mrb[37].mxu0  ;;  %v7283_v23 = vpop.f32.mrb[37].mxu1  ;;  %7848 = vst [vmem:[#allocation18_spill] sm:$0xff] %v7390_v59  ;;  %v2679_v26 = vrot.slane %v2677_v0, 5  ;;  %v2980_v5 = vrot.slane %v5274_v12, 5  ;;  %4430 = vmatmul.mubr.bf16.gmra.mrb[132].mxu1 %v6054_v61  ;;  %v2683_v46 = vrot.slane %v2681_v50, 4  ;;  %v5546_v0 = vadd.f32 %v7237_v18, %v7228_v17 }
 0x14b   : > { %v7297_v38 = vpop.f32.mrb[38].mxu0  ;;  %v7299_v9 = vpop.f32.mrb[38].mxu1  ;;  %v2674_v28 = vor.u32 %v2673_v43, %v2670_v21  ;;  %v2689_v6 = vrot.slane %v2687_v49, 5  ;;  %v5297_v53 = vrot.slane %v5275_v25, 9  ;;  %v2978_v2 = vsel %vm6302_vm5, %v5296_v51, %v2977_v52 }
 0x14c   : > { %v7310_v44 = vpop.f32.mrb[39].mxu0  ;;  %v7312_v36 = vpop.f32.mrb[39].mxu1  ;;  %v2979_v45 = vrot.slane %v2977_v52, 4  ;;  %v2984_v13 = vrot.slane %v5276_v48, 5  ;;  %v2987_v4 = vrot.slane %v5277_v41, 5  ;;  %v2684_v21 = vor.u32 %v2683_v46, %v2679_v26 }
 0x14d   : > { %v2675_v61 = vrot.slane %v2674_v28, 4  ;;  %v7412_v25 = vadd.f32 %v7235_v15, %v7226_v60  ;;  %v7424_v50 = vadd.f32 %v7257_v37, %v7250_v33  ;;  %v5217_v60 = vld [vmem:[%s6137_s16 + $0xcc] sm:$0xf]  ;;  %v5218_v15 = vld [vmem:[%s6137_s16 + $0xd0] sm:$0xf]  ;;  %v7430_v17 = vadd.f32 %v7272_v57, %v7064_v16 }
 0x14e   : > { %v2981_v52 = vsel %vm6302_vm5, %v2979_v45, %v2980_v5  ;;  %v2985_v48 = vsel %vm6302_vm5, %v5297_v53, %v2984_v13  ;;  %v2986_v41 = vrot.slane %v2984_v13, 4  ;;  %v2685_v49 = vrot.slane %v2684_v21, 4  ;;  %v5219_v5 = vld [vmem:[%s6137_s16 + $0xd4] sm:$0x1]  ;;  %v5278_v28 = vld [vmem:[%s6137_s16 + $0xc0] sm:$0xe] }
 0x14f   : > { %v2680_v18 = vsel %vm6162_vm2, %v2675_v61, %v2679_v26  ;;  %v5312_v51 = vcombine.low %v2978_v2, %v2981_v52  ;;  %v7438_v46 = vadd.f32 %v7294_v8, %v7064_v16  ;;  %v7443_v37 = vadd.f32 %v5546_v0, %v7287_v29  ;;  %v5279_v26 = vld [vmem:[%s6137_s16 + $0xc4] sm:$0xf]  ;;  %v5280_v53 = vld [vmem:[%s6137_s16 + $0xc8] sm:$0x1]  ;;  %v5281_v2 = vld [vmem:[%s6137_s16 + $0xcc] sm:$0xe] }
 0x150   : > { %v2988_v33 = vsel %vm6302_vm5, %v2986_v41, %v2987_v4  ;;  %v5549_v57 = vadd.f32 %v7259_v34, %v7252_v55  ;;  %v2690_v45 = vsel %vm6162_vm2, %v2685_v49, %v2689_v6  ;;  %v6055_v13 = vld [vmem:[%s6137_s16 + $0xc0] sm:$0xff]   ;;  %v2692_v61 = vshrl.u32 %v5217_v60, 16  ;;  %v5282_v52 = vld [vmem:[%s6137_s16 + $0xd0] sm:$0xf]  ;;  %v5283_v41 = vld [vmem:[%s6137_s16 + $0xd4] sm:$0x1] }
 0x151   : > { %v7330_v32 = vpop.f32.mrb[40].mxu1  ;;  %v7332_v56 = vpop.f32.mrb[40].mxu0  ;;  %7850 = vst [vmem:[#allocation20_spill] sm:$0xff] %v7443_v37  ;;  %5904 = vmatprep.mubr.bf16.mxu0 %v5312_v51  ;;  %v5313_v8 = vcombine.low %v2985_v48, %v2988_v33  ;;  %v2695_v21 = vshll.u32 %v5217_v60, 16  ;;  %v5234_v29 = vcombine.low %v2680_v18, %v2690_v45  ;;  %v2701_v55 = vshll.u32 %v5218_v15, 16 }
 0x152   : > { %v7334_v63 = vpop.f32.mrb[41].mxu1  ;;  %v7336_v30 = vpop.f32.mrb[41].mxu0  ;;  %v7457_v0 = vadd.f32 %v5549_v57, %v7316_v24  ;;  %v2705_v34 = vshrl.u32 %v5218_v15, 16  ;;  %v2694_v59 = vrot.slane %v2692_v61, 4  ;;  %v2711_v49 = vshll.u32 %v5219_v5, 16 }
 0x153   : > { %v7338_v10 = vpop.f32.mrb[42].mxu1  ;;  %v7342_v40 = vpop.f32.mrb[42].mxu0  ;;  %5905 = vmatmul.mubr.bf16.gmra.mrb[136].mxu0 %v5313_v8  ;;  %v2697_v6 = vrot.slane %v2695_v21, 5  ;;  %v5298_v51 = vrot.slane %v5278_v28, 9  ;;  %4437 = vmatprep.mubr.bf16.mxu1 %v5234_v29  ;;  %v2703_v60 = vrot.slane %v2701_v55, 5  ;;  %v2994_v18 = vrot.slane %v5280_v53, 5 }
 0x154   : > { %v7344_v58 = vpop.f32.mrb[43].mxu1  ;;  %v7352_v27 = vpop.f32.mrb[43].mxu0  ;;  %7852 = vst [vmem:[#allocation22_spill] sm:$0xff] %v7457_v0  ;;  %v2707_v33 = vrot.slane %v2705_v34, 4  ;;  %4438 = vmatmul.mubr.bf16.gmra.mrb[136].mxu1 %v6055_v13  ;;  %v2713_v15 = vrot.slane %v2711_v49, 5  ;;  %v5299_v0 = vrot.slane %v5281_v2, 9  ;;  %v5552_v55 = vadd.f32 %v7283_v23, %v7274_v54 }
 0x155   : > { %v2698_v57 = vor.u32 %v2697_v6, %v2694_v59  ;;  %v3001_v61 = vrot.slane %v5283_v41, 5  ;;  %v5464_v59 = vadd.f32 %v7281_v39, %v7266_v3  ;;  %v3901_v34 = vadd.f32 %v7348_v62, %v7064_v16  ;;  %v6056_v23 = vld [vmem:[%s6137_s16 + $0xcc] sm:$0xff]  }
 0x156   : > { %v2708_v8 = vor.u32 %v2707_v33, %v2703_v60  ;;  %v3904_v41 = vadd.f32 %v7374_v14, %v7064_v16  ;;  %v5555_v49 = vadd.f32 %v7312_v36, %v7299_v9  ;;  %v5470_v31 = vadd.f32 %v7336_v30, %v7332_v56 }
 0x157   : > { %v2699_v29 = vrot.slane %v2698_v57, 4  ;;  %v5558_v14 = vadd.f32 %v7334_v63, %v7330_v32  ;;  %v5473_v35 = vadd.f32 %v7352_v27, %v7342_v40  ;;  %v3909_v56 = vadd.f32 %v7412_v25, %v7064_v16 }
 0x158   : > { %v2709_v2 = vrot.slane %v2708_v8, 4  ;;  %v7507_v32 = vadd.f32 %v5555_v49, %v7387_v22  ;;  %v7857_v8 = vld [vmem:[#allocation11_spill] sm:$0xff] }
 0x159   : > { %v7394_v20 = vpop.f32.mrb[44].mxu1  ;;  %v7396_v11 = vpop.f32.mrb[44].mxu0  ;;  %v7510_v63 = vadd.f32 %v5558_v14, %v7430_v17 }
 0x15a   : > { %v7398_v19 = vpop.f32.mrb[45].mxu1  ;;  %v7400_v1 = vpop.f32.mrb[45].mxu0  ;;  %v2714_v54 = vsel %vm6162_vm2, %v2709_v2, %v2713_v15 }
 0x15b   : > { %v7402_v47 = vpop.f32.mrb[46].mxu1  ;;  %v7406_v12 = vpop.f32.mrb[46].mxu0  ;;  %v5564_v9 = vadd.f32 %v7398_v19, %v7394_v20 }
 0x15c   : > { %v7408_v42 = vpop.f32.mrb[47].mxu1  ;;  %v7416_v43 = vpop.f32.mrb[47].mxu0 }
 0x15d   : > { %7849 = vst [vmem:[#allocation19_spill] sm:$0xff] %v7408_v42  ;;  %v2998_v42 = vrot.slane %v5282_v52, 5  ;;  %v5479_v30 = vadd.f32 %v7416_v43, %v7406_v12 }
 0x15f   : > { %v3000_v53 = vrot.slane %v2998_v42, 4 }
 0x161   : > { %v7454_v4 = vpop.f32.mrb[48].mxu1  ;;  %v5632_v45 = vpop.f32.mrb[48].mxu0  ;;  %v3002_v3 = vsel %vm6302_vm5, %v3000_v53, %v3001_v61  ;;  %v3925_v53 = vadd.f32 %v5470_v31, %v7064_v16 }
 0x162   : > { %7851 = vst [vmem:[#allocation21_spill] sm:$0xff] %v7454_v4  ;;  %v7460_v37 = vpop.f32.mrb[49].mxu1  ;;  %v2991_v4 = vrot.slane %v5279_v26, 5  ;;  %v2999_v26 = vsel %vm6302_vm5, %v5299_v0, %v2998_v42  ;;  %v2704_v42 = vsel %vm6162_vm2, %v2699_v29, %v2703_v60  ;;  %v5476_v60 = vadd.f32 %v7400_v1, %v7396_v11 }
 0x163   : > { %7853 = vst [vmem:[#allocation23_spill] sm:$0xff] %v7460_v37  ;;  %v7462_v48 = vpop.f32.mrb[50].mxu1  ;;  %v5633_v37 = vpop.f32.mrb[49].mxu0  ;;  %v5315_v6 = vcombine.low %v2999_v26, %v3002_v3  ;;  %v5235_v62 = vcombine.low %v2704_v42, %v2714_v54  ;;  %v3912_v11 = vadd.f32 %v7424_v50, %v7064_v16  ;;  %v7860_v42 = vld [vmem:[#allocation14_spill] sm:$0xff] }
 0x164   : > { %v5572_v24 = vpop.f32.mrb[51].mxu1  ;;  %v2992_v5 = vsel %vm6302_vm5, %v5298_v51, %v2991_v4  ;;  %v2993_v28 = vrot.slane %v2991_v4, 4  ;;  %v5635_v21 = vpop.f32.mrb[50].mxu0  ;;  %v5467_v4 = vadd.f32 %v7310_v44, %v7297_v38  ;;  %v7488_v38 = vadd.f32 %v5552_v55, %v7361_v7  ;;  %v7854_v22 = vld [vmem:[#allocation19_spill] sm:$0xff] }
 0x165   : > { %v5636_v13 = vpop.f32.mrb[51].mxu0  ;;  %v5561_v7 = vadd.f32 %v7344_v58, %v7338_v10  ;;  %4445 = vmatprep.mubr.bf16.mxu1 %v5235_v62  ;;  %v3917_v10 = vadd.f32 %v5464_v59, %v7064_v16  ;;  %v7520_v58 = vadd.f32 %v5564_v9, %v3901_v34  ;;  %v5567_v20 = vadd.f32 %v7854_v22, %v7402_v47  ;;  %v7859_v59 = vld [vmem:[#allocation13_spill] sm:$0xff]  ;;  %v7862_v22 = vld [vmem:[#allocation16_spill] sm:$0xff] }
 0x166   : > { %v2995_v52 = vsel %vm6302_vm5, %v2993_v28, %v2994_v18  ;;  %4446 = vmatmul.mubr.bf16.gmra.mrb[140].mxu1 %v6056_v23  ;;  %v3920_v27 = vadd.f32 %v5467_v4, %v7064_v16  ;;  %v5634_v12 = vadd.f32 %v5633_v37, %v5632_v45  ;;  %v5573_v50 = vadd.f32 %v5572_v24, %v7462_v48  ;;  %v7858_v37 = vld [vmem:[#allocation12_spill] sm:$0xff] }
 0x167   : > { %v5314_v0 = vcombine.low %v2992_v5, %v2995_v52  ;;  %v7518_v40 = vadd.f32 %v5561_v7, %v7438_v46  ;;  %v5637_v17 = vadd.f32 %v5636_v13, %v5635_v21  ;;  %v7528_v46 = vadd.f32 %v5567_v20, %v3904_v41 }
 0x168   : > { %v7533_v5 = vadd.f32 %v5634_v12, %v7857_v8  ;;  %v7535_v29 = vadd.f32 %v5573_v50, %v3912_v11  ;;  %v3928_v34 = vadd.f32 %v5473_v35, %v7064_v16  ;;  %v3933_v31 = vadd.f32 %v5476_v60, %v7064_v16  ;;  %v7861_v35 = vld [vmem:[#allocation15_spill] sm:$0xff]  ;;  %v7864_v8 = vld [vmem:[#allocation17_spill] sm:$0xff] }
 0x169   : > { %v5574_v39 = vpop.f32.mrb[52].mxu1  ;;  %5908 = vmatprep.mubr.bf16.mxu0 %v5314_v0  ;;  %v7855_v19 = vld [vmem:[#allocation21_spill] sm:$0xff]  ;;  %v5638_v43 = vpop.f32.mrb[52].mxu0  ;;  %v7538_v45 = vadd.f32 %v5637_v17, %v7858_v37  ;;  %v3936_v11 = vadd.f32 %v5479_v30, %v7064_v16  ;;  %v7863_v17 = vld [vmem:[#allocation3_spill] sm:$0xff]  ;;  %v7865_v37 = vld [vmem:[#allocation4_spill] sm:$0xff] }
 0x16a   : > { %v5575_v44 = vpop.f32.mrb[53].mxu1  ;;  %5909 = vmatmul.mubr.bf16.gmra.mrb[140].mxu0 %v5315_v6  ;;  %v7856_v1 = vld [vmem:[#allocation23_spill] sm:$0xff]  ;;  %v5639_v18 = vpop.f32.mrb[53].mxu0 }
 0x16b   : > { %v5577_v51 = vpop.f32.mrb[54].mxu1  ;;  %v5570_v25 = vadd.f32 %v7856_v1, %v7855_v19  ;;  %v5576_v33 = vadd.f32 %v5575_v44, %v5574_v39  ;;  %v5640_v28 = vadd.f32 %v5639_v18, %v5638_v43  ;;  %v5641_v47 = vpop.f32.mrb[54].mxu0 }
 0x16c   : > { %v5578_v36 = vpop.f32.mrb[55].mxu1  ;;  %v5642_v21 = vpop.f32.mrb[55].mxu0 }
 0x16d   : > { %v5579_v57 = vadd.f32 %v5578_v36, %v5577_v51  ;;  %v7530_v15 = vadd.f32 %v5570_v25, %v3909_v56  ;;  %v7540_v48 = vadd.f32 %v5576_v33, %v3917_v10  ;;  %v7546_v13 = vadd.f32 %v5640_v28, %v7859_v59  ;;  %v7866_v59 = vld [vmem:[#allocation18_spill] sm:$0xff] }
 0x16e   : > { %v5643_v2 = vadd.f32 %v5642_v21, %v5641_v47  ;;  %v3941_v33 = vadd.f32 %v7863_v17, %v7064_v16  ;;  %v3944_v21 = vadd.f32 %v7865_v37, %v7064_v16 }
 0x16f   : > { %v7542_v24 = vadd.f32 %v5579_v57, %v3920_v27 }
 0x170   : > { %v7550_v0 = vadd.f32 %v5643_v2, %v7860_v42 }
 0x171   : > { %v5580_v61 = vpop.f32.mrb[56].mxu1  ;;  %v5644_v54 = vpop.f32.mrb[56].mxu0 }
 0x172   : > { %v5581_v26 = vpop.f32.mrb[57].mxu1  ;;  %v5645_v23 = vpop.f32.mrb[57].mxu0 }
 0x173   : > { %v5582_v52 = vadd.f32 %v5581_v26, %v5580_v61  ;;  %v5583_v55 = vpop.f32.mrb[58].mxu1  ;;  %v5646_v44 = vadd.f32 %v5645_v23, %v5644_v54  ;;  %v5647_v62 = vpop.f32.mrb[58].mxu0  ;;  %v7867_v23 = vld [vmem:[#allocation5_spill] sm:$0xff] }
 0x174   : > { %v5584_v4 = vpop.f32.mrb[59].mxu1  ;;  %v5648_v14 = vpop.f32.mrb[59].mxu0 }
 0x175   : > { %v7552_v3 = vadd.f32 %v5582_v52, %v3925_v53  ;;  %v5585_v39 = vadd.f32 %v5584_v4, %v5583_v55  ;;  %v7558_v9 = vadd.f32 %v5646_v44, %v7861_v35  ;;  %v5649_v36 = vadd.f32 %v5648_v14, %v5647_v62  ;;  %v6057_v35 = vld [vmem:[%s7825_s2] ss:$0 sm:$0xff] }
 0x177   : > { %v7554_v41 = vadd.f32 %v5585_v39, %v3928_v34  ;;  %v7564_v20 = vadd.f32 %v5649_v36, %v7862_v22  ;;  %v7869_v36 = vld [vmem:[#allocation6_spill] sm:$0xff] }
 0x178   : > { %v7870_v22 = vld [vmem:[#allocation22_spill] sm:$0xff] }
 0x179   : > { %v5586_v6 = vpop.f32.mrb[60].mxu1  ;;  %v5650_v1 = vpop.f32.mrb[60].mxu0 }
 0x17a   : > { %v5587_v49 = vpop.f32.mrb[61].mxu1  ;;  %v5651_v60 = vpop.f32.mrb[61].mxu0 }
 0x17b   : > { %v5588_v51 = vadd.f32 %v5587_v49, %v5586_v6  ;;  %v5589_v7 = vpop.f32.mrb[62].mxu1  ;;  %v5652_v12 = vadd.f32 %v5651_v60, %v5650_v1  ;;  %v5653_v43 = vpop.f32.mrb[62].mxu0  ;;  %v3949_v6 = vadd.f32 %v7867_v23, %v7064_v16 }
 0x17c   : > { %v5590_v56 = vpop.f32.mrb[63].mxu1  ;;  %v5654_v18 = vpop.f32.mrb[63].mxu0 }
 0x17d   : > { %v7561_v10 = vadd.f32 %v5588_v51, %v3933_v31  ;;  %v5591_v27 = vadd.f32 %v5590_v56, %v5589_v7  ;;  %v7571_v28 = vadd.f32 %v5652_v12, %v7864_v8  ;;  %v5655_v47 = vadd.f32 %v5654_v18, %v5653_v43  ;;  %v7868_v31 = vld [vmem:[#allocation20_spill] sm:$0xff] }
 0x17e   : > { %v3952_v56 = vadd.f32 %v6057_v35, %v7869_v36  ;;  %v7872_v8 = vld [vmem:[#allocation8_spill] sm:$0xff] }
 0x17f   : > { %v7566_v19 = vadd.f32 %v5591_v27, %v3936_v11  ;;  %v7578_v2 = vadd.f32 %v5655_v47, %v7866_v59  ;;  %v3960_v47 = vadd.f32 %v6057_v35, %v7872_v8 }
 0x181   : > { %v5592_v25 = vpop.f32.mrb[64].mxu1  ;;  %v5656_v55 = vpop.f32.mrb[64].mxu0 }
 0x182   : > { %v5593_v50 = vpop.f32.mrb[65].mxu1  ;;  %v5657_v4 = vpop.f32.mrb[65].mxu0 }
 0x183   : > { %v5594_v57 = vadd.f32 %v5593_v50, %v5592_v25  ;;  %v5595_v30 = vpop.f32.mrb[66].mxu1  ;;  %v5658_v42 = vadd.f32 %v5657_v4, %v5656_v55  ;;  %v5659_v39 = vpop.f32.mrb[66].mxu0  ;;  %v7871_v50 = vld [vmem:[#allocation7_spill] sm:$0xff] }
 0x184   : > { %v5596_v61 = vpop.f32.mrb[67].mxu1  ;;  %v5660_v44 = vpop.f32.mrb[67].mxu0  ;;  %v3957_v17 = vadd.f32 %v6057_v35, %v7871_v50 }
 0x185   : > { %v7575_v26 = vadd.f32 %v5594_v57, %v3941_v33  ;;  %v5597_v53 = vadd.f32 %v5596_v61, %v5595_v30  ;;  %v7585_v14 = vadd.f32 %v5658_v42, %v7868_v31  ;;  %v5661_v51 = vadd.f32 %v5660_v44, %v5659_v39 }
 0x187   : > { %v7580_v52 = vadd.f32 %v5597_v53, %v3944_v21  ;;  %v7594_v1 = vadd.f32 %v5661_v51, %v7870_v22 }
 0x189   : > { %v5598_v34 = vpop.f32.mrb[68].mxu1  ;;  %v5662_v60 = vpop.f32.mrb[68].mxu0 }
 0x18a   : > { %v5599_v54 = vpop.f32.mrb[69].mxu1  ;;  %v5663_v12 = vpop.f32.mrb[69].mxu0 }
 0x18b   : > { %v5600_v62 = vadd.f32 %v5599_v54, %v5598_v34  ;;  %v5601_v49 = vpop.f32.mrb[70].mxu1  ;;  %v5664_v33 = vadd.f32 %v5663_v12, %v5662_v60  ;;  %v5665_v18 = vpop.f32.mrb[70].mxu0 }
 0x18c   : > { %v5602_v7 = vpop.f32.mrb[71].mxu1  ;;  %v5666_v61 = vpop.f32.mrb[71].mxu0 }
 0x18d   : > { %v7591_v11 = vadd.f32 %v5600_v62, %v3949_v6  ;;  %v5603_v27 = vadd.f32 %v5602_v7, %v5601_v49  ;;  %v7601_v21 = vadd.f32 %v5664_v33, %v7488_v38  ;;  %v5667_v53 = vadd.f32 %v5666_v61, %v5665_v18  ;;  %v7873_v62 = vld [vmem:[#allocation9_spill] sm:$0xff] }
 0x18e   : > { %v3965_v49 = vadd.f32 %v6057_v35, %v7873_v62 }
 0x18f   : > { %v7596_v16 = vadd.f32 %v5603_v27, %v3952_v56  ;;  %v7606_v4 = vadd.f32 %v5667_v53, %v7507_v32  ;;  %v7874_v32 = vld [vmem:[#allocation10_spill] sm:$0xff] }
 0x190   : > { %v3968_v27 = vadd.f32 %v6057_v35, %v7874_v32 }
 0x191   : > { %v5604_v25 = vpop.f32.mrb[72].mxu1  ;;  %v5668_v42 = vpop.f32.mrb[72].mxu0 }
 0x192   : > { %v5605_v43 = vpop.f32.mrb[73].mxu1  ;;  %v5669_v39 = vpop.f32.mrb[73].mxu0 }
 0x193   : > { %v5606_v57 = vadd.f32 %v5605_v43, %v5604_v25  ;;  %v5607_v30 = vpop.f32.mrb[74].mxu1  ;;  %v5670_v23 = vadd.f32 %v5669_v39, %v5668_v42  ;;  %v5671_v6 = vpop.f32.mrb[74].mxu0 }
 0x194   : > { %v5608_v37 = vpop.f32.mrb[75].mxu1  ;;  %v5672_v31 = vpop.f32.mrb[75].mxu0 }
 0x195   : > { %v7603_v59 = vadd.f32 %v5606_v57, %v3957_v17  ;;  %v5609_v55 = vadd.f32 %v5608_v37, %v5607_v30  ;;  %v7612_v7 = vadd.f32 %v5670_v23, %v7510_v63  ;;  %v5673_v36 = vadd.f32 %v5672_v31, %v5671_v6 }
 0x197   : > { %v7608_v34 = vadd.f32 %v5609_v55, %v3960_v47  ;;  %v7618_v25 = vadd.f32 %v5673_v36, %v7518_v40 }
 0x199   : > { %v5610_v54 = vpop.f32.mrb[76].mxu1  ;;  %v5674_v43 = vpop.f32.mrb[76].mxu0 }
 0x19a   : > { %v5611_v44 = vpop.f32.mrb[77].mxu1  ;;  %v5675_v50 = vpop.f32.mrb[77].mxu0 }
 0x19b   : > { %v5612_v38 = vadd.f32 %v5611_v44, %v5610_v54  ;;  %v5613_v51 = vpop.f32.mrb[78].mxu1  ;;  %v5676_v17 = vadd.f32 %v5675_v50, %v5674_v43  ;;  %v5677_v33 = vpop.f32.mrb[78].mxu0 }
 0x19c   : > { %v5614_v56 = vpop.f32.mrb[79].mxu1  ;;  %v5678_v18 = vpop.f32.mrb[79].mxu0 }
 0x19d   : > { %v7615_v22 = vadd.f32 %v5612_v38, %v3965_v49  ;;  %v5615_v60 = vadd.f32 %v5614_v56, %v5613_v51  ;;  %v7623_v63 = vadd.f32 %v5676_v17, %v7520_v58  ;;  %v5679_v57 = vadd.f32 %v5678_v18, %v5677_v33 }
 0x19f   : > { %v7620_v12 = vadd.f32 %v5615_v60, %v3968_v27  ;;  %v7626_v30 = vadd.f32 %v5679_v57, %v7528_v46 }
 0x1a1   : > { %v5744_v35 = vpop.f32.mrb[80].mxu1  ;;  %v5680_v37 = vpop.f32.mrb[80].mxu0 }
 0x1a2   : > { %v5745_v8 = vpop.f32.mrb[81].mxu1  ;;  %v5681_v42 = vpop.f32.mrb[81].mxu0 }
 0x1a3   : > { %v5746_v47 = vadd.f32 %v5745_v8, %v5744_v35  ;;  %v5747_v61 = vpop.f32.mrb[82].mxu1  ;;  %v5682_v39 = vadd.f32 %v5681_v42, %v5680_v37  ;;  %v5683_v54 = vpop.f32.mrb[82].mxu0 }
 0x1a4   : > { %v5748_v40 = vpop.f32.mrb[83].mxu1  ;;  %v5684_v23 = vpop.f32.mrb[83].mxu0 }
 0x1a5   : > { %v5749_v53 = vadd.f32 %v5748_v40, %v5747_v61  ;;  %v7629_v55 = vadd.f32 %v5746_v47, %v7533_v5  ;;  %v7635_v46 = vadd.f32 %v5682_v39, %v7530_v15  ;;  %v5685_v6 = vadd.f32 %v5684_v23, %v5683_v54 }
 0x1a7   : > { %v7632_v58 = vadd.f32 %v5749_v53, %v7538_v45  ;;  %v7638_v44 = vadd.f32 %v5685_v6, %v7535_v29 }
 0x1a9   : > { %v5750_v62 = vpop.f32.mrb[84].mxu1  ;;  %v5686_v51 = vpop.f32.mrb[84].mxu0 }
 0x1aa   : > { %v5751_v49 = vpop.f32.mrb[85].mxu1  ;;  %v5687_v45 = vpop.f32.mrb[85].mxu0 }
 0x1ab   : > { %v5752_v31 = vadd.f32 %v5751_v49, %v5750_v62  ;;  %v5753_v38 = vpop.f32.mrb[86].mxu1  ;;  %v5688_v32 = vadd.f32 %v5687_v45, %v5686_v51  ;;  %v5689_v27 = vpop.f32.mrb[86].mxu0 }
 0x1ac   : > { %v5754_v5 = vpop.f32.mrb[87].mxu1  ;;  %v5690_v60 = vpop.f32.mrb[87].mxu0 }
 0x1ad   : > { %v5755_v36 = vadd.f32 %v5754_v5, %v5753_v38  ;;  %v7641_v56 = vadd.f32 %v5752_v31, %v7546_v13  ;;  %v7647_v29 = vadd.f32 %v5688_v32, %v7540_v48  ;;  %v5691_v43 = vadd.f32 %v5690_v60, %v5689_v27 }
 0x1af   : > { %v7644_v15 = vadd.f32 %v5755_v36, %v7550_v0  ;;  %v7650_v50 = vadd.f32 %v5691_v43, %v7542_v24 }
 0x1b1   : > { %v5756_v17 = vpop.f32.mrb[88].mxu1  ;;  %v5692_v35 = vpop.f32.mrb[88].mxu0 }
 0x1b2   : > { %v5757_v33 = vpop.f32.mrb[89].mxu1  ;;  %v5693_v0 = vpop.f32.mrb[89].mxu0 }
 0x1b3   : > { %v5758_v18 = vadd.f32 %v5757_v33, %v5756_v17  ;;  %v5759_v57 = vpop.f32.mrb[90].mxu1  ;;  %v5694_v61 = vadd.f32 %v5693_v0, %v5692_v35  ;;  %v5695_v40 = vpop.f32.mrb[90].mxu0 }
 0x1b4   : > { %v5760_v13 = vpop.f32.mrb[91].mxu1  ;;  %v5696_v37 = vpop.f32.mrb[91].mxu0 }
 0x1b5   : > { %v5761_v8 = vadd.f32 %v5760_v13, %v5759_v57  ;;  %v7653_v47 = vadd.f32 %v5758_v18, %v7558_v9  ;;  %v7659_v24 = vadd.f32 %v5694_v61, %v7552_v3  ;;  %v5697_v53 = vadd.f32 %v5696_v37, %v5695_v40 }
 0x1b7   : > { %v7656_v48 = vadd.f32 %v5761_v8, %v7564_v20  ;;  %v7662_v42 = vadd.f32 %v5697_v53, %v7554_v41 }
 0x1b9   : > { %v5762_v39 = vpop.f32.mrb[92].mxu1 }
 0x1ba   : > { %v5763_v54 = vpop.f32.mrb[93].mxu1  ;;  %v5698_v62 = vpop.f32.mrb[92].mxu0 }
 0x1bb   : > { %v5764_v23 = vadd.f32 %v5763_v54, %v5762_v39  ;;  %v5765_v6 = vpop.f32.mrb[94].mxu1  ;;  %v5699_v20 = vpop.f32.mrb[93].mxu0 }
 0x1bc   : > { %v5766_v9 = vpop.f32.mrb[95].mxu1  ;;  %v5700_v38 = vadd.f32 %v5699_v20, %v5698_v62  ;;  %v5701_v5 = vpop.f32.mrb[94].mxu0 }
 0x1bd   : > { %v5767_v49 = vadd.f32 %v5766_v9, %v5765_v6  ;;  %v7665_v31 = vadd.f32 %v5764_v23, %v7571_v28  ;;  %v5702_v51 = vpop.f32.mrb[95].mxu0 }
 0x1be   : > { %v7671_v41 = vadd.f32 %v5700_v38, %v7561_v10  ;;  %v5703_v36 = vadd.f32 %v5702_v51, %v5701_v5 }
 0x1bf   : > { %v7668_v3 = vadd.f32 %v5767_v49, %v7578_v2 }
 0x1c0   : > { %v7674_v45 = vadd.f32 %v5703_v36, %v7566_v19 }
 0x1c2   : > { %v5768_v32 = vpop.f32.mrb[96].mxu1 }
 0x1c3   : > { %v5769_v27 = vpop.f32.mrb[97].mxu1 }
 0x1c4   : > { %v5770_v60 = vadd.f32 %v5769_v27, %v5768_v32  ;;  %v5771_v43 = vpop.f32.mrb[98].mxu1 }
 0x1c5   : > { %v5704_v28 = vpop.f32.mrb[96].mxu0  ;;  %v5772_v17 = vpop.f32.mrb[99].mxu1 }
 0x1c6   : > { %v5705_v33 = vpop.f32.mrb[97].mxu0  ;;  %v5773_v18 = vadd.f32 %v5772_v17, %v5771_v43  ;;  %v7677_v57 = vadd.f32 %v5770_v60, %v7585_v14 }
 0x1c7   : > { %v5706_v2 = vadd.f32 %v5705_v33, %v5704_v28  ;;  %v5707_v13 = vpop.f32.mrb[98].mxu0 }
 0x1c8   : > { %v5708_v35 = vpop.f32.mrb[99].mxu0  ;;  %v7680_v10 = vadd.f32 %v5773_v18, %v7594_v1 }
 0x1c9   : > { %v7683_v19 = vadd.f32 %v5706_v2, %v7575_v26  ;;  %v5709_v8 = vadd.f32 %v5708_v35, %v5707_v13 }
 0x1cb   : > { %v7686_v0 = vadd.f32 %v5709_v8, %v7580_v52 }
 0x1cc   : > { %v5774_v61 = vpop.f32.mrb[100].mxu1 }
 0x1cd   : > { %v5775_v40 = vpop.f32.mrb[101].mxu1 }
 0x1ce   : > { %v5776_v37 = vadd.f32 %v5775_v40, %v5774_v61  ;;  %v5777_v53 = vpop.f32.mrb[102].mxu1 }
 0x1cf   : > { %v5710_v39 = vpop.f32.mrb[100].mxu0  ;;  %v5778_v14 = vpop.f32.mrb[103].mxu1 }
 0x1d0   : > { %v5711_v54 = vpop.f32.mrb[101].mxu0  ;;  %v5779_v23 = vadd.f32 %v5778_v14, %v5777_v53  ;;  %v7689_v6 = vadd.f32 %v5776_v37, %v7601_v21 }
 0x1d1   : > { %v5712_v1 = vadd.f32 %v5711_v54, %v5710_v39  ;;  %v5713_v9 = vpop.f32.mrb[102].mxu0 }
 0x1d2   : > { %v5714_v62 = vpop.f32.mrb[103].mxu0  ;;  %v7692_v26 = vadd.f32 %v5779_v23, %v7606_v4 }
 0x1d3   : > { %v7695_v52 = vadd.f32 %v5712_v1, %v7591_v11  ;;  %v5715_v49 = vadd.f32 %v5714_v62, %v5713_v9 }
 0x1d5   : > { %v7698_v20 = vadd.f32 %v5715_v49, %v7596_v16 }
 0x1da   : > { %v5780_v38 = vpop.f32.mrb[104].mxu1 }
 0x1db   : > { %v5781_v5 = vpop.f32.mrb[105].mxu1 }
 0x1dc   : > { %v5782_v51 = vadd.f32 %v5781_v5, %v5780_v38  ;;  %v5783_v36 = vpop.f32.mrb[106].mxu1 }
 0x1dd   : > { %v5716_v32 = vpop.f32.mrb[104].mxu0  ;;  %v5784_v21 = vpop.f32.mrb[107].mxu1 }
 0x1de   : > { %v5717_v27 = vpop.f32.mrb[105].mxu0  ;;  %v5785_v60 = vadd.f32 %v5784_v21, %v5783_v36  ;;  %v7701_v43 = vadd.f32 %v5782_v51, %v7612_v7 }
 0x1df   : > { %v5718_v4 = vadd.f32 %v5717_v27, %v5716_v32  ;;  %v5719_v28 = vpop.f32.mrb[106].mxu0 }
 0x1e0   : > { %v5720_v17 = vpop.f32.mrb[107].mxu0  ;;  %v7704_v11 = vadd.f32 %v5785_v60, %v7618_v25 }
 0x1e1   : > { %v7707_v16 = vadd.f32 %v5718_v4, %v7603_v59  ;;  %v5721_v33 = vadd.f32 %v5720_v17, %v5719_v28 }
 0x1e3   : > { %v7710_v18 = vadd.f32 %v5721_v33, %v7608_v34  ;;  %v5786_v2 = vpop.f32.mrb[108].mxu1 }
 0x1e4   : > { %v5787_v13 = vpop.f32.mrb[109].mxu1 }
 0x1e5   : > { %v5788_v35 = vadd.f32 %v5787_v13, %v5786_v2  ;;  %v5789_v8 = vpop.f32.mrb[110].mxu1 }
 0x1e6   : > { %v5722_v7 = vpop.f32.mrb[108].mxu0  ;;  %v5790_v61 = vpop.f32.mrb[111].mxu1 }
 0x1e7   : > { %v5723_v40 = vpop.f32.mrb[109].mxu0  ;;  %v5791_v37 = vadd.f32 %v5790_v61, %v5789_v8  ;;  %v7713_v53 = vadd.f32 %v5788_v35, %v7623_v63 }
 0x1e8   : > { %v5724_v25 = vadd.f32 %v5723_v40, %v5722_v7  ;;  %v5725_v39 = vpop.f32.mrb[110].mxu0 }
 0x1e9   : > { %v5726_v59 = vpop.f32.mrb[111].mxu0  ;;  %v7716_v14 = vadd.f32 %v5791_v37, %v7626_v30 }
 0x1ea   : > { %v7719_v34 = vadd.f32 %v5724_v25, %v7615_v22  ;;  %v5727_v54 = vadd.f32 %v5726_v59, %v5725_v39 }
 0x1ec   : > { %v7723_v23 = vadd.f32 %v5727_v54, %v7620_v12 }
 0x1ed   : > { %v5792_v1 = vpop.f32.mrb[112].mxu1 }
 0x1ee   : > { %v5882_v63 = vpop.f32.mrb[112].mxu0  ;;  %v5793_v9 = vpop.f32.mrb[113].mxu1 }
 0x1ef   : > { %v4497_v30 = vadd.f32 %v5882_v63, %v7641_v56  ;;  %v4488_v22 = vpop.f32.mrb[113].mxu0  ;;  %v5794_v62 = vadd.f32 %v5793_v9, %v5792_v1  ;;  %v5795_v12 = vpop.f32.mrb[114].mxu1 }
 0x1f0   : > { %v4489_v49 = vadd.f32 %v4488_v22, %v7629_v55  ;;  %v5883_v38 = vpop.f32.mrb[114].mxu0  ;;  %v5796_v51 = vpop.f32.mrb[115].mxu1 }
 0x1f1   : > { %4617 = vst [vmem:[%s7728_s17 + $0x10] sm:$0xff] %v4497_v30  ;;  %v4500_v5 = vadd.f32 %v5883_v38, %v7644_v15  ;;  %v4491_v36 = vpop.f32.mrb[115].mxu0  ;;  %v5797_v32 = vadd.f32 %v5796_v51, %v5795_v12  ;;  %v7737_v27 = vadd.f32 %v5794_v62, %v7635_v46  ;;  %v4687_v28 = vmul.f32 %v4497_v30, %v4497_v30 }
 0x1f2   : > { %4615 = vst [vmem:[%s7728_s17] sm:$0xff] %v4489_v49  ;;  %v4492_v21 = vadd.f32 %v4491_v36, %v7632_v58  ;;  %v4685_v56 = vmul.f32 %v4489_v49, %v4489_v49 }
 0x1f3   : > { %4618 = vst [vmem:[%s7728_s17 + $0x18] sm:$0xff] %v4500_v5  ;;  %v7742_v4 = vadd.f32 %v5797_v32, %v7638_v44  ;;  %v4688_v46 = vmul.f32 %v4500_v5, %v4500_v5 }
 0x1f4   : > { %4616 = vst [vmem:[%s7728_s17 + $0x8] sm:$0xff] %v4492_v21  ;;  %v4647_v60 = vadd.f32 %v4492_v21, %v4489_v49  ;;  %v4686_v55 = vmul.f32 %v4492_v21, %v4492_v21 }
 0x1f6   : > { %v4648_v15 = vadd.f32 %v4647_v60, %v4497_v30  ;;  %v4717_v17 = vadd.f32 %v4686_v55, %v4685_v56  ;;  %v5886_v33 = vpop.f32.mrb[116].mxu0  ;;  %v5798_v2 = vpop.f32.mrb[116].mxu1 }
 0x1f7   : > { %v4513_v58 = vadd.f32 %v5886_v33, %v7665_v31  ;;  %v4504_v13 = vpop.f32.mrb[117].mxu0  ;;  %v5799_v8 = vpop.f32.mrb[117].mxu1 }
 0x1f8   : > { %v4718_v35 = vadd.f32 %v4717_v17, %v4687_v28  ;;  %v4505_v7 = vadd.f32 %v4504_v13, %v7653_v47  ;;  %v4649_v61 = vadd.f32 %v4648_v15, %v4500_v5  ;;  %v5887_v40 = vpop.f32.mrb[118].mxu0  ;;  %v5800_v44 = vadd.f32 %v5799_v8, %v5798_v2  ;;  %v5801_v37 = vpop.f32.mrb[118].mxu1 }
 0x1f9   : > { %4621 = vst [vmem:[%s7728_s17 + $0x30] sm:$0xff] %v4513_v58  ;;  %v4516_v25 = vadd.f32 %v5887_v40, %v7668_v3  ;;  %v4507_v39 = vpop.f32.mrb[119].mxu0  ;;  %v5802_v1 = vpop.f32.mrb[119].mxu1  ;;  %v4691_v3 = vmul.f32 %v4513_v58, %v4513_v58 }
 0x1fa   : > { %4619 = vst [vmem:[%s7728_s17 + $0x20] sm:$0xff] %v4505_v7  ;;  %v4650_v59 = vadd.f32 %v4649_v61, %v4505_v7  ;;  %v4689_v54 = vmul.f32 %v4505_v7, %v4505_v7  ;;  %v4719_v31 = vadd.f32 %v4718_v35, %v4688_v46  ;;  %v4508_v63 = vadd.f32 %v4507_v39, %v7656_v48 }
 0x1fb   : > { %4622 = vst [vmem:[%s7728_s17 + $0x38] sm:$0xff] %v4516_v25  ;;  %v5803_v30 = vadd.f32 %v5802_v1, %v5801_v37  ;;  %v7752_v47 = vadd.f32 %v5800_v44, %v7647_v29  ;;  %v4692_v5 = vmul.f32 %v4516_v25, %v4516_v25 }
 0x1fc   : > { %v4720_v9 = vadd.f32 %v4719_v31, %v4689_v54  ;;  %4620 = vst [vmem:[%s7728_s17 + $0x28] sm:$0xff] %v4508_v63  ;;  %v4651_v22 = vadd.f32 %v4650_v59, %v4508_v63  ;;  %v4690_v62 = vmul.f32 %v4508_v63, %v4508_v63 }
 0x1fd   : > { %v7756_v49 = vadd.f32 %v5803_v30, %v7650_v50 }
 0x1fe   : > { %v4652_v12 = vadd.f32 %v4651_v22, %v4513_v58  ;;  %v4721_v38 = vadd.f32 %v4720_v9, %v4690_v62 }
 0x1ff   : > { %v5890_v32 = vpop.f32.mrb[120].mxu0 }
 0x200   : > { %v4722_v51 = vadd.f32 %v4721_v38, %v4691_v3  ;;  %v4653_v48 = vadd.f32 %v4652_v12, %v4516_v25  ;;  %v5804_v36 = vpop.f32.mrb[120].mxu1  ;;  %v4529_v29 = vadd.f32 %v5890_v32, %v7689_v6  ;;  %v4520_v56 = vpop.f32.mrb[121].mxu0 }
 0x201   : > { %v5805_v21 = vpop.f32.mrb[121].mxu1  ;;  %v4521_v50 = vadd.f32 %v4520_v56, %v7677_v57  ;;  %v5891_v15 = vpop.f32.mrb[122].mxu0 }
 0x202   : > { %v4723_v60 = vadd.f32 %v4722_v51, %v4692_v5  ;;  %v5806_v55 = vadd.f32 %v5805_v21, %v5804_v36  ;;  %v5807_v28 = vpop.f32.mrb[122].mxu1  ;;  %4625 = vst [vmem:[%s7728_s17 + $0x50] sm:$0xff] %v4529_v29  ;;  %v4532_v17 = vadd.f32 %v5891_v15, %v7692_v26  ;;  %v4523_v2 = vpop.f32.mrb[123].mxu0  ;;  %v4695_v26 = vmul.f32 %v4529_v29, %v4529_v29 }
 0x203   : > { %v5808_v33 = vpop.f32.mrb[123].mxu1  ;;  %4623 = vst [vmem:[%s7728_s17 + $0x40] sm:$0xff] %v4521_v50  ;;  %v4654_v58 = vadd.f32 %v4653_v48, %v4521_v50  ;;  %v4693_v13 = vmul.f32 %v4521_v50, %v4521_v50  ;;  %v4524_v6 = vadd.f32 %v4523_v2, %v7680_v10 }
 0x204   : > { %v5809_v46 = vadd.f32 %v5808_v33, %v5807_v28  ;;  %4626 = vst [vmem:[%s7728_s17 + $0x58] sm:$0xff] %v4532_v17  ;;  %v7766_v35 = vadd.f32 %v5806_v55, %v7659_v24  ;;  %v4696_v39 = vmul.f32 %v4532_v17, %v4532_v17 }
 0x205   : > { %v4724_v8 = vadd.f32 %v4723_v60, %v4693_v13  ;;  %4624 = vst [vmem:[%s7728_s17 + $0x48] sm:$0xff] %v4524_v6  ;;  %v4655_v57 = vadd.f32 %v4654_v58, %v4524_v6  ;;  %v4694_v7 = vmul.f32 %v4524_v6, %v4524_v6 }
 0x206   : > { %v7770_v61 = vadd.f32 %v5809_v46, %v7662_v42 }
 0x207   : > { %v4656_v40 = vadd.f32 %v4655_v57, %v4529_v29  ;;  %v4725_v44 = vadd.f32 %v4724_v8, %v4694_v7 }
 0x208   : > { %v5894_v37 = vpop.f32.mrb[124].mxu0 }
 0x209   : > { %v4545_v25 = vadd.f32 %v5894_v37, %v7713_v53  ;;  %v4536_v10 = vpop.f32.mrb[125].mxu0  ;;  %v4726_v59 = vadd.f32 %v4725_v44, %v4695_v26  ;;  %v4657_v54 = vadd.f32 %v4656_v40, %v4532_v17 }
 0x20a   : > { %v4537_v24 = vadd.f32 %v4536_v10, %v7701_v43  ;;  %v5895_v31 = vpop.f32.mrb[126].mxu0  ;;  %v5810_v1 = vpop.f32.mrb[124].mxu1 }
 0x20b   : > { %4629 = vst [vmem:[%s7728_s17 + $0x70] sm:$0xff] %v4545_v25  ;;  %v4548_v42 = vadd.f32 %v5895_v31, %v7716_v14  ;;  %v4539_v63 = vpop.f32.mrb[127].mxu0  ;;  %v5811_v30 = vpop.f32.mrb[125].mxu1  ;;  %v4727_v62 = vadd.f32 %v4726_v59, %v4696_v39  ;;  %v4699_v36 = vmul.f32 %v4545_v25, %v4545_v25 }
 0x20c   : > { %4627 = vst [vmem:[%s7728_s17 + $0x60] sm:$0xff] %v4537_v24  ;;  %v4658_v9 = vadd.f32 %v4657_v54, %v4537_v24  ;;  %v4697_v22 = vmul.f32 %v4537_v24, %v4537_v24  ;;  %v4540_v53 = vadd.f32 %v4539_v63, %v7704_v11  ;;  %v5812_v3 = vadd.f32 %v5811_v30, %v5810_v1  ;;  %v5813_v12 = vpop.f32.mrb[126].mxu1 }
 0x20d   : > { %4630 = vst [vmem:[%s7728_s17 + $0x78] sm:$0xff] %v4548_v42  ;;  %v5814_v43 = vpop.f32.mrb[127].mxu1  ;;  %v4700_v56 = vmul.f32 %v4548_v42, %v4548_v42 }
 0x20e   : > { %v4728_v38 = vadd.f32 %v4727_v62, %v4697_v22  ;;  %4628 = vst [vmem:[%s7728_s17 + $0x68] sm:$0xff] %v4540_v53  ;;  %v4659_v5 = vadd.f32 %v4658_v9, %v4540_v53  ;;  %v4698_v51 = vmul.f32 %v4540_v53, %v4540_v53  ;;  %v5815_v48 = vadd.f32 %v5814_v43, %v5813_v12 }
 0x20f   : > { %v4416_v14 = vadd.f32 %v5812_v3, %v7671_v41 }
 0x210   : > { %v4660_v32 = vadd.f32 %v4659_v5, %v4545_v25  ;;  %v4729_v29 = vadd.f32 %v4728_v38, %v4698_v51  ;;  %v4419_v21 = vadd.f32 %v5815_v48, %v7674_v45 }
 0x211   : > { %v5898_v60 = vpop.f32.mrb[128].mxu0 }
 0x212   : > { %v4730_v11 = vadd.f32 %v4729_v29, %v4699_v36  ;;  %v4661_v55 = vadd.f32 %v4660_v32, %v4548_v42  ;;  %v4561_v50 = vadd.f32 %v5898_v60, %v7752_v47  ;;  %v4552_v28 = vpop.f32.mrb[129].mxu0 }
 0x213   : > { %v4553_v17 = vadd.f32 %v4552_v28, %v7737_v27  ;;  %v5899_v41 = vpop.f32.mrb[130].mxu0 }
 0x214   : > { %v5816_v15 = vpop.f32.mrb[128].mxu1  ;;  %v4731_v33 = vadd.f32 %v4730_v11, %v4700_v56  ;;  %4633 = vst [vmem:[%s7728_s17 + $0x90] sm:$0xff] %v4561_v50  ;;  %v4564_v58 = vadd.f32 %v5899_v41, %v7756_v49  ;;  %v4555_v45 = vpop.f32.mrb[131].mxu0  ;;  %v4703_v37 = vmul.f32 %v4561_v50, %v4561_v50 }
 0x215   : > { %v5817_v2 = vpop.f32.mrb[129].mxu1  ;;  %4631 = vst [vmem:[%s7728_s17 + $0x80] sm:$0xff] %v4553_v17  ;;  %v4662_v46 = vadd.f32 %v4661_v55, %v4553_v17  ;;  %v4701_v6 = vmul.f32 %v4553_v17, %v4553_v17  ;;  %v4556_v47 = vadd.f32 %v4555_v45, %v7742_v4 }
 0x216   : > { %v5818_v13 = vadd.f32 %v5817_v2, %v5816_v15  ;;  %v5819_v8 = vpop.f32.mrb[130].mxu1  ;;  %4634 = vst [vmem:[%s7728_s17 + $0x98] sm:$0xff] %v4564_v58  ;;  %v4704_v39 = vmul.f32 %v4564_v58, %v4564_v58 }
 0x217   : > { %v5820_v57 = vpop.f32.mrb[131].mxu1  ;;  %v4732_v7 = vadd.f32 %v4731_v33, %v4701_v6  ;;  %4632 = vst [vmem:[%s7728_s17 + $0x88] sm:$0xff] %v4556_v47  ;;  %v4663_v27 = vadd.f32 %v4662_v46, %v4556_v47  ;;  %v4702_v40 = vmul.f32 %v4556_v47, %v4556_v47 }
 0x218   : > { %v5821_v26 = vadd.f32 %v5820_v57, %v5819_v8  ;;  %v4424_v44 = vadd.f32 %v5818_v13, %v7683_v19 }
 0x219   : > { %v4664_v49 = vadd.f32 %v4663_v27, %v4561_v50  ;;  %v4733_v25 = vadd.f32 %v4732_v7, %v4702_v40 }
 0x21a   : > { %v4427_v10 = vadd.f32 %v5821_v26, %v7686_v0 }
 0x21b   : > { %v4734_v59 = vadd.f32 %v4733_v25, %v4703_v37  ;;  %v4665_v4 = vadd.f32 %v4664_v49, %v4564_v58 }
 0x21c   : > { %v5902_v24 = vpop.f32.mrb[132].mxu0 }
 0x21d   : > { %v4577_v54 = vadd.f32 %v5902_v24, %v4416_v14  ;;  %v4568_v31 = vpop.f32.mrb[133].mxu0  ;;  %v5822_v1 = vpop.f32.mrb[132].mxu1  ;;  %v4735_v63 = vadd.f32 %v4734_v59, %v4704_v39 }
 0x21e   : > { %v4569_v42 = vadd.f32 %v4568_v31, %v7766_v35  ;;  %v5903_v30 = vpop.f32.mrb[134].mxu0  ;;  %v5823_v19 = vpop.f32.mrb[133].mxu1 }
 0x21f   : > { %4637 = vst [vmem:[%s7728_s17 + $0xb0] sm:$0xff] %v4577_v54  ;;  %v4580_v9 = vadd.f32 %v5903_v30, %v4419_v21  ;;  %v4571_v22 = vpop.f32.mrb[135].mxu0  ;;  %v5824_v62 = vadd.f32 %v5823_v19, %v5822_v1  ;;  %v5825_v3 = vpop.f32.mrb[134].mxu1  ;;  %v4707_v14 = vmul.f32 %v4577_v54, %v4577_v54 }
 0x220   : > { %4635 = vst [vmem:[%s7728_s17 + $0xa0] sm:$0xff] %v4569_v42  ;;  %v4666_v0 = vadd.f32 %v4665_v4, %v4569_v42  ;;  %v4705_v53 = vmul.f32 %v4569_v42, %v4569_v42  ;;  %v4572_v12 = vadd.f32 %v4571_v22, %v7770_v61  ;;  %v5826_v38 = vpop.f32.mrb[135].mxu1 }
 0x221   : > { %4638 = vst [vmem:[%s7728_s17 + $0xb8] sm:$0xff] %v4580_v9  ;;  %v5827_v5 = vadd.f32 %v5826_v38, %v5825_v3  ;;  %v4432_v48 = vadd.f32 %v5824_v62, %v7695_v52  ;;  %v4708_v21 = vmul.f32 %v4580_v9, %v4580_v9 }
 0x222   : > { %v4736_v43 = vadd.f32 %v4735_v63, %v4705_v53  ;;  %4636 = vst [vmem:[%s7728_s17 + $0xa8] sm:$0xff] %v4572_v12  ;;  %v4667_v35 = vadd.f32 %v4666_v0, %v4572_v12  ;;  %v4706_v51 = vmul.f32 %v4572_v12, %v4572_v12 }
 0x223   : > { %v4435_v29 = vadd.f32 %v5827_v5, %v7698_v20 }
 0x224   : > { %v4668_v36 = vadd.f32 %v4667_v35, %v4577_v54  ;;  %v4737_v32 = vadd.f32 %v4736_v43, %v4706_v51 }
 0x226   : > { %v4738_v56 = vadd.f32 %v4737_v32, %v4707_v14  ;;  %v5906_v11 = vpop.f32.mrb[136].mxu0  ;;  %v4669_v61 = vadd.f32 %v4668_v36, %v4580_v9 }
 0x227   : > { %v4593_v60 = vadd.f32 %v5906_v11, %v4432_v48  ;;  %v4584_v55 = vpop.f32.mrb[137].mxu0  ;;  %v5828_v50 = vpop.f32.mrb[136].mxu1 }
 0x228   : > { %v4585_v28 = vadd.f32 %v4584_v55, %v4424_v44  ;;  %v4739_v15 = vadd.f32 %v4738_v56, %v4708_v21  ;;  %v5907_v17 = vpop.f32.mrb[138].mxu0  ;;  %v5829_v52 = vpop.f32.mrb[137].mxu1 }
 0x229   : > { %4641 = vst [vmem:[%s7728_s17 + $0xd0] sm:$0xff] %v4593_v60  ;;  %v4596_v33 = vadd.f32 %v5907_v17, %v4435_v29  ;;  %v4587_v41 = vpop.f32.mrb[139].mxu0  ;;  %v5830_v2 = vadd.f32 %v5829_v52, %v5828_v50  ;;  %v5831_v45 = vpop.f32.mrb[138].mxu1  ;;  %v4711_v26 = vmul.f32 %v4593_v60, %v4593_v60 }
 0x22a   : > { %4639 = vst [vmem:[%s7728_s17 + $0xc0] sm:$0xff] %v4585_v28  ;;  %v4670_v20 = vadd.f32 %v4669_v61, %v4585_v28  ;;  %v4709_v58 = vmul.f32 %v4585_v28, %v4585_v28  ;;  %v4588_v13 = vadd.f32 %v4587_v41, %v4427_v10  ;;  %v5832_v46 = vpop.f32.mrb[139].mxu1 }
 0x22b   : > { %4642 = vst [vmem:[%s7728_s17 + $0xd8] sm:$0xff] %v4596_v33  ;;  %v5833_v8 = vadd.f32 %v5832_v46, %v5831_v45  ;;  %v4440_v7 = vadd.f32 %v5830_v2, %v7707_v16  ;;  %v4712_v49 = vmul.f32 %v4596_v33, %v4596_v33 }
 0x22c   : > { %v4740_v6 = vadd.f32 %v4739_v15, %v4709_v58  ;;  %4640 = vst [vmem:[%s7728_s17 + $0xc8] sm:$0xff] %v4588_v13  ;;  %v4671_v47 = vadd.f32 %v4670_v20, %v4588_v13  ;;  %v4710_v57 = vmul.f32 %v4588_v13, %v4588_v13 }
 0x22d   : > { %v4443_v44 = vadd.f32 %v5833_v8, %v7710_v18 }
 0x22e   : > { %v4672_v27 = vadd.f32 %v4671_v47, %v4593_v60  ;;  %v4741_v40 = vadd.f32 %v4740_v6, %v4710_v57 }
 0x230   : > { %v4742_v25 = vadd.f32 %v4741_v40, %v4711_v26  ;;  %v4673_v10 = vadd.f32 %v4672_v27, %v4596_v33 }
 0x232   : > { %v4743_v31 = vadd.f32 %v4742_v25, %v4712_v49 }
 0x239   : > { %v5834_v59 = vpop.f32.mrb[140].mxu1 }
 0x23a   : > { %v5835_v54 = vpop.f32.mrb[141].mxu1 }
 0x23b   : > { %v5836_v42 = vadd.f32 %v5835_v54, %v5834_v59  ;;  %v5837_v30 = vpop.f32.mrb[142].mxu1 }
 0x23c   : > { %v5838_v19 = vpop.f32.mrb[143].mxu1 }
 0x23d   : > { %v5910_v37 = vpop.f32.mrb[140].mxu0  ;;  %v4448_v9 = vadd.f32 %v5836_v42, %v7719_v34  ;;  %v5839_v62 = vadd.f32 %v5838_v19, %v5837_v30 }
 0x23e   : > { %v4600_v39 = vpop.f32.mrb[141].mxu0 }
 0x23f   : > { %v4601_v24 = vadd.f32 %v4600_v39, %v4440_v7  ;;  %v5911_v4 = vpop.f32.mrb[142].mxu0  ;;  %v4609_v3 = vadd.f32 %v5910_v37, %v4448_v9  ;;  %v4451_v12 = vadd.f32 %v5839_v62, %v7723_v23 }
 0x240   : > { %v4603_v1 = vpop.f32.mrb[143].mxu0 }
 0x241   : > { %4643 = vst [vmem:[%s7728_s17 + $0xe0] sm:$0xff] %v4601_v24  ;;  %v4674_v16 = vadd.f32 %v4673_v10, %v4601_v24  ;;  %v4713_v63 = vmul.f32 %v4601_v24, %v4601_v24  ;;  %v4604_v18 = vadd.f32 %v4603_v1, %v4443_v44  ;;  %4645 = vst [vmem:[%s7728_s17 + $0xf0] sm:$0xff] %v4609_v3 }
 0x242   : > { %v4715_v43 = vmul.f32 %v4609_v3, %v4609_v3  ;;  %v4612_v5 = vadd.f32 %v5911_v4, %v4451_v12 }
 0x243   : > { %v4744_v22 = vadd.f32 %v4743_v31, %v4713_v63  ;;  %4644 = vst [vmem:[%s7728_s17 + $0xe8] sm:$0xff] %v4604_v18  ;;  %v4675_v0 = vadd.f32 %v4674_v16, %v4604_v18  ;;  %v4714_v53 = vmul.f32 %v4604_v18, %v4604_v18 }
 0x244   : > { %4646 = vst [vmem:[%s7728_s17 + $0xf8] sm:$0xff] %v4612_v5  ;;  %v4716_v51 = vmul.f32 %v4612_v5, %v4612_v5 }
 0x245   : > { %v4745_v38 = vadd.f32 %v4744_v22, %v4714_v53  ;;  %v4676_v35 = vadd.f32 %v4675_v0, %v4609_v3 }
 0x247   : > { %v4677_v48 = vadd.f32 %v4676_v35, %v4612_v5  ;;  %v4746_v14 = vadd.f32 %v4745_v38, %v4715_v43 }
 0x249   : > { %v4678_v34 = vrot.slane %v4677_v48, 4  ;;  %v4747_v36 = vadd.f32 %v4746_v14, %v4716_v51 }
 0x24b   : > { %v4679_v32 = vadd.f32 %v4678_v34, %v4677_v48  ;;  %v4748_v29 = vrot.slane %v4747_v36, 4 }
 0x24d   : > { %v4680_v21 = vrot.slane %v4679_v32, 2  ;;  %v4749_v56 = vadd.f32 %v4748_v29, %v4747_v36 }
 0x24f   : > { %v4681_v11 = vadd.f32 %v4680_v21, %v4679_v32  ;;  %v4750_v61 = vrot.slane %v4749_v56, 2 }
 0x251   : > { %v4682_v23 = vrot.slane %v4681_v11, 1  ;;  %v4751_v60 = vadd.f32 %v4750_v61, %v4749_v56 }
 0x253   : > { %v4683_v55 = vadd.f32 %v4682_v23, %v4681_v11  ;;  %v4752_v50 = vrot.slane %v4751_v60, 1 }
 0x255   : > { %4684 = vst [vmem:[%s238_s22] sm:$0x1] %v4683_v55  ;;  %v4753_v28 = vadd.f32 %v4752_v50, %v4751_v60 }
 0x257   : > { %4754 = vst [vmem:[%s241_s25] sm:$0x1] %v4753_v28 }
 0x258 PF: > { %s16_s18 = sadd.s32 1, %s6064_s18  }
 0x259   : > { %p13_p4 = scmp.ge.s32.totalorder %s16_s18, 4  }
 0x25b   :  { %15 = sbr.rel (!%p13_p4) target bundleno = 1 (0x1), region = 88 }

</bundles_post_ra>
